<compile_context>
chip_gen: v7x
topology: tpu7x:2x2x1
jax: 0.10.0
libtpu: 0.0.40
codegen_flags: <defaults>
</compile_context>

<pallas_src>
import math

import jax
import jax.numpy as jnp
from jax import lax
from jax.experimental import pallas as pl
from jax.experimental.pallas import tpu as pltpu

NEG_SLOPE = 0.01      # nn.LeakyReLU() default negative slope
PIXNORM_EPS = 1e-8    # PGAN NormalizationLayer epsilon
OUT_PAD = 128         # lane-dense padded width for the 3-channel output


def _leaky(h):
    return jnp.where(h >= 0, h, NEG_SLOPE * h)


def _pixnorm(h):
    return h * lax.rsqrt(jnp.mean(h * h, axis=-1, keepdims=True) + PIXNORM_EPS)


# ----------------------------- Pallas kernel ------------------------------ #

def _generator_kernel(x_ref, w1_ref, b1_ref, w2_ref, b2_ref, w3_ref, b3_ref,
                      o_ref, xw_scr, h1pad_scr, patch_scr):
    """Entire Generator forward fused; weights/activations stay VMEM-resident.

    Scratch:
      xw_scr    : (Bp, 16L) f32   stage-1 matmul result (column-block per pixel)
      h1pad_scr : (36*Bp, L) bf16 stage-1 activation on a zero-padded 6x6 map
      patch_scr : (16*Bp, 9L) bf16 im2col patch for the 3x3 conv
    """
    Bp, L = x_ref.shape

    # --- Stage 1: 4x4 conv (pad 3) on a 1x1 input == one dense matmul (bf16 MXU).
    xw_scr[...] = jnp.dot(x_ref[...].astype(jnp.bfloat16), w1_ref[...],
                          preferred_element_type=jnp.float32)      # (Bp, 16L)
    h1pad_scr[...] = jnp.zeros_like(h1pad_scr)                      # zero borders
    b1 = b1_ref[...]
    for p in range(16):                                            # pixel (i, j)
        i, j = divmod(p, 4)
        blk = xw_scr[:, p * L:(p + 1) * L] + b1                    # (Bp, L)
        blk = _pixnorm(_leaky(blk))
        dst = ((i + 1) * 6 + (j + 1)) * Bp                         # interior of 6x6
        h1pad_scr[pl.ds(dst, Bp), :] = blk.astype(jnp.bfloat16)

    # --- Stage 2: 3x3 conv (pad 1) as ONE deep-K matmul.
    # Gather each tap's neighbours with static slices from the padded map
    # (ld/st slots only — no MXU work, no shift matrices).
    for t in range(9):
        di, dj = divmod(t, 3)
        for i in range(4):                                         # j=0..3 contiguous
            src = ((i + di) * 6 + dj) * Bp
            patch_scr[pl.ds(i * 4 * Bp, 4 * Bp), pl.ds(t * L, L)] = (
                h1pad_scr[pl.ds(src, 4 * Bp), :])
    h2 = jnp.dot(patch_scr[...], w2_ref[...],
                 preferred_element_type=jnp.float32) + b2_ref[...]  # (R, mid)
    h2 = _pixnorm(_leaky(h2))

    # --- Stage 3: 1x1 conv into a lane-dense zero-padded (R, 128) output.
    o_ref[...] = (jnp.dot(h2.astype(jnp.bfloat16), w3_ref[...],
                          preferred_element_type=jnp.float32) + b3_ref[...])


# ------------------------- parameter preparation --------------------------- #

def prepare_generator(params):
    """One-time, batch-independent packing: equalized-lr scale, transposes, pads."""
    L = params["w1"].shape[0]      # latent
    mid = params["w2"].shape[0]
    s1 = math.sqrt(2.0 / (L * 4 * 4))
    s2 = math.sqrt(2.0 / (L * 3 * 3))
    s3 = math.sqrt(2.0 / (mid * 1 * 1))

    # Stage 1: output pixel (i,j) only sees tap (3-i, 3-j); fold into a dense
    # (L, 16*L) weight whose columns are ordered (pixel p, c_out).
    w1_flip = params["w1"][:, :, ::-1, ::-1]                        # (O, C, i, j)
    w1_big = (jnp.transpose(w1_flip, (1, 2, 3, 0)).reshape(L, 16 * L)
              * s1).astype(jnp.bfloat16)

    # Stage 2: one (9L, mid) matrix, row index = (di*3 + dj)*L + c_in.
    w2_big = (jnp.transpose(params["w2"], (2, 3, 1, 0)).reshape(9 * L, mid)
              * s2).astype(jnp.bfloat16)

    # Stage 3: 1x1 conv weight, zero-padded to a 128-lane-dense output.
    w3 = params["w3"][:, :, 0, 0].T * s3                            # (mid, 3)
    w3_pad = jnp.zeros((mid, OUT_PAD), jnp.float32).at[:, :3].set(w3)
    b3_pad = jnp.zeros((1, OUT_PAD), jnp.float32).at[0, :3].set(params["b3"])

    return dict(
        w1=w1_big,
        b1=params["b1"].reshape(1, L).astype(jnp.float32),
        w2=w2_big,
        b2=params["b2"].reshape(1, mid).astype(jnp.float32),
        w3=w3_pad.astype(jnp.bfloat16),
        b3=b3_pad,
    )


def init_generator_params(key, latent, mid):
    """EqualizedConv2d init: weights ~ N(0,1), biases = 0 (scale applied at fwd)."""
    k1, k2, k3 = jax.random.split(key, 3)
    return dict(
        w1=jax.random.normal(k1, (latent, latent, 4, 4), jnp.float32),
        b1=jnp.zeros((latent,), jnp.float32),
        w2=jax.random.normal(k2, (mid, latent, 3, 3), jnp.float32),
        b2=jnp.zeros((mid,), jnp.float32),
        w3=jax.random.normal(k3, (3, mid, 1, 1), jnp.float32),
        b3=jnp.zeros((3,), jnp.float32),
    )


# ------------------------------- forward ----------------------------------- #

def generator_forward(prep, x):
    """x: (B, latent) f32.  Returns NCHW (B, 3, 4, 4), matching PyTorch."""
    B, L = x.shape
    Bp = max(8, -(-B // 8) * 8)            # pad batch to a full sublane multiple
    if Bp != B:
        x = jnp.concatenate([x, jnp.zeros((Bp - B, L), x.dtype)], axis=0)
    R = 16 * Bp
    mid = prep["w2"].shape[1]

    flops = (2 * Bp * L * 16 * L            # stage 1
             + 2 * R * 9 * L * mid          # stage 2 (single deep-K matmul)
             + 2 * R * mid * OUT_PAD)       # stage 3
    bytes_accessed = (4 * Bp * L + 2 * L * 16 * L + 4 * L
                      + 2 * 9 * L * mid + 4 * mid
                      + 2 * mid * OUT_PAD + 4 * OUT_PAD
                      + 4 * R * OUT_PAD)

    # Single-buffered VMEM footprint (no grid => no double buffering) + margin.
    vmem_bytes = (bytes_accessed
                  + 4 * Bp * 16 * L          # xw scratch (f32)
                  + 2 * 36 * Bp * L          # padded h1 scratch (bf16)
                  + 2 * R * 9 * L)           # im2col patch scratch (bf16)
    vmem_limit = int(min(max(2 * vmem_bytes, 4 << 20), 64 << 20))

    vmem = pltpu.MemorySpace.VMEM
    out_wide = pl.pallas_call(
        _generator_kernel,
        out_shape=jax.ShapeDtypeStruct((R, OUT_PAD), jnp.float32),
        in_specs=[pl.BlockSpec(memory_space=vmem)] * 7,
        out_specs=pl.BlockSpec(memory_space=vmem),
        scratch_shapes=[
            pltpu.VMEM((Bp, 16 * L), jnp.float32),
            pltpu.VMEM((36 * Bp, L), jnp.bfloat16),
            pltpu.VMEM((R, 9 * L), jnp.bfloat16),
        ],
        compiler_params=pltpu.CompilerParams(vmem_limit_bytes=vmem_limit),
        cost_estimate=pl.CostEstimate(flops=flops, transcendentals=2 * R,
                                      bytes_accessed=bytes_accessed),
    )(x, prep["w1"], prep["b1"], prep["w2"], prep["b2"], prep["w3"], prep["b3"])

    # rows are ordered (i, j, b); drop batch padding, slice the 3 real channels,
    # and go to NCHW.
    out = out_wide[:, :3].reshape(4, 4, Bp, 3)[:, :, :B, :]
    return jnp.transpose(out, (2, 3, 0, 1))


# --------------------------- pure-JAX reference ---------------------------- #

def reference_forward(params, x):
    B, L = x.shape
    h = x.reshape(B, L, 1, 1)

    def eqconv(h, w, b, pad):
        O, C, kh, kw = w.shape
        scale = math.sqrt(2.0 / (C * kh * kw))
        y = lax.conv_general_dilated(
            h, w * scale, (1, 1), [(pad, pad), (pad, pad)],
            dimension_numbers=("NCHW", "OIHW", "NCHW"),
            precision=lax.Precision.HIGHEST)
        return y + b.reshape(1, -1, 1, 1)

    def leaky(h):
        return jnp.where(h >= 0, h, NEG_SLOPE * h)

    def pixnorm(h):
        return h * lax.rsqrt(jnp.mean(h * h, axis=1, keepdims=True) + PIXNORM_EPS)

    h = pixnorm(leaky(eqconv(h, params["w1"], params["b1"], 3)))
    h = pixnorm(leaky(eqconv(h, params["w2"], params["b2"], 1)))
    h = eqconv(h, params["w3"], params["b3"], 0)
    return h


# --------------------------------- main ------------------------------------ #

if __name__ == "__main__":
    LATENT, MID, BATCH = 128, 256, 2   # small stand-ins for the (512, 512) defaults

    key = jax.random.PRNGKey(0)
    kp, kx = jax.random.split(key)
    params = init_generator_params(kp, LATENT, MID)
    x = jax.random.normal(kx, (BATCH, LATENT), jnp.float32)

    prep = prepare_generator(params)   # one-time, batch-independent weight packing

    out = jax.block_until_ready(generator_forward(prep, x))
    assert out.shape == (BATCH, 3, 4, 4), out.shape

    ref = jax.block_until_ready(reference_forward(params, x))
    max_err = float(jnp.max(jnp.abs(out - ref)))
    assert jnp.allclose(out, ref, atol=5e-2, rtol=5e-2), max_err

    print("KERNEL_OK")
</pallas_src>

<mosaic_0001>
module attributes {stable_mosaic.version = 11 : i64} {
  func.func @_generator_kernel(%arg0: memref<8x128xf32, #tpu.memory_space<vmem>>, %arg1: memref<128x2048xbf16, #tpu.memory_space<vmem>>, %arg2: memref<1x128xf32, #tpu.memory_space<vmem>>, %arg3: memref<1152x256xbf16, #tpu.memory_space<vmem>>, %arg4: memref<1x256xf32, #tpu.memory_space<vmem>>, %arg5: memref<256x128xbf16, #tpu.memory_space<vmem>>, %arg6: memref<1x128xf32, #tpu.memory_space<vmem>>, %arg7: memref<128x128xf32, #tpu.memory_space<vmem>>, %arg8: memref<8x2048xf32, #tpu.memory_space<vmem>>, %arg9: memref<288x128xbf16, #tpu.memory_space<vmem>>, %arg10: memref<128x1152xbf16, #tpu.memory_space<vmem>>) attributes {dimension_semantics = [], scalar_prefetch = 0 : i64, scratch_operands = 3 : i64, tpu.core_type = #tpu.core_type<tc>} {
    %c0 = arith.constant 0 : index
    %c0_0 = arith.constant 0 : index
    %0 = vector.load %arg0[%c0, %c0_0] : memref<8x128xf32, #tpu.memory_space<vmem>>, vector<8x128xf32>
    %1 = arith.truncf %0 : vector<8x128xf32> to vector<8x128xbf16>
    %c0_1 = arith.constant 0 : index
    %c0_2 = arith.constant 0 : index
    %2 = vector.load %arg1[%c0_1, %c0_2] : memref<128x2048xbf16, #tpu.memory_space<vmem>>, vector<128x2048xbf16>
    %cst = arith.constant dense<0.000000e+00> : vector<8x2048xf32>
    %3 = tpu.matmul %1, %2, %cst {dimension_numbers = #tpu.dot_dimension_numbers<[1], [0], [0], [1], [0, 0, 1, 1], [], []>} : vector<8x128xbf16>, vector<128x2048xbf16>, vector<8x2048xf32> -> vector<8x2048xf32>
    %c0_3 = arith.constant 0 : index
    %c0_4 = arith.constant 0 : index
    %4 = vector.load %arg8[%c0_3, %c0_4] : memref<8x2048xf32, #tpu.memory_space<vmem>>, vector<8x2048xf32>
    tpu.vector_store %arg8[%c0_3, %c0_4], %3 {strides = array<i32>} : memref<8x2048xf32, #tpu.memory_space<vmem>>, vector<8x2048xf32>,
    %cst_5 = arith.constant 0.000000e+00 : bf16
    %5 = vector.broadcast %cst_5 : bf16 to vector<288x128xbf16>
    %c0_6 = arith.constant 0 : index
    %c0_7 = arith.constant 0 : index
    %6 = vector.load %arg9[%c0_6, %c0_7] : memref<288x128xbf16, #tpu.memory_space<vmem>>, vector<288x128xbf16>
    tpu.vector_store %arg9[%c0_6, %c0_7], %5 {strides = array<i32>} : memref<288x128xbf16, #tpu.memory_space<vmem>>, vector<288x128xbf16>,
    %c0_8 = arith.constant 0 : index
    %c0_9 = arith.constant 0 : index
    %7 = vector.load %arg2[%c0_8, %c0_9] : memref<1x128xf32, #tpu.memory_space<vmem>>, vector<1x128xf32>
    %c0_10 = arith.constant 0 : index
    %c0_11 = arith.constant 0 : index
    %8 = vector.load %arg8[%c0_10, %c0_11] : memref<8x2048xf32, #tpu.memory_space<vmem>>, vector<8x128xf32>
    %9 = vector.broadcast %7 : vector<1x128xf32> to vector<8x128xf32>
    %10 = arith.addf %8, %9 : vector<8x128xf32>
    %cst_12 = arith.constant 0.000000e+00 : f32
    %11 = vector.broadcast %cst_12 : f32 to vector<8x128xf32>
    %12 = arith.cmpf oge, %10, %11 : vector<8x128xf32>
    %cst_13 = arith.constant 0.00999999977 : f32
    %13 = vector.broadcast %cst_13 : f32 to vector<8x128xf32>
    %14 = arith.mulf %13, %10 : vector<8x128xf32>
    %15 = arith.select %12, %10, %14 : vector<8x128xi1>, vector<8x128xf32>
    %16 = arith.mulf %15, %15 : vector<8x128xf32>
    %cst_14 = arith.constant dense<0.000000e+00> : vector<8xf32>
    %17 = vector.multi_reduction <add>, %16, %cst_14 [1] : vector<8x128xf32> to vector<8xf32>
    %18 = vector.shape_cast %17 : vector<8xf32> to vector<8x1xf32>
    %cst_15 = arith.constant 1.280000e+02 : f32
    %19 = vector.broadcast %cst_15 : f32 to vector<8x1xf32>
    %20 = arith.divf %18, %19 : vector<8x1xf32>
    %cst_16 = arith.constant 9.99999993E-9 : f32
    %21 = vector.broadcast %cst_16 : f32 to vector<8x1xf32>
    %22 = arith.addf %20, %21 : vector<8x1xf32>
    %23 = math.rsqrt %22 : vector<8x1xf32>
    %24 = vector.broadcast %23 : vector<8x1xf32> to vector<8x128xf32>
    %25 = arith.mulf %15, %24 : vector<8x128xf32>
    %26 = arith.truncf %25 : vector<8x128xf32> to vector<8x128xbf16>
    %c56 = arith.constant 56 : index
    %c0_17 = arith.constant 0 : index
    %27 = vector.load %arg9[%c56, %c0_17] : memref<288x128xbf16, #tpu.memory_space<vmem>>, vector<8x128xbf16>
    tpu.vector_store %arg9[%c56, %c0_17], %26 {strides = array<i32>} : memref<288x128xbf16, #tpu.memory_space<vmem>>, vector<8x128xbf16>,
    %c0_18 = arith.constant 0 : index
    %c128 = arith.constant 128 : index
    %28 = vector.load %arg8[%c0_18, %c128] : memref<8x2048xf32, #tpu.memory_space<vmem>>, vector<8x128xf32>
    %29 = vector.broadcast %7 : vector<1x128xf32> to vector<8x128xf32>
    %30 = arith.addf %28, %29 : vector<8x128xf32>
    %cst_19 = arith.constant 0.000000e+00 : f32
    %31 = vector.broadcast %cst_19 : f32 to vector<8x128xf32>
    %32 = arith.cmpf oge, %30, %31 : vector<8x128xf32>
    %cst_20 = arith.constant 0.00999999977 : f32
    %33 = vector.broadcast %cst_20 : f32 to vector<8x128xf32>
    %34 = arith.mulf %33, %30 : vector<8x128xf32>
    %35 = arith.select %32, %30, %34 : vector<8x128xi1>, vector<8x128xf32>
    %36 = arith.mulf %35, %35 : vector<8x128xf32>
    %cst_21 = arith.constant dense<0.000000e+00> : vector<8xf32>
    %37 = vector.multi_reduction <add>, %36, %cst_21 [1] : vector<8x128xf32> to vector<8xf32>
    %38 = vector.shape_cast %37 : vector<8xf32> to vector<8x1xf32>
    %cst_22 = arith.constant 1.280000e+02 : f32
    %39 = vector.broadcast %cst_22 : f32 to vector<8x1xf32>
    %40 = arith.divf %38, %39 : vector<8x1xf32>
    %cst_23 = arith.constant 9.99999993E-9 : f32
    %41 = vector.broadcast %cst_23 : f32 to vector<8x1xf32>
    %42 = arith.addf %40, %41 : vector<8x1xf32>
    %43 = math.rsqrt %42 : vector<8x1xf32>
    %44 = vector.broadcast %43 : vector<8x1xf32> to vector<8x128xf32>
    %45 = arith.mulf %35, %44 : vector<8x128xf32>
    %46 = arith.truncf %45 : vector<8x128xf32> to vector<8x128xbf16>
    %c64 = arith.constant 64 : index
    %c0_24 = arith.constant 0 : index
    %47 = vector.load %arg9[%c64, %c0_24] : memref<288x128xbf16, #tpu.memory_space<vmem>>, vector<8x128xbf16>
    tpu.vector_store %arg9[%c64, %c0_24], %46 {strides = array<i32>} : memref<288x128xbf16, #tpu.memory_space<vmem>>, vector<8x128xbf16>,
    %c0_25 = arith.constant 0 : index
    %c256 = arith.constant 256 : index
    %48 = vector.load %arg8[%c0_25, %c256] : memref<8x2048xf32, #tpu.memory_space<vmem>>, vector<8x128xf32>
    %49 = vector.broadcast %7 : vector<1x128xf32> to vector<8x128xf32>
    %50 = arith.addf %48, %49 : vector<8x128xf32>
    %cst_26 = arith.constant 0.000000e+00 : f32
    %51 = vector.broadcast %cst_26 : f32 to vector<8x128xf32>
    %52 = arith.cmpf oge, %50, %51 : vector<8x128xf32>
    %cst_27 = arith.constant 0.00999999977 : f32
    %53 = vector.broadcast %cst_27 : f32 to vector<8x128xf32>
    %54 = arith.mulf %53, %50 : vector<8x128xf32>
    %55 = arith.select %52, %50, %54 : vector<8x128xi1>, vector<8x128xf32>
    %56 = arith.mulf %55, %55 : vector<8x128xf32>
    %cst_28 = arith.constant dense<0.000000e+00> : vector<8xf32>
    %57 = vector.multi_reduction <add>, %56, %cst_28 [1] : vector<8x128xf32> to vector<8xf32>
    %58 = vector.shape_cast %57 : vector<8xf32> to vector<8x1xf32>
    %cst_29 = arith.constant 1.280000e+02 : f32
    %59 = vector.broadcast %cst_29 : f32 to vector<8x1xf32>
    %60 = arith.divf %58, %59 : vector<8x1xf32>
    %cst_30 = arith.constant 9.99999993E-9 : f32
    %61 = vector.broadcast %cst_30 : f32 to vector<8x1xf32>
    %62 = arith.addf %60, %61 : vector<8x1xf32>
    %63 = math.rsqrt %62 : vector<8x1xf32>
    %64 = vector.broadcast %63 : vector<8x1xf32> to vector<8x128xf32>
    %65 = arith.mulf %55, %64 : vector<8x128xf32>
    %66 = arith.truncf %65 : vector<8x128xf32> to vector<8x128xbf16>
    %c72 = arith.constant 72 : index
    %c0_31 = arith.constant 0 : index
    %67 = vector.load %arg9[%c72, %c0_31] : memref<288x128xbf16, #tpu.memory_space<vmem>>, vector<8x128xbf16>
    tpu.vector_store %arg9[%c72, %c0_31], %66 {strides = array<i32>} : memref<288x128xbf16, #tpu.memory_space<vmem>>, vector<8x128xbf16>,
    %c0_32 = arith.constant 0 : index
    %c384 = arith.constant 384 : index
    %68 = vector.load %arg8[%c0_32, %c384] : memref<8x2048xf32, #tpu.memory_space<vmem>>, vector<8x128xf32>
    %69 = vector.broadcast %7 : vector<1x128xf32> to vector<8x128xf32>
    %70 = arith.addf %68, %69 : vector<8x128xf32>
    %cst_33 = arith.constant 0.000000e+00 : f32
    %71 = vector.broadcast %cst_33 : f32 to vector<8x128xf32>
    %72 = arith.cmpf oge, %70, %71 : vector<8x128xf32>
    %cst_34 = arith.constant 0.00999999977 : f32
    %73 = vector.broadcast %cst_34 : f32 to vector<8x128xf32>
    %74 = arith.mulf %73, %70 : vector<8x128xf32>
    %75 = arith.select %72, %70, %74 : vector<8x128xi1>, vector<8x128xf32>
    %76 = arith.mulf %75, %75 : vector<8x128xf32>
    %cst_35 = arith.constant dense<0.000000e+00> : vector<8xf32>
    %77 = vector.multi_reduction <add>, %76, %cst_35 [1] : vector<8x128xf32> to vector<8xf32>
    %78 = vector.shape_cast %77 : vector<8xf32> to vector<8x1xf32>
    %cst_36 = arith.constant 1.280000e+02 : f32
    %79 = vector.broadcast %cst_36 : f32 to vector<8x1xf32>
    %80 = arith.divf %78, %79 : vector<8x1xf32>
    %cst_37 = arith.constant 9.99999993E-9 : f32
    %81 = vector.broadcast %cst_37 : f32 to vector<8x1xf32>
    %82 = arith.addf %80, %81 : vector<8x1xf32>
    %83 = math.rsqrt %82 : vector<8x1xf32>
    %84 = vector.broadcast %83 : vector<8x1xf32> to vector<8x128xf32>
    %85 = arith.mulf %75, %84 : vector<8x128xf32>
    %86 = arith.truncf %85 : vector<8x128xf32> to vector<8x128xbf16>
    %c80 = arith.constant 80 : index
    %c0_38 = arith.constant 0 : index
    %87 = vector.load %arg9[%c80, %c0_38] : memref<288x128xbf16, #tpu.memory_space<vmem>>, vector<8x128xbf16>
    tpu.vector_store %arg9[%c80, %c0_38], %86 {strides = array<i32>} : memref<288x128xbf16, #tpu.memory_space<vmem>>, vector<8x128xbf16>,
    %c0_39 = arith.constant 0 : index
    %c512 = arith.constant 512 : index
    %88 = vector.load %arg8[%c0_39, %c512] : memref<8x2048xf32, #tpu.memory_space<vmem>>, vector<8x128xf32>
    %89 = vector.broadcast %7 : vector<1x128xf32> to vector<8x128xf32>
    %90 = arith.addf %88, %89 : vector<8x128xf32>
    %cst_40 = arith.constant 0.000000e+00 : f32
    %91 = vector.broadcast %cst_40 : f32 to vector<8x128xf32>
    %92 = arith.cmpf oge, %90, %91 : vector<8x128xf32>
    %cst_41 = arith.constant 0.00999999977 : f32
    %93 = vector.broadcast %cst_41 : f32 to vector<8x128xf32>
    %94 = arith.mulf %93, %90 : vector<8x128xf32>
    %95 = arith.select %92, %90, %94 : vector<8x128xi1>, vector<8x128xf32>
    %96 = arith.mulf %95, %95 : vector<8x128xf32>
    %cst_42 = arith.constant dense<0.000000e+00> : vector<8xf32>
    %97 = vector.multi_reduction <add>, %96, %cst_42 [1] : vector<8x128xf32> to vector<8xf32>
    %98 = vector.shape_cast %97 : vector<8xf32> to vector<8x1xf32>
    %cst_43 = arith.constant 1.280000e+02 : f32
    %99 = vector.broadcast %cst_43 : f32 to vector<8x1xf32>
    %100 = arith.divf %98, %99 : vector<8x1xf32>
    %cst_44 = arith.constant 9.99999993E-9 : f32
    %101 = vector.broadcast %cst_44 : f32 to vector<8x1xf32>
    %102 = arith.addf %100, %101 : vector<8x1xf32>
    %103 = math.rsqrt %102 : vector<8x1xf32>
    %104 = vector.broadcast %103 : vector<8x1xf32> to vector<8x128xf32>
    %105 = arith.mulf %95, %104 : vector<8x128xf32>
    %106 = arith.truncf %105 : vector<8x128xf32> to vector<8x128xbf16>
    %c104 = arith.constant 104 : index
    %c0_45 = arith.constant 0 : index
    %107 = vector.load %arg9[%c104, %c0_45] : memref<288x128xbf16, #tpu.memory_space<vmem>>, vector<8x128xbf16>
    tpu.vector_store %arg9[%c104, %c0_45], %106 {strides = array<i32>} : memref<288x128xbf16, #tpu.memory_space<vmem>>, vector<8x128xbf16>,
    %c0_46 = arith.constant 0 : index
    %c640 = arith.constant 640 : index
    %108 = vector.load %arg8[%c0_46, %c640] : memref<8x2048xf32, #tpu.memory_space<vmem>>, vector<8x128xf32>
    %109 = vector.broadcast %7 : vector<1x128xf32> to vector<8x128xf32>
    %110 = arith.addf %108, %109 : vector<8x128xf32>
    %cst_47 = arith.constant 0.000000e+00 : f32
    %111 = vector.broadcast %cst_47 : f32 to vector<8x128xf32>
    %112 = arith.cmpf oge, %110, %111 : vector<8x128xf32>
    %cst_48 = arith.constant 0.00999999977 : f32
    %113 = vector.broadcast %cst_48 : f32 to vector<8x128xf32>
    %114 = arith.mulf %113, %110 : vector<8x128xf32>
    %115 = arith.select %112, %110, %114 : vector<8x128xi1>, vector<8x128xf32>
    %116 = arith.mulf %115, %115 : vector<8x128xf32>
    %cst_49 = arith.constant dense<0.000000e+00> : vector<8xf32>
    %117 = vector.multi_reduction <add>, %116, %cst_49 [1] : vector<8x128xf32> to vector<8xf32>
    %118 = vector.shape_cast %117 : vector<8xf32> to vector<8x1xf32>
    %cst_50 = arith.constant 1.280000e+02 : f32
    %119 = vector.broadcast %cst_50 : f32 to vector<8x1xf32>
    %120 = arith.divf %118, %119 : vector<8x1xf32>
    %cst_51 = arith.constant 9.99999993E-9 : f32
    %121 = vector.broadcast %cst_51 : f32 to vector<8x1xf32>
    %122 = arith.addf %120, %121 : vector<8x1xf32>
    %123 = math.rsqrt %122 : vector<8x1xf32>
    %124 = vector.broadcast %123 : vector<8x1xf32> to vector<8x128xf32>
    %125 = arith.mulf %115, %124 : vector<8x128xf32>
    %126 = arith.truncf %125 : vector<8x128xf32> to vector<8x128xbf16>
    %c112 = arith.constant 112 : index
    %c0_52 = arith.constant 0 : index
    %127 = vector.load %arg9[%c112, %c0_52] : memref<288x128xbf16, #tpu.memory_space<vmem>>, vector<8x128xbf16>
    tpu.vector_store %arg9[%c112, %c0_52], %126 {strides = array<i32>} : memref<288x128xbf16, #tpu.memory_space<vmem>>, vector<8x128xbf16>,
    %c0_53 = arith.constant 0 : index
    %c768 = arith.constant 768 : index
    %128 = vector.load %arg8[%c0_53, %c768] : memref<8x2048xf32, #tpu.memory_space<vmem>>, vector<8x128xf32>
    %129 = vector.broadcast %7 : vector<1x128xf32> to vector<8x128xf32>
    %130 = arith.addf %128, %129 : vector<8x128xf32>
    %cst_54 = arith.constant 0.000000e+00 : f32
    %131 = vector.broadcast %cst_54 : f32 to vector<8x128xf32>
    %132 = arith.cmpf oge, %130, %131 : vector<8x128xf32>
    %cst_55 = arith.constant 0.00999999977 : f32
    %133 = vector.broadcast %cst_55 : f32 to vector<8x128xf32>
    %134 = arith.mulf %133, %130 : vector<8x128xf32>
    %135 = arith.select %132, %130, %134 : vector<8x128xi1>, vector<8x128xf32>
    %136 = arith.mulf %135, %135 : vector<8x128xf32>
    %cst_56 = arith.constant dense<0.000000e+00> : vector<8xf32>
    %137 = vector.multi_reduction <add>, %136, %cst_56 [1] : vector<8x128xf32> to vector<8xf32>
    %138 = vector.shape_cast %137 : vector<8xf32> to vector<8x1xf32>
    %cst_57 = arith.constant 1.280000e+02 : f32
    %139 = vector.broadcast %cst_57 : f32 to vector<8x1xf32>
    %140 = arith.divf %138, %139 : vector<8x1xf32>
    %cst_58 = arith.constant 9.99999993E-9 : f32
    %141 = vector.broadcast %cst_58 : f32 to vector<8x1xf32>
    %142 = arith.addf %140, %141 : vector<8x1xf32>
    %143 = math.rsqrt %142 : vector<8x1xf32>
    %144 = vector.broadcast %143 : vector<8x1xf32> to vector<8x128xf32>
    %145 = arith.mulf %135, %144 : vector<8x128xf32>
    %146 = arith.truncf %145 : vector<8x128xf32> to vector<8x128xbf16>
    %c120 = arith.constant 120 : index
    %c0_59 = arith.constant 0 : index
    %147 = vector.load %arg9[%c120, %c0_59] : memref<288x128xbf16, #tpu.memory_space<vmem>>, vector<8x128xbf16>
    tpu.vector_store %arg9[%c120, %c0_59], %146 {strides = array<i32>} : memref<288x128xbf16, #tpu.memory_space<vmem>>, vector<8x128xbf16>,
    %c0_60 = arith.constant 0 : index
    %c896 = arith.constant 896 : index
    %148 = vector.load %arg8[%c0_60, %c896] : memref<8x2048xf32, #tpu.memory_space<vmem>>, vector<8x128xf32>
    %149 = vector.broadcast %7 : vector<1x128xf32> to vector<8x128xf32>
    %150 = arith.addf %148, %149 : vector<8x128xf32>
    %cst_61 = arith.constant 0.000000e+00 : f32
    %151 = vector.broadcast %cst_61 : f32 to vector<8x128xf32>
    %152 = arith.cmpf oge, %150, %151 : vector<8x128xf32>
    %cst_62 = arith.constant 0.00999999977 : f32
    %153 = vector.broadcast %cst_62 : f32 to vector<8x128xf32>
    %154 = arith.mulf %153, %150 : vector<8x128xf32>
    %155 = arith.select %152, %150, %154 : vector<8x128xi1>, vector<8x128xf32>
    %156 = arith.mulf %155, %155 : vector<8x128xf32>
    %cst_63 = arith.constant dense<0.000000e+00> : vector<8xf32>
    %157 = vector.multi_reduction <add>, %156, %cst_63 [1] : vector<8x128xf32> to vector<8xf32>
    %158 = vector.shape_cast %157 : vector<8xf32> to vector<8x1xf32>
    %cst_64 = arith.constant 1.280000e+02 : f32
    %159 = vector.broadcast %cst_64 : f32 to vector<8x1xf32>
    %160 = arith.divf %158, %159 : vector<8x1xf32>
    %cst_65 = arith.constant 9.99999993E-9 : f32
    %161 = vector.broadcast %cst_65 : f32 to vector<8x1xf32>
    %162 = arith.addf %160, %161 : vector<8x1xf32>
    %163 = math.rsqrt %162 : vector<8x1xf32>
    %164 = vector.broadcast %163 : vector<8x1xf32> to vector<8x128xf32>
    %165 = arith.mulf %155, %164 : vector<8x128xf32>
    %166 = arith.truncf %165 : vector<8x128xf32> to vector<8x128xbf16>
    %c128_66 = arith.constant 128 : index
    %c0_67 = arith.constant 0 : index
    %167 = vector.load %arg9[%c128_66, %c0_67] : memref<288x128xbf16, #tpu.memory_space<vmem>>, vector<8x128xbf16>
    tpu.vector_store %arg9[%c128_66, %c0_67], %166 {strides = array<i32>} : memref<288x128xbf16, #tpu.memory_space<vmem>>, vector<8x128xbf16>,
    %c0_68 = arith.constant 0 : index
    %c1024 = arith.constant 1024 : index
    %168 = vector.load %arg8[%c0_68, %c1024] : memref<8x2048xf32, #tpu.memory_space<vmem>>, vector<8x128xf32>
    %169 = vector.broadcast %7 : vector<1x128xf32> to vector<8x128xf32>
    %170 = arith.addf %168, %169 : vector<8x128xf32>
    %cst_69 = arith.constant 0.000000e+00 : f32
    %171 = vector.broadcast %cst_69 : f32 to vector<8x128xf32>
    %172 = arith.cmpf oge, %170, %171 : vector<8x128xf32>
    %cst_70 = arith.constant 0.00999999977 : f32
    %173 = vector.broadcast %cst_70 : f32 to vector<8x128xf32>
    %174 = arith.mulf %173, %170 : vector<8x128xf32>
    %175 = arith.select %172, %170, %174 : vector<8x128xi1>, vector<8x128xf32>
    %176 = arith.mulf %175, %175 : vector<8x128xf32>
    %cst_71 = arith.constant dense<0.000000e+00> : vector<8xf32>
    %177 = vector.multi_reduction <add>, %176, %cst_71 [1] : vector<8x128xf32> to vector<8xf32>
    %178 = vector.shape_cast %177 : vector<8xf32> to vector<8x1xf32>
    %cst_72 = arith.constant 1.280000e+02 : f32
    %179 = vector.broadcast %cst_72 : f32 to vector<8x1xf32>
    %180 = arith.divf %178, %179 : vector<8x1xf32>
    %cst_73 = arith.constant 9.99999993E-9 : f32
    %181 = vector.broadcast %cst_73 : f32 to vector<8x1xf32>
    %182 = arith.addf %180, %181 : vector<8x1xf32>
    %183 = math.rsqrt %182 : vector<8x1xf32>
    %184 = vector.broadcast %183 : vector<8x1xf32> to vector<8x128xf32>
    %185 = arith.mulf %175, %184 : vector<8x128xf32>
    %186 = arith.truncf %185 : vector<8x128xf32> to vector<8x128xbf16>
    %c152 = arith.constant 152 : index
    %c0_74 = arith.constant 0 : index
    %187 = vector.load %arg9[%c152, %c0_74] : memref<288x128xbf16, #tpu.memory_space<vmem>>, vector<8x128xbf16>
    tpu.vector_store %arg9[%c152, %c0_74], %186 {strides = array<i32>} : memref<288x128xbf16, #tpu.memory_space<vmem>>, vector<8x128xbf16>,
    %c0_75 = arith.constant 0 : index
    %c1152 = arith.constant 1152 : index
    %188 = vector.load %arg8[%c0_75, %c1152] : memref<8x2048xf32, #tpu.memory_space<vmem>>, vector<8x128xf32>
    %189 = vector.broadcast %7 : vector<1x128xf32> to vector<8x128xf32>
    %190 = arith.addf %188, %189 : vector<8x128xf32>
    %cst_76 = arith.constant 0.000000e+00 : f32
    %191 = vector.broadcast %cst_76 : f32 to vector<8x128xf32>
    %192 = arith.cmpf oge, %190, %191 : vector<8x128xf32>
    %cst_77 = arith.constant 0.00999999977 : f32
    %193 = vector.broadcast %cst_77 : f32 to vector<8x128xf32>
    %194 = arith.mulf %193, %190 : vector<8x128xf32>
    %195 = arith.select %192, %190, %194 : vector<8x128xi1>, vector<8x128xf32>
    %196 = arith.mulf %195, %195 : vector<8x128xf32>
    %cst_78 = arith.constant dense<0.000000e+00> : vector<8xf32>
    %197 = vector.multi_reduction <add>, %196, %cst_78 [1] : vector<8x128xf32> to vector<8xf32>
    %198 = vector.shape_cast %197 : vector<8xf32> to vector<8x1xf32>
    %cst_79 = arith.constant 1.280000e+02 : f32
    %199 = vector.broadcast %cst_79 : f32 to vector<8x1xf32>
    %200 = arith.divf %198, %199 : vector<8x1xf32>
    %cst_80 = arith.constant 9.99999993E-9 : f32
    %201 = vector.broadcast %cst_80 : f32 to vector<8x1xf32>
    %202 = arith.addf %200, %201 : vector<8x1xf32>
    %203 = math.rsqrt %202 : vector<8x1xf32>
    %204 = vector.broadcast %203 : vector<8x1xf32> to vector<8x128xf32>
    %205 = arith.mulf %195, %204 : vector<8x128xf32>
    %206 = arith.truncf %205 : vector<8x128xf32> to vector<8x128xbf16>
    %c160 = arith.constant 160 : index
    %c0_81 = arith.constant 0 : index
    %207 = vector.load %arg9[%c160, %c0_81] : memref<288x128xbf16, #tpu.memory_space<vmem>>, vector<8x128xbf16>
    tpu.vector_store %arg9[%c160, %c0_81], %206 {strides = array<i32>} : memref<288x128xbf16, #tpu.memory_space<vmem>>, vector<8x128xbf16>,
    %c0_82 = arith.constant 0 : index
    %c1280 = arith.constant 1280 : index
    %208 = vector.load %arg8[%c0_82, %c1280] : memref<8x2048xf32, #tpu.memory_space<vmem>>, vector<8x128xf32>
    %209 = vector.broadcast %7 : vector<1x128xf32> to vector<8x128xf32>
    %210 = arith.addf %208, %209 : vector<8x128xf32>
    %cst_83 = arith.constant 0.000000e+00 : f32
    %211 = vector.broadcast %cst_83 : f32 to vector<8x128xf32>
    %212 = arith.cmpf oge, %210, %211 : vector<8x128xf32>
    %cst_84 = arith.constant 0.00999999977 : f32
    %213 = vector.broadcast %cst_84 : f32 to vector<8x128xf32>
    %214 = arith.mulf %213, %210 : vector<8x128xf32>
    %215 = arith.select %212, %210, %214 : vector<8x128xi1>, vector<8x128xf32>
    %216 = arith.mulf %215, %215 : vector<8x128xf32>
    %cst_85 = arith.constant dense<0.000000e+00> : vector<8xf32>
    %217 = vector.multi_reduction <add>, %216, %cst_85 [1] : vector<8x128xf32> to vector<8xf32>
    %218 = vector.shape_cast %217 : vector<8xf32> to vector<8x1xf32>
    %cst_86 = arith.constant 1.280000e+02 : f32
    %219 = vector.broadcast %cst_86 : f32 to vector<8x1xf32>
    %220 = arith.divf %218, %219 : vector<8x1xf32>
    %cst_87 = arith.constant 9.99999993E-9 : f32
    %221 = vector.broadcast %cst_87 : f32 to vector<8x1xf32>
    %222 = arith.addf %220, %221 : vector<8x1xf32>
    %223 = math.rsqrt %222 : vector<8x1xf32>
    %224 = vector.broadcast %223 : vector<8x1xf32> to vector<8x128xf32>
    %225 = arith.mulf %215, %224 : vector<8x128xf32>
    %226 = arith.truncf %225 : vector<8x128xf32> to vector<8x128xbf16>
    %c168 = arith.constant 168 : index
    %c0_88 = arith.constant 0 : index
    %227 = vector.load %arg9[%c168, %c0_88] : memref<288x128xbf16, #tpu.memory_space<vmem>>, vector<8x128xbf16>
    tpu.vector_store %arg9[%c168, %c0_88], %226 {strides = array<i32>} : memref<288x128xbf16, #tpu.memory_space<vmem>>, vector<8x128xbf16>,
    %c0_89 = arith.constant 0 : index
    %c1408 = arith.constant 1408 : index
    %228 = vector.load %arg8[%c0_89, %c1408] : memref<8x2048xf32, #tpu.memory_space<vmem>>, vector<8x128xf32>
    %229 = vector.broadcast %7 : vector<1x128xf32> to vector<8x128xf32>
    %230 = arith.addf %228, %229 : vector<8x128xf32>
    %cst_90 = arith.constant 0.000000e+00 : f32
    %231 = vector.broadcast %cst_90 : f32 to vector<8x128xf32>
    %232 = arith.cmpf oge, %230, %231 : vector<8x128xf32>
    %cst_91 = arith.constant 0.00999999977 : f32
    %233 = vector.broadcast %cst_91 : f32 to vector<8x128xf32>
    %234 = arith.mulf %233, %230 : vector<8x128xf32>
    %235 = arith.select %232, %230, %234 : vector<8x128xi1>, vector<8x128xf32>
    %236 = arith.mulf %235, %235 : vector<8x128xf32>
    %cst_92 = arith.constant dense<0.000000e+00> : vector<8xf32>
    %237 = vector.multi_reduction <add>, %236, %cst_92 [1] : vector<8x128xf32> to vector<8xf32>
    %238 = vector.shape_cast %237 : vector<8xf32> to vector<8x1xf32>
    %cst_93 = arith.constant 1.280000e+02 : f32
    %239 = vector.broadcast %cst_93 : f32 to vector<8x1xf32>
    %240 = arith.divf %238, %239 : vector<8x1xf32>
    %cst_94 = arith.constant 9.99999993E-9 : f32
    %241 = vector.broadcast %cst_94 : f32 to vector<8x1xf32>
    %242 = arith.addf %240, %241 : vector<8x1xf32>
    %243 = math.rsqrt %242 : vector<8x1xf32>
    %244 = vector.broadcast %243 : vector<8x1xf32> to vector<8x128xf32>
    %245 = arith.mulf %235, %244 : vector<8x128xf32>
    %246 = arith.truncf %245 : vector<8x128xf32> to vector<8x128xbf16>
    %c176 = arith.constant 176 : index
    %c0_95 = arith.constant 0 : index
    %247 = vector.load %arg9[%c176, %c0_95] : memref<288x128xbf16, #tpu.memory_space<vmem>>, vector<8x128xbf16>
    tpu.vector_store %arg9[%c176, %c0_95], %246 {strides = array<i32>} : memref<288x128xbf16, #tpu.memory_space<vmem>>, vector<8x128xbf16>,
    %c0_96 = arith.constant 0 : index
    %c1536 = arith.constant 1536 : index
    %248 = vector.load %arg8[%c0_96, %c1536] : memref<8x2048xf32, #tpu.memory_space<vmem>>, vector<8x128xf32>
    %249 = vector.broadcast %7 : vector<1x128xf32> to vector<8x128xf32>
    %250 = arith.addf %248, %249 : vector<8x128xf32>
    %cst_97 = arith.constant 0.000000e+00 : f32
    %251 = vector.broadcast %cst_97 : f32 to vector<8x128xf32>
    %252 = arith.cmpf oge, %250, %251 : vector<8x128xf32>
    %cst_98 = arith.constant 0.00999999977 : f32
    %253 = vector.broadcast %cst_98 : f32 to vector<8x128xf32>
    %254 = arith.mulf %253, %250 : vector<8x128xf32>
    %255 = arith.select %252, %250, %254 : vector<8x128xi1>, vector<8x128xf32>
    %256 = arith.mulf %255, %255 : vector<8x128xf32>
    %cst_99 = arith.constant dense<0.000000e+00> : vector<8xf32>
    %257 = vector.multi_reduction <add>, %256, %cst_99 [1] : vector<8x128xf32> to vector<8xf32>
    %258 = vector.shape_cast %257 : vector<8xf32> to vector<8x1xf32>
    %cst_100 = arith.constant 1.280000e+02 : f32
    %259 = vector.broadcast %cst_100 : f32 to vector<8x1xf32>
    %260 = arith.divf %258, %259 : vector<8x1xf32>
    %cst_101 = arith.constant 9.99999993E-9 : f32
    %261 = vector.broadcast %cst_101 : f32 to vector<8x1xf32>
    %262 = arith.addf %260, %261 : vector<8x1xf32>
    %263 = math.rsqrt %262 : vector<8x1xf32>
    %264 = vector.broadcast %263 : vector<8x1xf32> to vector<8x128xf32>
    %265 = arith.mulf %255, %264 : vector<8x128xf32>
    %266 = arith.truncf %265 : vector<8x128xf32> to vector<8x128xbf16>
    %c200 = arith.constant 200 : index
    %c0_102 = arith.constant 0 : index
    %267 = vector.load %arg9[%c200, %c0_102] : memref<288x128xbf16, #tpu.memory_space<vmem>>, vector<8x128xbf16>
    tpu.vector_store %arg9[%c200, %c0_102], %266 {strides = array<i32>} : memref<288x128xbf16, #tpu.memory_space<vmem>>, vector<8x128xbf16>,
    %c0_103 = arith.constant 0 : index
    %c1664 = arith.constant 1664 : index
    %268 = vector.load %arg8[%c0_103, %c1664] : memref<8x2048xf32, #tpu.memory_space<vmem>>, vector<8x128xf32>
    %269 = vector.broadcast %7 : vector<1x128xf32> to vector<8x128xf32>
    %270 = arith.addf %268, %269 : vector<8x128xf32>
    %cst_104 = arith.constant 0.000000e+00 : f32
    %271 = vector.broadcast %cst_104 : f32 to vector<8x128xf32>
    %272 = arith.cmpf oge, %270, %271 : vector<8x128xf32>
    %cst_105 = arith.constant 0.00999999977 : f32
    %273 = vector.broadcast %cst_105 : f32 to vector<8x128xf32>
    %274 = arith.mulf %273, %270 : vector<8x128xf32>
    %275 = arith.select %272, %270, %274 : vector<8x128xi1>, vector<8x128xf32>
    %276 = arith.mulf %275, %275 : vector<8x128xf32>
    %cst_106 = arith.constant dense<0.000000e+00> : vector<8xf32>
    %277 = vector.multi_reduction <add>, %276, %cst_106 [1] : vector<8x128xf32> to vector<8xf32>
    %278 = vector.shape_cast %277 : vector<8xf32> to vector<8x1xf32>
    %cst_107 = arith.constant 1.280000e+02 : f32
    %279 = vector.broadcast %cst_107 : f32 to vector<8x1xf32>
    %280 = arith.divf %278, %279 : vector<8x1xf32>
    %cst_108 = arith.constant 9.99999993E-9 : f32
    %281 = vector.broadcast %cst_108 : f32 to vector<8x1xf32>
    %282 = arith.addf %280, %281 : vector<8x1xf32>
    %283 = math.rsqrt %282 : vector<8x1xf32>
    %284 = vector.broadcast %283 : vector<8x1xf32> to vector<8x128xf32>
    %285 = arith.mulf %275, %284 : vector<8x128xf32>
    %286 = arith.truncf %285 : vector<8x128xf32> to vector<8x128xbf16>
    %c208 = arith.constant 208 : index
    %c0_109 = arith.constant 0 : index
    %287 = vector.load %arg9[%c208, %c0_109] : memref<288x128xbf16, #tpu.memory_space<vmem>>, vector<8x128xbf16>
    tpu.vector_store %arg9[%c208, %c0_109], %286 {strides = array<i32>} : memref<288x128xbf16, #tpu.memory_space<vmem>>, vector<8x128xbf16>,
    %c0_110 = arith.constant 0 : index
    %c1792 = arith.constant 1792 : index
    %288 = vector.load %arg8[%c0_110, %c1792] : memref<8x2048xf32, #tpu.memory_space<vmem>>, vector<8x128xf32>
    %289 = vector.broadcast %7 : vector<1x128xf32> to vector<8x128xf32>
    %290 = arith.addf %288, %289 : vector<8x128xf32>
    %cst_111 = arith.constant 0.000000e+00 : f32
    %291 = vector.broadcast %cst_111 : f32 to vector<8x128xf32>
    %292 = arith.cmpf oge, %290, %291 : vector<8x128xf32>
    %cst_112 = arith.constant 0.00999999977 : f32
    %293 = vector.broadcast %cst_112 : f32 to vector<8x128xf32>
    %294 = arith.mulf %293, %290 : vector<8x128xf32>
    %295 = arith.select %292, %290, %294 : vector<8x128xi1>, vector<8x128xf32>
    %296 = arith.mulf %295, %295 : vector<8x128xf32>
    %cst_113 = arith.constant dense<0.000000e+00> : vector<8xf32>
    %297 = vector.multi_reduction <add>, %296, %cst_113 [1] : vector<8x128xf32> to vector<8xf32>
    %298 = vector.shape_cast %297 : vector<8xf32> to vector<8x1xf32>
    %cst_114 = arith.constant 1.280000e+02 : f32
    %299 = vector.broadcast %cst_114 : f32 to vector<8x1xf32>
    %300 = arith.divf %298, %299 : vector<8x1xf32>
    %cst_115 = arith.constant 9.99999993E-9 : f32
    %301 = vector.broadcast %cst_115 : f32 to vector<8x1xf32>
    %302 = arith.addf %300, %301 : vector<8x1xf32>
    %303 = math.rsqrt %302 : vector<8x1xf32>
    %304 = vector.broadcast %303 : vector<8x1xf32> to vector<8x128xf32>
    %305 = arith.mulf %295, %304 : vector<8x128xf32>
    %306 = arith.truncf %305 : vector<8x128xf32> to vector<8x128xbf16>
    %c216 = arith.constant 216 : index
    %c0_116 = arith.constant 0 : index
    %307 = vector.load %arg9[%c216, %c0_116] : memref<288x128xbf16, #tpu.memory_space<vmem>>, vector<8x128xbf16>
    tpu.vector_store %arg9[%c216, %c0_116], %306 {strides = array<i32>} : memref<288x128xbf16, #tpu.memory_space<vmem>>, vector<8x128xbf16>,
    %c0_117 = arith.constant 0 : index
    %c1920 = arith.constant 1920 : index
    %308 = vector.load %arg8[%c0_117, %c1920] : memref<8x2048xf32, #tpu.memory_space<vmem>>, vector<8x128xf32>
    %309 = vector.broadcast %7 : vector<1x128xf32> to vector<8x128xf32>
    %310 = arith.addf %308, %309 : vector<8x128xf32>
    %cst_118 = arith.constant 0.000000e+00 : f32
    %311 = vector.broadcast %cst_118 : f32 to vector<8x128xf32>
    %312 = arith.cmpf oge, %310, %311 : vector<8x128xf32>
    %cst_119 = arith.constant 0.00999999977 : f32
    %313 = vector.broadcast %cst_119 : f32 to vector<8x128xf32>
    %314 = arith.mulf %313, %310 : vector<8x128xf32>
    %315 = arith.select %312, %310, %314 : vector<8x128xi1>, vector<8x128xf32>
    %316 = arith.mulf %315, %315 : vector<8x128xf32>
    %cst_120 = arith.constant dense<0.000000e+00> : vector<8xf32>
    %317 = vector.multi_reduction <add>, %316, %cst_120 [1] : vector<8x128xf32> to vector<8xf32>
    %318 = vector.shape_cast %317 : vector<8xf32> to vector<8x1xf32>
    %cst_121 = arith.constant 1.280000e+02 : f32
    %319 = vector.broadcast %cst_121 : f32 to vector<8x1xf32>
    %320 = arith.divf %318, %319 : vector<8x1xf32>
    %cst_122 = arith.constant 9.99999993E-9 : f32
    %321 = vector.broadcast %cst_122 : f32 to vector<8x1xf32>
    %322 = arith.addf %320, %321 : vector<8x1xf32>
    %323 = math.rsqrt %322 : vector<8x1xf32>
    %324 = vector.broadcast %323 : vector<8x1xf32> to vector<8x128xf32>
    %325 = arith.mulf %315, %324 : vector<8x128xf32>
    %326 = arith.truncf %325 : vector<8x128xf32> to vector<8x128xbf16>
    %c224 = arith.constant 224 : index
    %c0_123 = arith.constant 0 : index
    %327 = vector.load %arg9[%c224, %c0_123] : memref<288x128xbf16, #tpu.memory_space<vmem>>, vector<8x128xbf16>
    tpu.vector_store %arg9[%c224, %c0_123], %326 {strides = array<i32>} : memref<288x128xbf16, #tpu.memory_space<vmem>>, vector<8x128xbf16>,
    %c0_124 = arith.constant 0 : index
    %c0_125 = arith.constant 0 : index
    %328 = vector.load %arg9[%c0_124, %c0_125] : memref<288x128xbf16, #tpu.memory_space<vmem>>, vector<32x128xbf16>
    %c0_126 = arith.constant 0 : index
    %c0_127 = arith.constant 0 : index
    %329 = vector.load %arg10[%c0_126, %c0_127] : memref<128x1152xbf16, #tpu.memory_space<vmem>>, vector<32x128xbf16>
    tpu.vector_store %arg10[%c0_126, %c0_127], %328 {strides = array<i32>} : memref<128x1152xbf16, #tpu.memory_space<vmem>>, vector<32x128xbf16>,
    %c48 = arith.constant 48 : index
    %c0_128 = arith.constant 0 : index
    %330 = vector.load %arg9[%c48, %c0_128] : memref<288x128xbf16, #tpu.memory_space<vmem>>, vector<32x128xbf16>
    %c32 = arith.constant 32 : index
    %c0_129 = arith.constant 0 : index
    %331 = vector.load %arg10[%c32, %c0_129] : memref<128x1152xbf16, #tpu.memory_space<vmem>>, vector<32x128xbf16>
    tpu.vector_store %arg10[%c32, %c0_129], %330 {strides = array<i32>} : memref<128x1152xbf16, #tpu.memory_space<vmem>>, vector<32x128xbf16>,
    %c96 = arith.constant 96 : index
    %c0_130 = arith.constant 0 : index
    %332 = vector.load %arg9[%c96, %c0_130] : memref<288x128xbf16, #tpu.memory_space<vmem>>, vector<32x128xbf16>
    %c64_131 = arith.constant 64 : index
    %c0_132 = arith.constant 0 : index
    %333 = vector.load %arg10[%c64_131, %c0_132] : memref<128x1152xbf16, #tpu.memory_space<vmem>>, vector<32x128xbf16>
    tpu.vector_store %arg10[%c64_131, %c0_132], %332 {strides = array<i32>} : memref<128x1152xbf16, #tpu.memory_space<vmem>>, vector<32x128xbf16>,
    %c144 = arith.constant 144 : index
    %c0_133 = arith.constant 0 : index
    %334 = vector.load %arg9[%c144, %c0_133] : memref<288x128xbf16, #tpu.memory_space<vmem>>, vector<32x128xbf16>
    %c96_134 = arith.constant 96 : index
    %c0_135 = arith.constant 0 : index
    %335 = vector.load %arg10[%c96_134, %c0_135] : memref<128x1152xbf16, #tpu.memory_space<vmem>>, vector<32x128xbf16>
    tpu.vector_store %arg10[%c96_134, %c0_135], %334 {strides = array<i32>} : memref<128x1152xbf16, #tpu.memory_space<vmem>>, vector<32x128xbf16>,
    %c8 = arith.constant 8 : index
    %c0_136 = arith.constant 0 : index
    %336 = vector.load %arg9[%c8, %c0_136] : memref<288x128xbf16, #tpu.memory_space<vmem>>, vector<32x128xbf16>
    %c0_137 = arith.constant 0 : index
    %c128_138 = arith.constant 128 : index
    %337 = vector.load %arg10[%c0_137, %c128_138] : memref<128x1152xbf16, #tpu.memory_space<vmem>>, vector<32x128xbf16>
    tpu.vector_store %arg10[%c0_137, %c128_138], %336 {strides = array<i32>} : memref<128x1152xbf16, #tpu.memory_space<vmem>>, vector<32x128xbf16>,
    %c56_139 = arith.constant 56 : index
    %c0_140 = arith.constant 0 : index
    %338 = vector.load %arg9[%c56_139, %c0_140] : memref<288x128xbf16, #tpu.memory_space<vmem>>, vector<32x128xbf16>
    %c32_141 = arith.constant 32 : index
    %c128_142 = arith.constant 128 : index
    %339 = vector.load %arg10[%c32_141, %c128_142] : memref<128x1152xbf16, #tpu.memory_space<vmem>>, vector<32x128xbf16>
    tpu.vector_store %arg10[%c32_141, %c128_142], %338 {strides = array<i32>} : memref<128x1152xbf16, #tpu.memory_space<vmem>>, vector<32x128xbf16>,
    %c104_143 = arith.constant 104 : index
    %c0_144 = arith.constant 0 : index
    %340 = vector.load %arg9[%c104_143, %c0_144] : memref<288x128xbf16, #tpu.memory_space<vmem>>, vector<32x128xbf16>
    %c64_145 = arith.constant 64 : index
    %c128_146 = arith.constant 128 : index
    %341 = vector.load %arg10[%c64_145, %c128_146] : memref<128x1152xbf16, #tpu.memory_space<vmem>>, vector<32x128xbf16>
    tpu.vector_store %arg10[%c64_145, %c128_146], %340 {strides = array<i32>} : memref<128x1152xbf16, #tpu.memory_space<vmem>>, vector<32x128xbf16>,
    %c152_147 = arith.constant 152 : index
    %c0_148 = arith.constant 0 : index
    %342 = vector.load %arg9[%c152_147, %c0_148] : memref<288x128xbf16, #tpu.memory_space<vmem>>, vector<32x128xbf16>
    %c96_149 = arith.constant 96 : index
    %c128_150 = arith.constant 128 : index
    %343 = vector.load %arg10[%c96_149, %c128_150] : memref<128x1152xbf16, #tpu.memory_space<vmem>>, vector<32x128xbf16>
    tpu.vector_store %arg10[%c96_149, %c128_150], %342 {strides = array<i32>} : memref<128x1152xbf16, #tpu.memory_space<vmem>>, vector<32x128xbf16>,
    %c16 = arith.constant 16 : index
    %c0_151 = arith.constant 0 : index
    %344 = vector.load %arg9[%c16, %c0_151] : memref<288x128xbf16, #tpu.memory_space<vmem>>, vector<32x128xbf16>
    %c0_152 = arith.constant 0 : index
    %c256_153 = arith.constant 256 : index
    %345 = vector.load %arg10[%c0_152, %c256_153] : memref<128x1152xbf16, #tpu.memory_space<vmem>>, vector<32x128xbf16>
    tpu.vector_store %arg10[%c0_152, %c256_153], %344 {strides = array<i32>} : memref<128x1152xbf16, #tpu.memory_space<vmem>>, vector<32x128xbf16>,
    %c64_154 = arith.constant 64 : index
    %c0_155 = arith.constant 0 : index
    %346 = vector.load %arg9[%c64_154, %c0_155] : memref<288x128xbf16, #tpu.memory_space<vmem>>, vector<32x128xbf16>
    %c32_156 = arith.constant 32 : index
    %c256_157 = arith.constant 256 : index
    %347 = vector.load %arg10[%c32_156, %c256_157] : memref<128x1152xbf16, #tpu.memory_space<vmem>>, vector<32x128xbf16>
    tpu.vector_store %arg10[%c32_156, %c256_157], %346 {strides = array<i32>} : memref<128x1152xbf16, #tpu.memory_space<vmem>>, vector<32x128xbf16>,
    %c112_158 = arith.constant 112 : index
    %c0_159 = arith.constant 0 : index
    %348 = vector.load %arg9[%c112_158, %c0_159] : memref<288x128xbf16, #tpu.memory_space<vmem>>, vector<32x128xbf16>
    %c64_160 = arith.constant 64 : index
    %c256_161 = arith.constant 256 : index
    %349 = vector.load %arg10[%c64_160, %c256_161] : memref<128x1152xbf16, #tpu.memory_space<vmem>>, vector<32x128xbf16>
    tpu.vector_store %arg10[%c64_160, %c256_161], %348 {strides = array<i32>} : memref<128x1152xbf16, #tpu.memory_space<vmem>>, vector<32x128xbf16>,
    %c160_162 = arith.constant 160 : index
    %c0_163 = arith.constant 0 : index
    %350 = vector.load %arg9[%c160_162, %c0_163] : memref<288x128xbf16, #tpu.memory_space<vmem>>, vector<32x128xbf16>
    %c96_164 = arith.constant 96 : index
    %c256_165 = arith.constant 256 : index
    %351 = vector.load %arg10[%c96_164, %c256_165] : memref<128x1152xbf16, #tpu.memory_space<vmem>>, vector<32x128xbf16>
    tpu.vector_store %arg10[%c96_164, %c256_165], %350 {strides = array<i32>} : memref<128x1152xbf16, #tpu.memory_space<vmem>>, vector<32x128xbf16>,
    %c48_166 = arith.constant 48 : index
    %c0_167 = arith.constant 0 : index
    %352 = vector.load %arg9[%c48_166, %c0_167] : memref<288x128xbf16, #tpu.memory_space<vmem>>, vector<32x128xbf16>
    %c0_168 = arith.constant 0 : index
    %c384_169 = arith.constant 384 : index
    %353 = vector.load %arg10[%c0_168, %c384_169] : memref<128x1152xbf16, #tpu.memory_space<vmem>>, vector<32x128xbf16>
    tpu.vector_store %arg10[%c0_168, %c384_169], %352 {strides = array<i32>} : memref<128x1152xbf16, #tpu.memory_space<vmem>>, vector<32x128xbf16>,
    %c96_170 = arith.constant 96 : index
    %c0_171 = arith.constant 0 : index
    %354 = vector.load %arg9[%c96_170, %c0_171] : memref<288x128xbf16, #tpu.memory_space<vmem>>, vector<32x128xbf16>
    %c32_172 = arith.constant 32 : index
    %c384_173 = arith.constant 384 : index
    %355 = vector.load %arg10[%c32_172, %c384_173] : memref<128x1152xbf16, #tpu.memory_space<vmem>>, vector<32x128xbf16>
    tpu.vector_store %arg10[%c32_172, %c384_173], %354 {strides = array<i32>} : memref<128x1152xbf16, #tpu.memory_space<vmem>>, vector<32x128xbf16>,
    %c144_174 = arith.constant 144 : index
    %c0_175 = arith.constant 0 : index
    %356 = vector.load %arg9[%c144_174, %c0_175] : memref<288x128xbf16, #tpu.memory_space<vmem>>, vector<32x128xbf16>
    %c64_176 = arith.constant 64 : index
    %c384_177 = arith.constant 384 : index
    %357 = vector.load %arg10[%c64_176, %c384_177] : memref<128x1152xbf16, #tpu.memory_space<vmem>>, vector<32x128xbf16>
    tpu.vector_store %arg10[%c64_176, %c384_177], %356 {strides = array<i32>} : memref<128x1152xbf16, #tpu.memory_space<vmem>>, vector<32x128xbf16>,
    %c192 = arith.constant 192 : index
    %c0_178 = arith.constant 0 : index
    %358 = vector.load %arg9[%c192, %c0_178] : memref<288x128xbf16, #tpu.memory_space<vmem>>, vector<32x128xbf16>
    %c96_179 = arith.constant 96 : index
    %c384_180 = arith.constant 384 : index
    %359 = vector.load %arg10[%c96_179, %c384_180] : memref<128x1152xbf16, #tpu.memory_space<vmem>>, vector<32x128xbf16>
    tpu.vector_store %arg10[%c96_179, %c384_180], %358 {strides = array<i32>} : memref<128x1152xbf16, #tpu.memory_space<vmem>>, vector<32x128xbf16>,
    %c56_181 = arith.constant 56 : index
    %c0_182 = arith.constant 0 : index
    %360 = vector.load %arg9[%c56_181, %c0_182] : memref<288x128xbf16, #tpu.memory_space<vmem>>, vector<32x128xbf16>
    %c0_183 = arith.constant 0 : index
    %c512_184 = arith.constant 512 : index
    %361 = vector.load %arg10[%c0_183, %c512_184] : memref<128x1152xbf16, #tpu.memory_space<vmem>>, vector<32x128xbf16>
    tpu.vector_store %arg10[%c0_183, %c512_184], %360 {strides = array<i32>} : memref<128x1152xbf16, #tpu.memory_space<vmem>>, vector<32x128xbf16>,
    %c104_185 = arith.constant 104 : index
    %c0_186 = arith.constant 0 : index
    %362 = vector.load %arg9[%c104_185, %c0_186] : memref<288x128xbf16, #tpu.memory_space<vmem>>, vector<32x128xbf16>
    %c32_187 = arith.constant 32 : index
    %c512_188 = arith.constant 512 : index
    %363 = vector.load %arg10[%c32_187, %c512_188] : memref<128x1152xbf16, #tpu.memory_space<vmem>>, vector<32x128xbf16>
    tpu.vector_store %arg10[%c32_187, %c512_188], %362 {strides = array<i32>} : memref<128x1152xbf16, #tpu.memory_space<vmem>>, vector<32x128xbf16>,
    %c152_189 = arith.constant 152 : index
    %c0_190 = arith.constant 0 : index
    %364 = vector.load %arg9[%c152_189, %c0_190] : memref<288x128xbf16, #tpu.memory_space<vmem>>, vector<32x128xbf16>
    %c64_191 = arith.constant 64 : index
    %c512_192 = arith.constant 512 : index
    %365 = vector.load %arg10[%c64_191, %c512_192] : memref<128x1152xbf16, #tpu.memory_space<vmem>>, vector<32x128xbf16>
    tpu.vector_store %arg10[%c64_191, %c512_192], %364 {strides = array<i32>} : memref<128x1152xbf16, #tpu.memory_space<vmem>>, vector<32x128xbf16>,
    %c200_193 = arith.constant 200 : index
    %c0_194 = arith.constant 0 : index
    %366 = vector.load %arg9[%c200_193, %c0_194] : memref<288x128xbf16, #tpu.memory_space<vmem>>, vector<32x128xbf16>
    %c96_195 = arith.constant 96 : index
    %c512_196 = arith.constant 512 : index
    %367 = vector.load %arg10[%c96_195, %c512_196] : memref<128x1152xbf16, #tpu.memory_space<vmem>>, vector<32x128xbf16>
    tpu.vector_store %arg10[%c96_195, %c512_196], %366 {strides = array<i32>} : memref<128x1152xbf16, #tpu.memory_space<vmem>>, vector<32x128xbf16>,
    %c64_197 = arith.constant 64 : index
    %c0_198 = arith.constant 0 : index
    %368 = vector.load %arg9[%c64_197, %c0_198] : memref<288x128xbf16, #tpu.memory_space<vmem>>, vector<32x128xbf16>
    %c0_199 = arith.constant 0 : index
    %c640_200 = arith.constant 640 : index
    %369 = vector.load %arg10[%c0_199, %c640_200] : memref<128x1152xbf16, #tpu.memory_space<vmem>>, vector<32x128xbf16>
    tpu.vector_store %arg10[%c0_199, %c640_200], %368 {strides = array<i32>} : memref<128x1152xbf16, #tpu.memory_space<vmem>>, vector<32x128xbf16>,
    %c112_201 = arith.constant 112 : index
    %c0_202 = arith.constant 0 : index
    %370 = vector.load %arg9[%c112_201, %c0_202] : memref<288x128xbf16, #tpu.memory_space<vmem>>, vector<32x128xbf16>
    %c32_203 = arith.constant 32 : index
    %c640_204 = arith.constant 640 : index
    %371 = vector.load %arg10[%c32_203, %c640_204] : memref<128x1152xbf16, #tpu.memory_space<vmem>>, vector<32x128xbf16>
    tpu.vector_store %arg10[%c32_203, %c640_204], %370 {strides = array<i32>} : memref<128x1152xbf16, #tpu.memory_space<vmem>>, vector<32x128xbf16>,
    %c160_205 = arith.constant 160 : index
    %c0_206 = arith.constant 0 : index
    %372 = vector.load %arg9[%c160_205, %c0_206] : memref<288x128xbf16, #tpu.memory_space<vmem>>, vector<32x128xbf16>
    %c64_207 = arith.constant 64 : index
    %c640_208 = arith.constant 640 : index
    %373 = vector.load %arg10[%c64_207, %c640_208] : memref<128x1152xbf16, #tpu.memory_space<vmem>>, vector<32x128xbf16>
    tpu.vector_store %arg10[%c64_207, %c640_208], %372 {strides = array<i32>} : memref<128x1152xbf16, #tpu.memory_space<vmem>>, vector<32x128xbf16>,
    %c208_209 = arith.constant 208 : index
    %c0_210 = arith.constant 0 : index
    %374 = vector.load %arg9[%c208_209, %c0_210] : memref<288x128xbf16, #tpu.memory_space<vmem>>, vector<32x128xbf16>
    %c96_211 = arith.constant 96 : index
    %c640_212 = arith.constant 640 : index
    %375 = vector.load %arg10[%c96_211, %c640_212] : memref<128x1152xbf16, #tpu.memory_space<vmem>>, vector<32x128xbf16>
    tpu.vector_store %arg10[%c96_211, %c640_212], %374 {strides = array<i32>} : memref<128x1152xbf16, #tpu.memory_space<vmem>>, vector<32x128xbf16>,
    %c96_213 = arith.constant 96 : index
    %c0_214 = arith.constant 0 : index
    %376 = vector.load %arg9[%c96_213, %c0_214] : memref<288x128xbf16, #tpu.memory_space<vmem>>, vector<32x128xbf16>
    %c0_215 = arith.constant 0 : index
    %c768_216 = arith.constant 768 : index
    %377 = vector.load %arg10[%c0_215, %c768_216] : memref<128x1152xbf16, #tpu.memory_space<vmem>>, vector<32x128xbf16>
    tpu.vector_store %arg10[%c0_215, %c768_216], %376 {strides = array<i32>} : memref<128x1152xbf16, #tpu.memory_space<vmem>>, vector<32x128xbf16>,
    %c144_217 = arith.constant 144 : index
    %c0_218 = arith.constant 0 : index
    %378 = vector.load %arg9[%c144_217, %c0_218] : memref<288x128xbf16, #tpu.memory_space<vmem>>, vector<32x128xbf16>
    %c32_219 = arith.constant 32 : index
    %c768_220 = arith.constant 768 : index
    %379 = vector.load %arg10[%c32_219, %c768_220] : memref<128x1152xbf16, #tpu.memory_space<vmem>>, vector<32x128xbf16>
    tpu.vector_store %arg10[%c32_219, %c768_220], %378 {strides = array<i32>} : memref<128x1152xbf16, #tpu.memory_space<vmem>>, vector<32x128xbf16>,
    %c192_221 = arith.constant 192 : index
    %c0_222 = arith.constant 0 : index
    %380 = vector.load %arg9[%c192_221, %c0_222] : memref<288x128xbf16, #tpu.memory_space<vmem>>, vector<32x128xbf16>
    %c64_223 = arith.constant 64 : index
    %c768_224 = arith.constant 768 : index
    %381 = vector.load %arg10[%c64_223, %c768_224] : memref<128x1152xbf16, #tpu.memory_space<vmem>>, vector<32x128xbf16>
    tpu.vector_store %arg10[%c64_223, %c768_224], %380 {strides = array<i32>} : memref<128x1152xbf16, #tpu.memory_space<vmem>>, vector<32x128xbf16>,
    %c240 = arith.constant 240 : index
    %c0_225 = arith.constant 0 : index
    %382 = vector.load %arg9[%c240, %c0_225] : memref<288x128xbf16, #tpu.memory_space<vmem>>, vector<32x128xbf16>
    %c96_226 = arith.constant 96 : index
    %c768_227 = arith.constant 768 : index
    %383 = vector.load %arg10[%c96_226, %c768_227] : memref<128x1152xbf16, #tpu.memory_space<vmem>>, vector<32x128xbf16>
    tpu.vector_store %arg10[%c96_226, %c768_227], %382 {strides = array<i32>} : memref<128x1152xbf16, #tpu.memory_space<vmem>>, vector<32x128xbf16>,
    %c104_228 = arith.constant 104 : index
    %c0_229 = arith.constant 0 : index
    %384 = vector.load %arg9[%c104_228, %c0_229] : memref<288x128xbf16, #tpu.memory_space<vmem>>, vector<32x128xbf16>
    %c0_230 = arith.constant 0 : index
    %c896_231 = arith.constant 896 : index
    %385 = vector.load %arg10[%c0_230, %c896_231] : memref<128x1152xbf16, #tpu.memory_space<vmem>>, vector<32x128xbf16>
    tpu.vector_store %arg10[%c0_230, %c896_231], %384 {strides = array<i32>} : memref<128x1152xbf16, #tpu.memory_space<vmem>>, vector<32x128xbf16>,
    %c152_232 = arith.constant 152 : index
    %c0_233 = arith.constant 0 : index
    %386 = vector.load %arg9[%c152_232, %c0_233] : memref<288x128xbf16, #tpu.memory_space<vmem>>, vector<32x128xbf16>
    %c32_234 = arith.constant 32 : index
    %c896_235 = arith.constant 896 : index
    %387 = vector.load %arg10[%c32_234, %c896_235] : memref<128x1152xbf16, #tpu.memory_space<vmem>>, vector<32x128xbf16>
    tpu.vector_store %arg10[%c32_234, %c896_235], %386 {strides = array<i32>} : memref<128x1152xbf16, #tpu.memory_space<vmem>>, vector<32x128xbf16>,
    %c200_236 = arith.constant 200 : index
    %c0_237 = arith.constant 0 : index
    %388 = vector.load %arg9[%c200_236, %c0_237] : memref<288x128xbf16, #tpu.memory_space<vmem>>, vector<32x128xbf16>
    %c64_238 = arith.constant 64 : index
    %c896_239 = arith.constant 896 : index
    %389 = vector.load %arg10[%c64_238, %c896_239] : memref<128x1152xbf16, #tpu.memory_space<vmem>>, vector<32x128xbf16>
    tpu.vector_store %arg10[%c64_238, %c896_239], %388 {strides = array<i32>} : memref<128x1152xbf16, #tpu.memory_space<vmem>>, vector<32x128xbf16>,
    %c248 = arith.constant 248 : index
    %c0_240 = arith.constant 0 : index
    %390 = vector.load %arg9[%c248, %c0_240] : memref<288x128xbf16, #tpu.memory_space<vmem>>, vector<32x128xbf16>
    %c96_241 = arith.constant 96 : index
    %c896_242 = arith.constant 896 : index
    %391 = vector.load %arg10[%c96_241, %c896_242] : memref<128x1152xbf16, #tpu.memory_space<vmem>>, vector<32x128xbf16>
    tpu.vector_store %arg10[%c96_241, %c896_242], %390 {strides = array<i32>} : memref<128x1152xbf16, #tpu.memory_space<vmem>>, vector<32x128xbf16>,
    %c112_243 = arith.constant 112 : index
    %c0_244 = arith.constant 0 : index
    %392 = vector.load %arg9[%c112_243, %c0_244] : memref<288x128xbf16, #tpu.memory_space<vmem>>, vector<32x128xbf16>
    %c0_245 = arith.constant 0 : index
    %c1024_246 = arith.constant 1024 : index
    %393 = vector.load %arg10[%c0_245, %c1024_246] : memref<128x1152xbf16, #tpu.memory_space<vmem>>, vector<32x128xbf16>
    tpu.vector_store %arg10[%c0_245, %c1024_246], %392 {strides = array<i32>} : memref<128x1152xbf16, #tpu.memory_space<vmem>>, vector<32x128xbf16>,
    %c160_247 = arith.constant 160 : index
    %c0_248 = arith.constant 0 : index
    %394 = vector.load %arg9[%c160_247, %c0_248] : memref<288x128xbf16, #tpu.memory_space<vmem>>, vector<32x128xbf16>
    %c32_249 = arith.constant 32 : index
    %c1024_250 = arith.constant 1024 : index
    %395 = vector.load %arg10[%c32_249, %c1024_250] : memref<128x1152xbf16, #tpu.memory_space<vmem>>, vector<32x128xbf16>
    tpu.vector_store %arg10[%c32_249, %c1024_250], %394 {strides = array<i32>} : memref<128x1152xbf16, #tpu.memory_space<vmem>>, vector<32x128xbf16>,
    %c208_251 = arith.constant 208 : index
    %c0_252 = arith.constant 0 : index
    %396 = vector.load %arg9[%c208_251, %c0_252] : memref<288x128xbf16, #tpu.memory_space<vmem>>, vector<32x128xbf16>
    %c64_253 = arith.constant 64 : index
    %c1024_254 = arith.constant 1024 : index
    %397 = vector.load %arg10[%c64_253, %c1024_254] : memref<128x1152xbf16, #tpu.memory_space<vmem>>, vector<32x128xbf16>
    tpu.vector_store %arg10[%c64_253, %c1024_254], %396 {strides = array<i32>} : memref<128x1152xbf16, #tpu.memory_space<vmem>>, vector<32x128xbf16>,
    %c256_255 = arith.constant 256 : index
    %c0_256 = arith.constant 0 : index
    %398 = vector.load %arg9[%c256_255, %c0_256] : memref<288x128xbf16, #tpu.memory_space<vmem>>, vector<32x128xbf16>
    %c96_257 = arith.constant 96 : index
    %c1024_258 = arith.constant 1024 : index
    %399 = vector.load %arg10[%c96_257, %c1024_258] : memref<128x1152xbf16, #tpu.memory_space<vmem>>, vector<32x128xbf16>
    tpu.vector_store %arg10[%c96_257, %c1024_258], %398 {strides = array<i32>} : memref<128x1152xbf16, #tpu.memory_space<vmem>>, vector<32x128xbf16>,
    %c0_259 = arith.constant 0 : index
    %c0_260 = arith.constant 0 : index
    %400 = vector.load %arg10[%c0_259, %c0_260] : memref<128x1152xbf16, #tpu.memory_space<vmem>>, vector<128x1152xbf16>
    %c0_261 = arith.constant 0 : index
    %c0_262 = arith.constant 0 : index
    %401 = vector.load %arg3[%c0_261, %c0_262] : memref<1152x256xbf16, #tpu.memory_space<vmem>>, vector<1152x256xbf16>
    %cst_263 = arith.constant dense<0.000000e+00> : vector<128x256xf32>
    %402 = tpu.matmul %400, %401, %cst_263 {dimension_numbers = #tpu.dot_dimension_numbers<[1], [0], [0], [1], [0, 0, 1, 1], [], []>} : vector<128x1152xbf16>, vector<1152x256xbf16>, vector<128x256xf32> -> vector<128x256xf32>
    %c0_264 = arith.constant 0 : index
    %c0_265 = arith.constant 0 : index
    %403 = vector.load %arg4[%c0_264, %c0_265] : memref<1x256xf32, #tpu.memory_space<vmem>>, vector<1x256xf32>
    %404 = vector.broadcast %403 : vector<1x256xf32> to vector<128x256xf32>
    %405 = arith.addf %402, %404 : vector<128x256xf32>
    %cst_266 = arith.constant 0.000000e+00 : f32
    %406 = vector.broadcast %cst_266 : f32 to vector<128x256xf32>
    %407 = arith.cmpf oge, %405, %406 : vector<128x256xf32>
    %cst_267 = arith.constant 0.00999999977 : f32
    %408 = vector.broadcast %cst_267 : f32 to vector<128x256xf32>
    %409 = arith.mulf %408, %405 : vector<128x256xf32>
    %410 = arith.select %407, %405, %409 : vector<128x256xi1>, vector<128x256xf32>
    %411 = arith.mulf %410, %410 : vector<128x256xf32>
    %cst_268 = arith.constant dense<0.000000e+00> : vector<128xf32>
    %412 = vector.multi_reduction <add>, %411, %cst_268 [1] : vector<128x256xf32> to vector<128xf32>
    %413 = vector.shape_cast %412 : vector<128xf32> to vector<128x1xf32>
    %cst_269 = arith.constant 2.560000e+02 : f32
    %414 = vector.broadcast %cst_269 : f32 to vector<128x1xf32>
    %415 = arith.divf %413, %414 : vector<128x1xf32>
    %cst_270 = arith.constant 9.99999993E-9 : f32
    %416 = vector.broadcast %cst_270 : f32 to vector<128x1xf32>
    %417 = arith.addf %415, %416 : vector<128x1xf32>
    %418 = math.rsqrt %417 : vector<128x1xf32>
    %419 = vector.broadcast %418 : vector<128x1xf32> to vector<128x256xf32>
    %420 = arith.mulf %410, %419 : vector<128x256xf32>
    %421 = arith.truncf %420 : vector<128x256xf32> to vector<128x256xbf16>
    %c0_271 = arith.constant 0 : index
    %c0_272 = arith.constant 0 : index
    %422 = vector.load %arg5[%c0_271, %c0_272] : memref<256x128xbf16, #tpu.memory_space<vmem>>, vector<256x128xbf16>
    %cst_273 = arith.constant dense<0.000000e+00> : vector<128x128xf32>
    %423 = tpu.matmul %421, %422, %cst_273 {dimension_numbers = #tpu.dot_dimension_numbers<[1], [0], [0], [1], [0, 0, 1, 1], [], []>} : vector<128x256xbf16>, vector<256x128xbf16>, vector<128x128xf32> -> vector<128x128xf32>
    %c0_274 = arith.constant 0 : index
    %c0_275 = arith.constant 0 : index
    %424 = vector.load %arg6[%c0_274, %c0_275] : memref<1x128xf32, #tpu.memory_space<vmem>>, vector<1x128xf32>
    %425 = vector.broadcast %424 : vector<1x128xf32> to vector<128x128xf32>
    %426 = arith.addf %423, %425 : vector<128x128xf32>
    %c0_276 = arith.constant 0 : index
    %c0_277 = arith.constant 0 : index
    %427 = vector.load %arg7[%c0_276, %c0_277] : memref<128x128xf32, #tpu.memory_space<vmem>>, vector<128x128xf32>
    tpu.vector_store %arg7[%c0_276, %c0_277], %426 {strides = array<i32>} : memref<128x128xf32, #tpu.memory_space<vmem>>, vector<128x128xf32>,
    return
  }
}

</mosaic_0001>

<bundles_post_ra>
// kernel: tpu_custom_call.1
= control target key start
LH: loop header
LB: loop body
LE: loop exit
PB: predicated region body
PF: predicated region fallthrough
CT: control target
= control target key end

     0   :  { %12 = vsyncpa [#allocation6], 0  ;;  %s5443_s0 = inlined_call_operand.hbm [shape: f32[8,128], index: 0, kind: input, shape index: {}]   ;;  %s5444_s1 = inlined_call_operand.hbm [shape: bf16[128,2048], index: 1, kind: input, shape index: {}]   ;;  %s5445_s2 = inlined_call_operand.vmem [shape: f32[1,128], index: 2, kind: input, shape index: {}]   ;;  %s5446_s3 = inlined_call_operand.hbm [shape: bf16[1152,256], index: 3, kind: input, shape index: {}]   ;;  %s5447_s4 = inlined_call_operand.vmem [shape: f32[1,256], index: 4, kind: input, shape index: {}]   ;;  %s5448_s5 = inlined_call_operand.hbm [shape: bf16[256,128], index: 5, kind: input, shape index: {}]   ;;  %s5449_s6 = inlined_call_operand.vmem [shape: f32[1,128], index: 6, kind: input, shape index: {}]   ;;  %s5450_s7 = inlined_call_operand.hbm [shape: f32[128,128], index: 7, kind: output, shape index: {}]  }
   0x1   :  { %13 = vsyncpa [#allocation9], 0 }
   0x2   :  { %14 = vsyncpa [#allocation12], 0 }
   0x3   :  { %15 = vsyncpa [#allocation7], 0  ;;  %s4740_s24 = smov [#allocation8]   ;;  %s4622_s28 = scalar_lea.hbm %s5444_s1, 16384 }
   0x4   :  { %s31_s25 = sshll.u32 %s4740_s24, 4  ;;  %p4623_p0 = scmp.ne.s32.totalorder %s5444_s1, %s4622_s28  ;;  %s32_s25 = int_to_ptr.vmem [resolvable:$true] %s31_s25 }
   0x5   :  { %p4626_p1 = scmp.lt.u32.totalorder %s4622_s28, %s5444_s1 }
   0x7   :  { %p4628_p2 = pnand %p4626_p1, %p4623_p0 }
   0x9   :  { %4631 = shalt.err (!%p4628_p2)
}
   0xa   :  { %s4632_s10 = scalar_lea.vmem %s32_s25, 16384  ;;  %p4637_p4 = scmp.lt.s32.totalorder %s32_s25, %s32_s25 }
   0xb   :  { %p4633_p3 = scmp.ne.s32.totalorder %s32_s25, %s4632_s10  ;;  %p4638_p5 = scmp.lt.s32.totalorder %s4632_s10, %s4632_s10 }
   0xd   :  { %p4639_p6 = por %p4638_p5, %p4637_p4 }
   0xf   :  { %p4640_p7 = pnand %p4639_p6, %p4633_p3 }
  0x11   :  { %4643 = shalt.err (!%p4640_p7)
}
  0x12   :  { %s4741_s11 = smov 1024   ;;  %s4742_s12 = smov 64  }
  0x13   :  { %37 = dma.hbm_to_vmem [thread:$0]  %s5444_s1, 16384, %s32_s25, [#allocation9], %s4741_s11, %s4741_s11, %s4742_s12  }
  0x14   :  { %s4743_s15 = smov [#allocation5]   ;;  %s4744_s17 = smov [#allocation10]  }
  0x15   :  { %s22_s16 = sshll.u32 %s4743_s15, 4  ;;  %s45_s18 = sshll.u32 %s4744_s17, 4  ;;  %s23_s16 = int_to_ptr.vmem [resolvable:$true] %s22_s16  ;;  %s46_s18 = int_to_ptr.vmem [resolvable:$true] %s45_s18 }
  0x16   :  { %s4644_s21 = scalar_lea.hbm %s5443_s0, 128 }
  0x17   :  { %p4645_p8 = scmp.ne.s32.totalorder %s5443_s0, %s4644_s21  ;;  %p4648_p9 = scmp.lt.u32.totalorder %s4644_s21, %s5443_s0 }
  0x19   :  { %p4650_p10 = pnand %p4648_p9, %p4645_p8 }
  0x1b   :  { %4653 = shalt.err (!%p4650_p10)
}
  0x1c   :  { %s4654_s1 = scalar_lea.vmem %s23_s16, 128  ;;  %p4659_p12 = scmp.lt.s32.totalorder %s23_s16, %s23_s16 }
  0x1d   :  { %p4655_p11 = scmp.ne.s32.totalorder %s23_s16, %s4654_s1  ;;  %p4660_p13 = scmp.lt.s32.totalorder %s4654_s1, %s4654_s1 }
  0x1f   :  { %p4661_p0 = por %p4660_p13, %p4659_p12 }
  0x21   :  { %p4662_p1 = pnand %p4661_p0, %p4655_p11 }
  0x23   :  { %4665 = shalt.err (!%p4662_p1)
}
  0x24   :  { %25 = dma.hbm_to_vmem [thread:$0]  %s5443_s0, 128, %s23_s16, [#allocation6]  }
  0x25   :  { %s4666_s30 = scalar_lea.hbm %s5446_s3, 18432 }
  0x26   :  { %p4667_p2 = scmp.ne.s32.totalorder %s5446_s3, %s4666_s30  ;;  %p4670_p3 = scmp.lt.u32.totalorder %s4666_s30, %s5446_s3 }
  0x28   :  { %p4672_p4 = pnand %p4670_p3, %p4667_p2 }
  0x2a   :  { %4675 = shalt.err (!%p4672_p4)
}
  0x2b   :  { %s4676_s13 = scalar_lea.vmem %s46_s18, 18432  ;;  %p4681_p6 = scmp.lt.s32.totalorder %s46_s18, %s46_s18 }
  0x2c   :  { %p4677_p5 = scmp.ne.s32.totalorder %s46_s18, %s4676_s13  ;;  %p4682_p7 = scmp.lt.s32.totalorder %s4676_s13, %s4676_s13 }
  0x2e   :  { %p4683_p8 = por %p4682_p7, %p4681_p6 }
  0x30   :  { %p4684_p9 = pnand %p4683_p8, %p4677_p5 }
  0x32   :  { %4687 = shalt.err (!%p4684_p9)
}
  0x33   :  { %s4745_s0 = smov 128   ;;  %s4746_s14 = smov 8  }
  0x34   :  { %51 = dma.hbm_to_vmem [thread:$0]  %s5446_s3, 18432, %s46_s18, [#allocation9], %s4745_s0, %s4745_s0, %s4746_s14  }
  0x35   :  { %s4747_s17 = smov [#allocation11]   ;;  %s4688_s22 = scalar_lea.hbm %s5448_s5, 2048 }
  0x36   :  { %s59_s19 = sshll.u32 %s4747_s17, 4  ;;  %p4689_p10 = scmp.ne.s32.totalorder %s5448_s5, %s4688_s22  ;;  %s60_s19 = int_to_ptr.vmem [resolvable:$true] %s59_s19 }
  0x37   :  { %p4692_p11 = scmp.lt.u32.totalorder %s4688_s22, %s5448_s5 }
  0x39   :  { %p4694_p12 = pnand %p4692_p11, %p4689_p10 }
  0x3b   :  { %4697 = shalt.err (!%p4694_p12)
}
  0x3c   :  { %s4698_s25 = scalar_lea.vmem %s60_s19, 2048  ;;  %p4703_p0 = scmp.lt.s32.totalorder %s60_s19, %s60_s19 }
  0x3d   :  { %p4699_p13 = scmp.ne.s32.totalorder %s60_s19, %s4698_s25  ;;  %p4704_p1 = scmp.lt.s32.totalorder %s4698_s25, %s4698_s25 }
  0x3f   :  { %p4705_p2 = por %p4704_p1, %p4703_p0 }
  0x41   :  { %p4706_p3 = pnand %p4705_p2, %p4699_p13 }
  0x43   :  { %4709 = shalt.err (!%p4706_p3)
}
  0x44   :  { %s4748_s3 = smov 4  }
  0x45   :  { %65 = dma.hbm_to_vmem [thread:$0]  %s5448_s5, 2048, %s60_s19, [#allocation12], %s4742_s12, %s4742_s12, %s4748_s3  }
  0x46   :  { %4732 = dma.done.wait [#allocation6], 128  }
  0x47   :  { %4733 = vsyncadd [#allocation6], 4294967168 }
  0x48   :  { %4734 = dma.done.wait [#allocation9], 34816  }
  0x49   :  { %4735 = vsyncadd [#allocation9], 4294932480 }
  0x4a   :  { %4736 = dma.done.wait [#allocation12], 2048  }
  0x4b   :  { %4737 = vsyncadd [#allocation12], 4294965248  ;;  %v4749_v0 = vmov 0   ;;  %v83_v1 = vld [vmem:[#allocation8] sm:$0xff]  ;;  %v84_v3 = vld [vmem:[#allocation8 + $0x8] sm:$0xff]  ;;  %vm1491_vm8 = vcmask 1043456  }
  0x4c   :  { %883 = vmatprep.mubr.bf16.mxu0 %v4749_v0  ;;  %1195 = vst [vmem:[#allocation3] sm:$0xff] %v4749_v0  ;;  %1197 = vst [vmem:[#allocation3 + $0x10] sm:$0xff] %v4749_v0  ;;  %924 = vmatprep.mubr.bf16.mxu1 %v4749_v0  ;;  %v91_v2 = vld [vmem:[#allocation8 + $0x40] sm:$0xff]  ;;  %v92_v5 = vld [vmem:[#allocation8 + $0x48] sm:$0xff] }
  0x4d   :  { %1198 = vst [vmem:[#allocation3 + $0x18] sm:$0xff] %v4749_v0  ;;  %1199 = vst [vmem:[#allocation3 + $0x20] sm:$0xff] %v4749_v0  ;;  %v3800_v4 = vcombine.high %v83_v1, %v91_v2  ;;  %v3799_v6 = vcombine.low %v83_v1, %v91_v2  ;;  %v99_v7 = vld [vmem:[#allocation8 + $0x80] sm:$0xff]  ;;  %v3802_v9 = vcombine.high %v84_v3, %v92_v5  ;;  %v100_v12 = vld [vmem:[#allocation8 + $0x88] sm:$0xff] }
  0x4e   :  { %1200 = vst [vmem:[#allocation3 + $0x28] sm:$0xff] %v4749_v0  ;;  %1201 = vst [vmem:[#allocation3 + $0x30] sm:$0xff] %v4749_v0  ;;  %v107_v8 = vld [vmem:[#allocation8 + $0xc0] sm:$0xff]  ;;  %v3801_v10 = vcombine.low %v84_v3, %v92_v5  ;;  %v108_v13 = vld [vmem:[#allocation8 + $0xc8] sm:$0xff] }
  0x4f   :  { %1202 = vst [vmem:[#allocation3 + $0x38] sm:$0xff] %v4749_v0  ;;  %1203 = vst [vmem:[#allocation3 + $0x40] sm:$0xff] %v4749_v0  ;;  %v3816_v11 = vcombine.high %v99_v7, %v107_v8  ;;  %v115_v14 = vld [vmem:[#allocation8 + $0x100] sm:$0xff]  ;;  %851 = vmatprep.subr.bf16.mxu0 %v3800_v4  ;;  %v3818_v15 = vcombine.high %v100_v12, %v108_v13  ;;  %v116_v17 = vld [vmem:[#allocation8 + $0x108] sm:$0xff]  ;;  %892 = vmatprep.subr.bf16.mxu1 %v3802_v9 }
  0x50   :  { %1204 = vst [vmem:[#allocation3 + $0x48] sm:$0xff] %v4749_v0  ;;  %1205 = vst [vmem:[#allocation3 + $0x50] sm:$0xff] %v4749_v0  ;;  %v123_v16 = vld [vmem:[#allocation8 + $0x140] sm:$0xff]  ;;  %v124_v18 = vld [vmem:[#allocation8 + $0x148] sm:$0xff]  ;;  %852 = vmatpush1.bf16.msra.mxu0 %v3799_v6  ;;  %v3815_v19 = vcombine.low %v99_v7, %v107_v8  ;;  %893 = vmatpush1.bf16.msra.mxu1 %v3801_v10  ;;  %v3817_v20 = vcombine.low %v100_v12, %v108_v13 }
  0x51   :  { %1206 = vst [vmem:[#allocation3 + $0x58] sm:$0xff] %v4749_v0  ;;  %1207 = vst [vmem:[#allocation3 + $0x60] sm:$0xff] %v4749_v0  ;;  %853 = vmatprep.subr.bf16.mxu0 %v3816_v11  ;;  %v3832_v21 = vcombine.high %v115_v14, %v123_v16  ;;  %894 = vmatprep.subr.bf16.mxu1 %v3818_v15  ;;  %v3834_v22 = vcombine.high %v116_v17, %v124_v18  ;;  %v131_v23 = vld [vmem:[#allocation8 + $0x180] sm:$0xff]  ;;  %v132_v25 = vld [vmem:[#allocation8 + $0x188] sm:$0xff] }
  0x52   :  { %1208 = vst [vmem:[#allocation3 + $0x68] sm:$0xff] %v4749_v0  ;;  %1209 = vst [vmem:[#allocation3 + $0x70] sm:$0xff] %v4749_v0  ;;  %v139_v24 = vld [vmem:[#allocation8 + $0x1c0] sm:$0xff]  ;;  %v140_v26 = vld [vmem:[#allocation8 + $0x1c8] sm:$0xff]  ;;  %v3831_v27 = vcombine.low %v115_v14, %v123_v16  ;;  %v3833_v28 = vcombine.low %v116_v17, %v124_v18 }
  0x53   :  { %1210 = vst [vmem:[#allocation3 + $0x78] sm:$0xff] %v4749_v0  ;;  %1212 = vst [vmem:[#allocation3 + $0x88] sm:$0xff] %v4749_v0  ;;  %v3848_v29 = vcombine.high %v131_v23, %v139_v24  ;;  %v3850_v30 = vcombine.high %v132_v25, %v140_v26  ;;  %v147_v31 = vld [vmem:[#allocation8 + $0x200] sm:$0xff]  ;;  %v148_v33 = vld [vmem:[#allocation8 + $0x208] sm:$0xff]  ;;  %v3847_v35 = vcombine.low %v131_v23, %v139_v24 }
  0x54   :  { %854 = vmatpush1.bf16.msra.mxu0 %v3815_v19  ;;  %895 = vmatpush1.bf16.msra.mxu1 %v3817_v20  ;;  %v155_v32 = vld [vmem:[#allocation8 + $0x240] sm:$0xff]  ;;  %v156_v34 = vld [vmem:[#allocation8 + $0x248] sm:$0xff]  ;;  %v3849_v36 = vcombine.low %v132_v25, %v140_v26  ;;  %v85_v63 = vld [vmem:[#allocation8 + $0x10] sm:$0xff] }
  0x55   :  { %855 = vmatprep.subr.bf16.mxu0 %v3832_v21  ;;  %896 = vmatprep.subr.bf16.mxu1 %v3834_v22  ;;  %v3864_v37 = vcombine.high %v147_v31, %v155_v32  ;;  %v3866_v38 = vcombine.high %v148_v33, %v156_v34  ;;  %v163_v39 = vld [vmem:[#allocation8 + $0x280] sm:$0xff]  ;;  %v164_v41 = vld [vmem:[#allocation8 + $0x288] sm:$0xff]  ;;  %v3863_v43 = vcombine.low %v147_v31, %v155_v32  ;;  %v93_v1 = vld [vmem:[#allocation8 + $0x50] sm:$0xff] }
  0x56   :  { %v171_v40 = vld [vmem:[#allocation8 + $0x2c0] sm:$0xff]  ;;  %v172_v42 = vld [vmem:[#allocation8 + $0x2c8] sm:$0xff]  ;;  %v3865_v44 = vcombine.low %v148_v33, %v156_v34  ;;  %v86_v2 = vld [vmem:[#allocation8 + $0x18] sm:$0xff]  ;;  %v3804_v7 = vcombine.high %v85_v63, %v93_v1  ;;  %v3803_v14 = vcombine.low %v85_v63, %v93_v1 }
  0x57   :  { %v3880_v45 = vcombine.high %v163_v39, %v171_v40  ;;  %v3882_v46 = vcombine.high %v164_v41, %v172_v42  ;;  %v179_v47 = vld [vmem:[#allocation8 + $0x300] sm:$0xff]  ;;  %v180_v49 = vld [vmem:[#allocation8 + $0x308] sm:$0xff]  ;;  %v3879_v51 = vcombine.low %v163_v39, %v171_v40  ;;  %v3881_v52 = vcombine.low %v164_v41, %v172_v42  ;;  %v94_v3 = vld [vmem:[#allocation8 + $0x58] sm:$0xff] }
  0x58   :  { %856 = vmatpush1.bf16.msra.mxu0 %v3831_v27  ;;  %897 = vmatpush1.bf16.msra.mxu1 %v3833_v28  ;;  %v187_v48 = vld [vmem:[#allocation8 + $0x340] sm:$0xff]  ;;  %v188_v50 = vld [vmem:[#allocation8 + $0x348] sm:$0xff]  ;;  %v81_v5 = vld [vmem:[#allocation5] sm:$0xff]  ;;  %v3806_v8 = vcombine.high %v86_v2, %v94_v3  ;;  %v3805_v15 = vcombine.low %v86_v2, %v94_v3 }
  0x59   :  { %857 = vmatprep.subr.bf16.mxu0 %v3848_v29  ;;  %898 = vmatprep.subr.bf16.mxu1 %v3850_v30  ;;  %v3896_v53 = vcombine.high %v179_v47, %v187_v48  ;;  %v3898_v54 = vcombine.high %v180_v49, %v188_v50  ;;  %v195_v55 = vld [vmem:[#allocation8 + $0x380] sm:$0xff]  ;;  %v196_v57 = vld [vmem:[#allocation8 + $0x388] sm:$0xff]  ;;  %v3895_v59 = vcombine.low %v179_v47, %v187_v48  ;;  %v101_v9 = vld [vmem:[#allocation8 + $0x90] sm:$0xff] }
  0x5a   :  { %v203_v56 = vld [vmem:[#allocation8 + $0x3c0] sm:$0xff]  ;;  %v204_v58 = vld [vmem:[#allocation8 + $0x3c8] sm:$0xff]  ;;  %v3897_v60 = vcombine.low %v180_v49, %v188_v50  ;;  %v109_v10 = vld [vmem:[#allocation8 + $0xd0] sm:$0xff]  ;;  %v4863_v11 = vpack.c.bf16 %v81_v5, %v81_v5 }
  0x5b   :  { %v3912_v61 = vcombine.high %v195_v55, %v203_v56  ;;  %v3914_v62 = vcombine.high %v196_v57, %v204_v58  ;;  %v3911_v4 = vcombine.low %v195_v55, %v203_v56  ;;  %v3913_v6 = vcombine.low %v196_v57, %v204_v58  ;;  %v102_v12 = vld [vmem:[#allocation8 + $0x98] sm:$0xff]  ;;  %v117_v18 = vld [vmem:[#allocation8 + $0x110] sm:$0xff]  ;;  %v87_v63 = vld [vmem:[#allocation8 + $0x20] sm:$0xff] }
  0x5c   :  { %858 = vmatpush1.bf16.msra.mxu0 %v3847_v35  ;;  %899 = vmatpush1.bf16.msra.mxu1 %v3849_v36  ;;  %v110_v13 = vld [vmem:[#allocation8 + $0xd8] sm:$0xff]  ;;  %v3820_v16 = vcombine.high %v101_v9, %v109_v10  ;;  %v125_v19 = vld [vmem:[#allocation8 + $0x150] sm:$0xff]  ;;  %v3819_v22 = vcombine.low %v101_v9, %v109_v10  ;;  %v95_v1 = vld [vmem:[#allocation8 + $0x60] sm:$0xff] }
  0x5d   :  { %859 = vmatprep.subr.bf16.mxu0 %v3864_v37  ;;  %900 = vmatprep.subr.bf16.mxu1 %v3866_v38  ;;  %v3822_v17 = vcombine.high %v102_v12, %v110_v13  ;;  %v118_v20 = vld [vmem:[#allocation8 + $0x118] sm:$0xff]  ;;  %v3821_v23 = vcombine.low %v102_v12, %v110_v13  ;;  %v3836_v24 = vcombine.high %v117_v18, %v125_v19  ;;  %v133_v26 = vld [vmem:[#allocation8 + $0x190] sm:$0xff]  ;;  %v96_v5 = vld [vmem:[#allocation8 + $0x68] sm:$0xff] }
  0x5e   :  { %v126_v21 = vld [vmem:[#allocation8 + $0x158] sm:$0xff]  ;;  %v141_v27 = vld [vmem:[#allocation8 + $0x1d0] sm:$0xff]  ;;  %v3835_v30 = vcombine.low %v117_v18, %v125_v19  ;;  %v111_v9 = vld [vmem:[#allocation8 + $0xe0] sm:$0xff]  ;;  %v3808_v12 = vcombine.high %v87_v63, %v95_v1 }
  0x5f   :  { %v3838_v25 = vcombine.high %v118_v20, %v126_v21  ;;  %v134_v28 = vld [vmem:[#allocation8 + $0x198] sm:$0xff]  ;;  %v3837_v31 = vcombine.low %v118_v20, %v126_v21  ;;  %v3852_v32 = vcombine.high %v133_v26, %v141_v27  ;;  %v149_v33 = vld [vmem:[#allocation8 + $0x210] sm:$0xff]  ;;  %v3851_v38 = vcombine.low %v133_v26, %v141_v27  ;;  %v104_v13 = vld [vmem:[#allocation8 + $0xa8] sm:$0xff] }
  0x60   :  { %860 = vmatpush1.bf16.msra.mxu0 %v3863_v43  ;;  %901 = vmatpush1.bf16.msra.mxu1 %v3865_v44  ;;  %v142_v29 = vld [vmem:[#allocation8 + $0x1d8] sm:$0xff]  ;;  %v157_v35 = vld [vmem:[#allocation8 + $0x250] sm:$0xff]  ;;  %v127_v18 = vld [vmem:[#allocation8 + $0x160] sm:$0xff] }
  0x61   :  { %861 = vmatprep.subr.bf16.mxu0 %v3880_v45  ;;  %902 = vmatprep.subr.bf16.mxu1 %v3882_v46  ;;  %v3854_v34 = vcombine.high %v134_v28, %v142_v29  ;;  %v150_v36 = vld [vmem:[#allocation8 + $0x218] sm:$0xff]  ;;  %v165_v39 = vld [vmem:[#allocation8 + $0x290] sm:$0xff]  ;;  %v3853_v41 = vcombine.low %v134_v28, %v142_v29  ;;  %v3868_v42 = vcombine.high %v149_v33, %v157_v35  ;;  %v120_v21 = vld [vmem:[#allocation8 + $0x128] sm:$0xff] }
  0x62   :  { %v158_v37 = vld [vmem:[#allocation8 + $0x258] sm:$0xff]  ;;  %v173_v40 = vld [vmem:[#allocation8 + $0x2d0] sm:$0xff]  ;;  %v3867_v46 = vcombine.low %v149_v33, %v157_v35  ;;  %v143_v26 = vld [vmem:[#allocation8 + $0x1e0] sm:$0xff] }
  0x63   :  { %v166_v43 = vld [vmem:[#allocation8 + $0x298] sm:$0xff]  ;;  %v3870_v45 = vcombine.high %v150_v36, %v158_v37  ;;  %v181_v47 = vld [vmem:[#allocation8 + $0x310] sm:$0xff]  ;;  %v3869_v49 = vcombine.low %v150_v36, %v158_v37  ;;  %v3884_v50 = vcombine.high %v165_v39, %v173_v40  ;;  %v136_v29 = vld [vmem:[#allocation8 + $0x1a8] sm:$0xff] }
  0x64   :  { %862 = vmatpush1.bf16.msra.mxu0 %v3879_v51  ;;  %903 = vmatpush1.bf16.msra.mxu1 %v3881_v52  ;;  %v174_v44 = vld [vmem:[#allocation8 + $0x2d8] sm:$0xff]  ;;  %v189_v48 = vld [vmem:[#allocation8 + $0x350] sm:$0xff]  ;;  %v151_v33 = vld [vmem:[#allocation8 + $0x220] sm:$0xff] }
  0x65   :  { %863 = vmatprep.subr.bf16.mxu0 %v3896_v53  ;;  %904 = vmatprep.subr.bf16.mxu1 %v3898_v54  ;;  %v182_v51 = vld [vmem:[#allocation8 + $0x318] sm:$0xff]  ;;  %v3886_v53 = vcombine.high %v166_v43, %v174_v44  ;;  %v3883_v54 = vcombine.low %v165_v39, %v173_v40  ;;  %v197_v55 = vld [vmem:[#allocation8 + $0x390] sm:$0xff]  ;;  %v3885_v57 = vcombine.low %v166_v43, %v174_v44  ;;  %v152_v37 = vld [vmem:[#allocation8 + $0x228] sm:$0xff] }
  0x66   :  { %v190_v52 = vld [vmem:[#allocation8 + $0x358] sm:$0xff]  ;;  %v205_v56 = vld [vmem:[#allocation8 + $0x3d0] sm:$0xff]  ;;  %v3900_v58 = vcombine.high %v181_v47, %v189_v48  ;;  %v168_v44 = vld [vmem:[#allocation8 + $0x2a8] sm:$0xff] }
  0x67   :  { %v3901_v2 = vcombine.low %v182_v51, %v190_v52  ;;  %v3916_v3 = vcombine.high %v197_v55, %v205_v56 }
  0x68   :  { %864 = vmatpush1.bf16.msra.mxu0 %v3895_v59  ;;  %905 = vmatpush1.bf16.msra.mxu1 %v3897_v60  ;;  %v198_v59 = vld [vmem:[#allocation8 + $0x398] sm:$0xff] }
  0x69   :  { %865 = vmatprep.subr.bf16.mxu0 %v3912_v61  ;;  %906 = vmatprep.subr.bf16.mxu1 %v3914_v62  ;;  %v206_v60 = vld [vmem:[#allocation8 + $0x3d8] sm:$0xff]  ;;  %v3902_v61 = vcombine.high %v182_v51, %v190_v52  ;;  %v3899_v62 = vcombine.low %v181_v47, %v189_v48  ;;  %v183_v48 = vld [vmem:[#allocation8 + $0x320] sm:$0xff]  ;;  %v184_v52 = vld [vmem:[#allocation8 + $0x328] sm:$0xff] }
  0x6a   :  { %v3917_v10 = vcombine.low %v198_v59, %v206_v60 }
  0x6c   :  { %866 = vmatpush1.bf16.msra.mxu0 %v3911_v4  ;;  %907 = vmatpush1.bf16.msra.mxu1 %v3913_v6  ;;  %v88_v4 = vld [vmem:[#allocation8 + $0x28] sm:$0xff]  ;;  %v3918_v6 = vcombine.high %v198_v59, %v206_v60 }
  0x6d   :  { %933 = vmatprep.subr.bf16.mxu0 %v3804_v7  ;;  %974 = vmatprep.subr.bf16.mxu1 %v3806_v8  ;;  %v3915_v7 = vcombine.low %v197_v55, %v205_v56  ;;  %v103_v8 = vld [vmem:[#allocation8 + $0xa0] sm:$0xff]  ;;  %v3809_v19 = vcombine.low %v88_v4, %v96_v5  ;;  %v200_v60 = vld [vmem:[#allocation8 + $0x3a8] sm:$0xff] }
  0x6e   :  { %v3824_v20 = vcombine.high %v103_v8, %v111_v9  ;;  %v199_v56 = vld [vmem:[#allocation8 + $0x3a0] sm:$0xff] }
  0x6f   :  { %884 = vmatmul.mubr.bf16.vlgmr.msra.gmra.mrb[0].mxu0 %v4863_v11  ;;  %925 = vmatmul.mubr.bf16.vlgmr.msra.gmra.mrb[0].mxu1 %v4863_v11 }
  0x70   :  { %934 = vmatpush1.bf16.msra.mxu0 %v3803_v14  ;;  %975 = vmatpush1.bf16.msra.mxu1 %v3805_v15  ;;  %v112_v14 = vld [vmem:[#allocation8 + $0xe8] sm:$0xff]  ;;  %v3810_v15 = vcombine.high %v88_v4, %v96_v5  ;;  %v90_v5 = vld [vmem:[#allocation8 + $0x38] sm:$0xff] }
  0x71   :  { %935 = vmatprep.subr.bf16.mxu0 %v3820_v16  ;;  %976 = vmatprep.subr.bf16.mxu1 %v3822_v17  ;;  %v3807_v16 = vcombine.low %v87_v63, %v95_v1  ;;  %v119_v17 = vld [vmem:[#allocation8 + $0x120] sm:$0xff]  ;;  %v3825_v27 = vcombine.low %v104_v13, %v112_v14  ;;  %v89_v1 = vld [vmem:[#allocation8 + $0x30] sm:$0xff] }
  0x72   :  { %965 = vmatprep.mubr.bf16.mxu0 %v4749_v0  ;;  %1006 = vmatprep.mubr.bf16.mxu1 %v4749_v0  ;;  %v3840_v28 = vcombine.high %v119_v17, %v127_v18 }
  0x74   :  { %936 = vmatpush1.bf16.msra.mxu0 %v3819_v22  ;;  %977 = vmatpush1.bf16.msra.mxu1 %v3821_v23  ;;  %v128_v22 = vld [vmem:[#allocation8 + $0x168] sm:$0xff]  ;;  %v3826_v23 = vcombine.high %v104_v13, %v112_v14  ;;  %v106_v14 = vld [vmem:[#allocation8 + $0xb8] sm:$0xff] }
  0x75   :  { %937 = vmatprep.subr.bf16.mxu0 %v3836_v24  ;;  %978 = vmatprep.subr.bf16.mxu1 %v3838_v25  ;;  %v3823_v24 = vcombine.low %v103_v8, %v111_v9  ;;  %v135_v25 = vld [vmem:[#allocation8 + $0x1a0] sm:$0xff]  ;;  %v3841_v35 = vcombine.low %v120_v21, %v128_v22  ;;  %v105_v9 = vld [vmem:[#allocation8 + $0xb0] sm:$0xff] }
  0x76   :  { %v3856_v36 = vcombine.high %v135_v25, %v143_v26  ;;  %v3855_v40 = vcombine.low %v135_v25, %v143_v26 }
  0x78   :  { %938 = vmatpush1.bf16.msra.mxu0 %v3835_v30  ;;  %979 = vmatpush1.bf16.msra.mxu1 %v3837_v31  ;;  %v144_v30 = vld [vmem:[#allocation8 + $0x1e8] sm:$0xff]  ;;  %v3842_v31 = vcombine.high %v120_v21, %v128_v22  ;;  %v122_v22 = vld [vmem:[#allocation8 + $0x138] sm:$0xff] }
  0x79   :  { %939 = vmatprep.subr.bf16.mxu0 %v3852_v32  ;;  %980 = vmatprep.subr.bf16.mxu1 %v3854_v34  ;;  %v3839_v32 = vcombine.low %v119_v17, %v127_v18  ;;  %v159_v34 = vld [vmem:[#allocation8 + $0x260] sm:$0xff]  ;;  %v3858_v39 = vcombine.high %v136_v29, %v144_v30  ;;  %v3857_v43 = vcombine.low %v136_v29, %v144_v30  ;;  %v121_v18 = vld [vmem:[#allocation8 + $0x130] sm:$0xff] }
  0x7a   :  { %v3871_v47 = vcombine.low %v151_v33, %v159_v34  ;;  %v137_v29 = vld [vmem:[#allocation8 + $0x1b0] sm:$0xff] }
  0x7b   :  { %v145_v30 = vld [vmem:[#allocation8 + $0x1f0] sm:$0xff] }
  0x7c   :  { %940 = vmatpush1.bf16.msra.mxu0 %v3851_v38  ;;  %981 = vmatpush1.bf16.msra.mxu1 %v3853_v41  ;;  %v160_v38 = vld [vmem:[#allocation8 + $0x268] sm:$0xff]  ;;  %v167_v41 = vld [vmem:[#allocation8 + $0x2a0] sm:$0xff] }
  0x7d   :  { %941 = vmatprep.subr.bf16.mxu0 %v3868_v42  ;;  %982 = vmatprep.subr.bf16.mxu1 %v3870_v45  ;;  %v175_v42 = vld [vmem:[#allocation8 + $0x2e0] sm:$0xff]  ;;  %v176_v45 = vld [vmem:[#allocation8 + $0x2e8] sm:$0xff] }
  0x7e   :  { %v3888_v51 = vcombine.high %v167_v41, %v175_v42  ;;  %v3887_v55 = vcombine.low %v167_v41, %v175_v42  ;;  %v162_v41 = vld [vmem:[#allocation8 + $0x278] sm:$0xff]  ;;  %v3859_v42 = vcombine.low %v137_v29, %v145_v30 }
  0x80   :  { %942 = vmatpush1.bf16.msra.mxu0 %v3867_v46  ;;  %983 = vmatpush1.bf16.msra.mxu1 %v3869_v49  ;;  %v3874_v46 = vcombine.high %v152_v37, %v160_v38  ;;  %v191_v49 = vld [vmem:[#allocation8 + $0x360] sm:$0xff] }
  0x81   :  { %943 = vmatprep.subr.bf16.mxu0 %v3884_v50  ;;  %984 = vmatprep.subr.bf16.mxu1 %v3886_v53  ;;  %v3873_v50 = vcombine.low %v152_v37, %v160_v38  ;;  %v192_v53 = vld [vmem:[#allocation8 + $0x368] sm:$0xff]  ;;  %v3904_v59 = vcombine.high %v183_v48, %v191_v49  ;;  %v3903_v63 = vcombine.low %v183_v48, %v191_v49  ;;  %v153_v38 = vld [vmem:[#allocation8 + $0x230] sm:$0xff]  ;;  %v178_v48 = vld [vmem:[#allocation8 + $0x2f8] sm:$0xff] }
  0x84   :  { %944 = vmatpush1.bf16.msra.mxu0 %v3883_v54  ;;  %985 = vmatpush1.bf16.msra.mxu1 %v3885_v57  ;;  %v3890_v54 = vcombine.high %v168_v44, %v176_v45  ;;  %v207_v57 = vld [vmem:[#allocation8 + $0x3e0] sm:$0xff] }
  0x85   :  { %945 = vmatprep.subr.bf16.mxu0 %v3900_v58  ;;  %986 = vmatprep.subr.bf16.mxu1 %v3902_v61  ;;  %v3889_v58 = vcombine.low %v168_v44, %v176_v45  ;;  %v208_v61 = vld [vmem:[#allocation8 + $0x3e8] sm:$0xff]  ;;  %v3920_v4 = vcombine.high %v199_v56, %v207_v57  ;;  %v3919_v8 = vcombine.low %v199_v56, %v207_v57  ;;  %v169_v45 = vld [vmem:[#allocation8 + $0x2b0] sm:$0xff]  ;;  %v194_v56 = vld [vmem:[#allocation8 + $0x378] sm:$0xff] }
  0x88   :  { %946 = vmatpush1.bf16.msra.mxu0 %v3899_v62  ;;  %987 = vmatpush1.bf16.msra.mxu1 %v3901_v2  ;;  %v3906_v62 = vcombine.high %v184_v52, %v192_v53  ;;  %v97_v2 = vld [vmem:[#allocation8 + $0x70] sm:$0xff] }
  0x89   :  { %947 = vmatprep.subr.bf16.mxu0 %v3916_v3  ;;  %988 = vmatprep.subr.bf16.mxu1 %v3918_v6  ;;  %v3905_v3 = vcombine.low %v184_v52, %v192_v53  ;;  %v98_v6 = vld [vmem:[#allocation8 + $0x78] sm:$0xff]  ;;  %v3812_v13 = vcombine.high %v89_v1, %v97_v2  ;;  %v3811_v17 = vcombine.low %v89_v1, %v97_v2  ;;  %v185_v53 = vld [vmem:[#allocation8 + $0x330] sm:$0xff] }
  0x8a   :  { %v210_v1 = vld [vmem:[#allocation8 + $0x3f8] sm:$0xff] }
  0x8c   :  { %948 = vmatpush1.bf16.msra.mxu0 %v3915_v7  ;;  %989 = vmatpush1.bf16.msra.mxu1 %v3917_v10  ;;  %v3922_v7 = vcombine.high %v200_v60, %v208_v61  ;;  %v113_v10 = vld [vmem:[#allocation8 + $0xf0] sm:$0xff] }
  0x8d   :  { %1015 = vmatprep.subr.bf16.mxu0 %v3808_v12  ;;  %1056 = vmatprep.subr.bf16.mxu1 %v3810_v15  ;;  %v3921_v12 = vcombine.low %v200_v60, %v208_v61  ;;  %v114_v15 = vld [vmem:[#allocation8 + $0xf8] sm:$0xff]  ;;  %v3828_v21 = vcombine.high %v105_v9, %v113_v10  ;;  %v3827_v25 = vcombine.low %v105_v9, %v113_v10  ;;  %v201_v61 = vld [vmem:[#allocation8 + $0x3b0] sm:$0xff]  ;;  %v4326_v9 = vld [vmem:[#allocation10 + $0x4] ss:$8 sps:$4 sm:$0xff]  }
  0x8e   :  { %v3829_v26 = vcombine.low %v106_v14, %v114_v15  ;;  %v4327_v10 = vld [vmem:[#allocation10 + $0x10] ss:$8 sps:$4 sm:$0xff]  }
  0x8f   :  { %966 = vmatmul.mubr.bf16.vlgmr.msra.gmra.mrb[4].mxu0 %v4863_v11  ;;  %1007 = vmatmul.mubr.bf16.vlgmr.msra.gmra.mrb[4].mxu1 %v4863_v11 }
  0x90   :  { %1016 = vmatpush1.bf16.msra.mxu0 %v3807_v16  ;;  %1057 = vmatpush1.bf16.msra.mxu1 %v3809_v19  ;;  %v3814_v16 = vcombine.high %v90_v5, %v98_v6  ;;  %v129_v19 = vld [vmem:[#allocation8 + $0x170] sm:$0xff] }
  0x91   :  { %1017 = vmatprep.subr.bf16.mxu0 %v3824_v20  ;;  %1058 = vmatprep.subr.bf16.mxu1 %v3826_v23  ;;  %v3813_v20 = vcombine.low %v90_v5, %v98_v6  ;;  %v130_v23 = vld [vmem:[#allocation8 + $0x178] sm:$0xff] }
  0x92   :  { %1047 = vmatprep.mubr.bf16.mxu0 %v4749_v0  ;;  %1088 = vmatprep.mubr.bf16.mxu1 %v4749_v0  ;;  %v3872_v0 = vcombine.high %v151_v33, %v159_v34  ;;  %v146_v33 = vld [vmem:[#allocation8 + $0x1f8] sm:$0xff]  ;;  %v3843_v34 = vcombine.low %v121_v18, %v129_v19 }
  0x94   :  { %1018 = vmatpush1.bf16.msra.mxu0 %v3823_v24  ;;  %1059 = vmatpush1.bf16.msra.mxu1 %v3825_v27  ;;  %v3830_v24 = vcombine.high %v106_v14, %v114_v15  ;;  %v3844_v27 = vcombine.high %v121_v18, %v129_v19  ;;  %v4336_v14 = vld [vmem:[#allocation10 + $0x200] ss:$8 sps:$4 sm:$0xff]   ;;  %v4338_v15 = vld [vmem:[#allocation10 + $0x204] ss:$8 sps:$4 sm:$0xff]   ;;  %v4335_v18 = vld [vmem:[#allocation10 + $0x34] ss:$8 sps:$4 sm:$0xff]  }
  0x95   :  { %1019 = vmatprep.subr.bf16.mxu0 %v3840_v28  ;;  %1060 = vmatprep.subr.bf16.mxu1 %v3842_v31  ;;  %v3846_v28 = vcombine.high %v122_v22, %v130_v23  ;;  %v4875_v31 = vld [vmem:[#allocation3] sm:$0xff]  ;;  %v4342_v19 = vld [vmem:[#allocation10 + $0x210] ss:$8 sps:$4 sm:$0xff]  }
  0x98   :  { %1020 = vmatpush1.bf16.msra.mxu0 %v3839_v32  ;;  %1061 = vmatpush1.bf16.msra.mxu1 %v3841_v35  ;;  %v138_v32 = vld [vmem:[#allocation8 + $0x1b8] sm:$0xff]  ;;  %v3845_v35 = vcombine.low %v122_v22, %v130_v23  ;;  %v4348_v22 = vld [vmem:[#allocation10 + $0x220] ss:$8 sps:$4 sm:$0xff]  }
  0x99   :  { %1021 = vmatprep.subr.bf16.mxu0 %v3856_v36  ;;  %1062 = vmatprep.subr.bf16.mxu1 %v3858_v39  ;;  %v3860_v36 = vcombine.high %v137_v29, %v145_v30  ;;  %v3862_v37 = vcombine.high %v138_v32, %v146_v33  ;;  %v161_v39 = vld [vmem:[#allocation8 + $0x270] sm:$0xff]  ;;  %v4353_v29 = vld [vmem:[#allocation10 + $0x64] ss:$8 sps:$4 sm:$0xff]   ;;  %v4884_v30 = vld [vmem:[%s5445_s2] ss:$0 sm:$0xff] }
  0x9a   :  { %v3875_v49 = vcombine.low %v153_v38, %v161_v39  ;;  %v4356_v23 = vld [vmem:[#allocation10 + $0x234] ss:$8 sps:$4 sm:$0xff]  }
  0x9c   :  { %1022 = vmatpush1.bf16.msra.mxu0 %v3855_v40  ;;  %1063 = vmatpush1.bf16.msra.mxu1 %v3857_v43  ;;  %v154_v40 = vld [vmem:[#allocation8 + $0x238] sm:$0xff]  ;;  %v3861_v43 = vcombine.low %v138_v32, %v146_v33  ;;  %v4360_v32 = vld [vmem:[#allocation10 + $0x240] ss:$8 sps:$4 sm:$0xff]  }
  0x9d   :  { %1023 = vmatprep.subr.bf16.mxu0 %v3872_v0  ;;  %1064 = vmatprep.subr.bf16.mxu1 %v3874_v46  ;;  %v3876_v0 = vcombine.high %v153_v38, %v161_v39  ;;  %v3878_v44 = vcombine.high %v154_v40, %v162_v41  ;;  %v177_v46 = vld [vmem:[#allocation8 + $0x2f0] sm:$0xff] }
  0x9e   :  { %v3891_v57 = vcombine.low %v169_v45, %v177_v46  ;;  %v4368_v33 = vld [vmem:[#allocation10 + $0x254] ss:$8 sps:$4 sm:$0xff]  }
  0x9f   :  { %v4359_v39 = vld [vmem:[#allocation10 + $0x74] ss:$8 sps:$4 sm:$0xff]  }
  0xa0   :  { %1024 = vmatpush1.bf16.msra.mxu0 %v3871_v47  ;;  %1065 = vmatpush1.bf16.msra.mxu1 %v3873_v50  ;;  %v170_v47 = vld [vmem:[#allocation8 + $0x2b8] sm:$0xff]  ;;  %v3877_v50 = vcombine.low %v154_v40, %v162_v41 }
  0xa1   :  { %1025 = vmatprep.subr.bf16.mxu0 %v3888_v51  ;;  %1066 = vmatprep.subr.bf16.mxu1 %v3890_v54  ;;  %v3892_v51 = vcombine.high %v169_v45, %v177_v46  ;;  %v3894_v52 = vcombine.high %v170_v47, %v178_v48  ;;  %v193_v54 = vld [vmem:[#allocation8 + $0x370] sm:$0xff]  ;;  %v4374_v45 = vld [vmem:[#allocation10 + $0x264] ss:$8 sps:$4 sm:$0xff]  }
  0xa2   :  { %v3907_v2 = vcombine.low %v185_v53, %v193_v54 }
  0xa4   :  { %1026 = vmatpush1.bf16.msra.mxu0 %v3887_v55  ;;  %1067 = vmatpush1.bf16.msra.mxu1 %v3889_v58  ;;  %v186_v55 = vld [vmem:[#allocation8 + $0x338] sm:$0xff]  ;;  %v3893_v58 = vcombine.low %v170_v47, %v178_v48 }
  0xa5   :  { %1027 = vmatprep.subr.bf16.mxu0 %v3904_v59  ;;  %1068 = vmatprep.subr.bf16.mxu1 %v3906_v62  ;;  %v3908_v59 = vcombine.high %v185_v53, %v193_v54  ;;  %v3910_v60 = vcombine.high %v186_v55, %v194_v56  ;;  %v209_v62 = vld [vmem:[#allocation8 + $0x3f0] sm:$0xff] }
  0xa6   :  { %v3923_v6 = vcombine.low %v201_v61, %v209_v62 }
  0xa8   :  { %1028 = vmatpush1.bf16.msra.mxu0 %v3903_v63  ;;  %1069 = vmatpush1.bf16.msra.mxu1 %v3905_v3  ;;  %v202_v63 = vld [vmem:[#allocation8 + $0x3b8] sm:$0xff]  ;;  %v3909_v3 = vcombine.low %v186_v55, %v194_v56  ;;  %v4365_v55 = vld [vmem:[#allocation10 + $0x84] ss:$8 sps:$4 sm:$0xff]  }
  0xa9   :  { %1029 = vmatprep.subr.bf16.mxu0 %v3920_v4  ;;  %1070 = vmatprep.subr.bf16.mxu1 %v3922_v7  ;;  %v3924_v4 = vcombine.high %v201_v61, %v209_v62  ;;  %v3926_v5 = vcombine.high %v202_v63, %v210_v1  ;;  %v3925_v7 = vcombine.low %v202_v63, %v210_v1  ;;  %v4363_v62 = vld [vmem:[#allocation10 + $0x80] ss:$8 sps:$4 sm:$0xff]   ;;  %v4371_v63 = vld [vmem:[#allocation10 + $0x94] ss:$8 sps:$4 sm:$0xff]  }
  0xac   :  { %1030 = vmatpush1.bf16.msra.mxu0 %v3919_v8  ;;  %1071 = vmatpush1.bf16.msra.mxu1 %v3921_v12  ;;  %v4324_v8 = vld [vmem:[#allocation10] ss:$8 sps:$4 sm:$0xff]   ;;  %v4329_v12 = vld [vmem:[#allocation10 + $0x14] ss:$8 sps:$4 sm:$0xff]  }
  0xad   :  { %1097 = vmatprep.subr.bf16.mxu0 %v3812_v13  ;;  %1138 = vmatprep.subr.bf16.mxu1 %v3814_v16  ;;  %v4332_v13 = vld [vmem:[#allocation10 + $0x24] ss:$8 sps:$4 sm:$0xff]   ;;  %v4330_v16 = vld [vmem:[#allocation10 + $0x20] ss:$8 sps:$4 sm:$0xff]  }
  0xaf   :  { %1048 = vmatmul.mubr.bf16.vlgmr.msra.gmra.mrb[8].mxu0 %v4863_v11  ;;  %1089 = vmatmul.mubr.bf16.vlgmr.msra.gmra.mrb[8].mxu1 %v4863_v11 }
  0xb0   :  { %1098 = vmatpush1.bf16.msra.mxu0 %v3811_v17  ;;  %1139 = vmatpush1.bf16.msra.mxu1 %v3813_v20  ;;  %v4344_v17 = vld [vmem:[#allocation10 + $0x214] ss:$8 sps:$4 sm:$0xff]   ;;  %v4333_v20 = vld [vmem:[#allocation10 + $0x30] ss:$8 sps:$4 sm:$0xff]  }
  0xb1   :  { %1099 = vmatprep.subr.bf16.mxu0 %v3828_v21  ;;  %1140 = vmatprep.subr.bf16.mxu1 %v3830_v24  ;;  %v4341_v21 = vld [vmem:[#allocation10 + $0x44] ss:$8 sps:$4 sm:$0xff]   ;;  %v4339_v24 = vld [vmem:[#allocation10 + $0x40] ss:$8 sps:$4 sm:$0xff]  }
  0xb2   :  { %1129 = vmatprep.mubr.bf16.mxu0 %v4875_v31  ;;  %1170 = vmatprep.mubr.bf16.mxu1 %v4875_v31 }
  0xb4   :  { %1100 = vmatpush1.bf16.msra.mxu0 %v3827_v25  ;;  %1141 = vmatpush1.bf16.msra.mxu1 %v3829_v26  ;;  %v4347_v25 = vld [vmem:[#allocation10 + $0x54] ss:$8 sps:$4 sm:$0xff]   ;;  %v4354_v26 = vld [vmem:[#allocation10 + $0x230] ss:$8 sps:$4 sm:$0xff]  }
  0xb5   :  { %1101 = vmatprep.subr.bf16.mxu0 %v3844_v27  ;;  %1142 = vmatprep.subr.bf16.mxu1 %v3846_v28  ;;  %v4362_v27 = vld [vmem:[#allocation10 + $0x244] ss:$8 sps:$4 sm:$0xff]   ;;  %v4345_v28 = vld [vmem:[#allocation10 + $0x50] ss:$8 sps:$4 sm:$0xff]  }
  0xb8   :  { %1102 = vmatpush1.bf16.msra.mxu0 %v3843_v34  ;;  %1143 = vmatpush1.bf16.msra.mxu1 %v3845_v35  ;;  %v4351_v35 = vld [vmem:[#allocation10 + $0x60] ss:$8 sps:$4 sm:$0xff]  }
  0xb9   :  { %1103 = vmatprep.subr.bf16.mxu0 %v3860_v36  ;;  %1144 = vmatprep.subr.bf16.mxu1 %v3862_v37 }
  0xbc   :  { %1104 = vmatpush1.bf16.msra.mxu0 %v3859_v42  ;;  %1145 = vmatpush1.bf16.msra.mxu1 %v3861_v43 }
  0xbd   :  { %1105 = vmatprep.subr.bf16.mxu0 %v3876_v0  ;;  %1146 = vmatprep.subr.bf16.mxu1 %v3878_v44  ;;  %v4357_v0 = vld [vmem:[#allocation10 + $0x70] ss:$8 sps:$4 sm:$0xff]  }
  0xbe   :  { %v4366_v44 = vld [vmem:[#allocation10 + $0x250] ss:$8 sps:$4 sm:$0xff]  }
  0xc0   :  { %1106 = vmatpush1.bf16.msra.mxu0 %v3875_v49  ;;  %1147 = vmatpush1.bf16.msra.mxu1 %v3877_v50 }
  0xc1   :  { %1107 = vmatprep.subr.bf16.mxu0 %v3892_v51  ;;  %1148 = vmatprep.subr.bf16.mxu1 %v3894_v52 }
  0xc4   :  { %1108 = vmatpush1.bf16.msra.mxu0 %v3891_v57  ;;  %1149 = vmatpush1.bf16.msra.mxu1 %v3893_v58  ;;  %v4372_v58 = vld [vmem:[#allocation10 + $0x260] ss:$8 sps:$4 sm:$0xff]  }
  0xc5   :  { %1109 = vmatprep.subr.bf16.mxu0 %v3908_v59  ;;  %1150 = vmatprep.subr.bf16.mxu1 %v3910_v60 }
  0xc8   :  { %1110 = vmatpush1.bf16.msra.mxu0 %v3907_v2  ;;  %1151 = vmatpush1.bf16.msra.mxu1 %v3909_v3  ;;  %v4369_v3 = vld [vmem:[#allocation10 + $0x90] ss:$8 sps:$4 sm:$0xff]  }
  0xc9   :  { %1111 = vmatprep.subr.bf16.mxu0 %v3924_v4  ;;  %1152 = vmatprep.subr.bf16.mxu1 %v3926_v5  ;;  %v4377_v4 = vld [vmem:[#allocation10 + $0xa4] ss:$8 sps:$4 sm:$0xff]   ;;  %v4375_v5 = vld [vmem:[#allocation10 + $0xa0] ss:$8 sps:$4 sm:$0xff]  }
  0xcc   :  { %1112 = vmatpush1.bf16.msra.mxu0 %v3923_v6  ;;  %1153 = vmatpush1.bf16.msra.mxu1 %v3925_v7  ;;  %v4380_v6 = vld [vmem:[#allocation10 + $0x274] ss:$8 sps:$4 sm:$0xff]   ;;  %v4378_v7 = vld [vmem:[#allocation10 + $0x270] ss:$8 sps:$4 sm:$0xff]  }
  0xcd   :  { %2694 = vmatprep.subr.bf16.mxu1 %v4326_v9  ;;  %2920 = vmatprep.subr.bf16.mxu0 %v4338_v15  ;;  %v4381_v9 = vld [vmem:[#allocation10 + $0xb0] ss:$8 sps:$4 sm:$0xff]   ;;  %v4392_v15 = vld [vmem:[#allocation10 + $0x294] ss:$8 sps:$4 sm:$0xff]  }
  0xcf   :  { %1130 = vmatmul.mubr.bf16.vlgmr.msra.gmra.mrb[12].mxu0 %v4863_v11  ;;  %1171 = vmatmul.mubr.bf16.vlgmr.msra.gmra.mrb[12].mxu1 %v4863_v11  ;;  %v4350_v11 = vld [vmem:[#allocation10 + $0x224] ss:$8 sps:$4 sm:$0xff]  }
  0xd0   :  { %2695 = vmatpush1.bf16.msra.mxu1 %v4324_v8  ;;  %2921 = vmatpush1.bf16.msra.mxu0 %v4336_v14  ;;  %v4383_v8 = vld [vmem:[#allocation10 + $0xb4] ss:$8 sps:$4 sm:$0xff]   ;;  %v4387_v14 = vld [vmem:[#allocation10 + $0xc0] ss:$8 sps:$4 sm:$0xff]  }
  0xd1   :  { %2696 = vmatprep.subr.bf16.mxu1 %v4329_v12  ;;  %2922 = vmatprep.subr.bf16.mxu0 %v4344_v17  ;;  %v4384_v12 = vld [vmem:[#allocation10 + $0x280] ss:$8 sps:$4 sm:$0xff]   ;;  %v4395_v17 = vld [vmem:[#allocation10 + $0xd4] ss:$8 sps:$4 sm:$0xff]  }
  0xd4   :  { %2697 = vmatpush1.bf16.msra.mxu1 %v4327_v10  ;;  %2923 = vmatpush1.bf16.msra.mxu0 %v4342_v19  ;;  %v4386_v10 = vld [vmem:[#allocation10 + $0x284] ss:$8 sps:$4 sm:$0xff]  }
  0xd5   :  { %2698 = vmatprep.subr.bf16.mxu1 %v4332_v13  ;;  %2924 = vmatprep.subr.bf16.mxu0 %v4350_v11  ;;  %v4389_v13 = vld [vmem:[#allocation10 + $0xc4] ss:$8 sps:$4 sm:$0xff]  }
  0xd8   :  { %2699 = vmatpush1.bf16.msra.mxu1 %v4330_v16  ;;  %2925 = vmatpush1.bf16.msra.mxu0 %v4348_v22  ;;  %v4390_v16 = vld [vmem:[#allocation10 + $0x290] ss:$8 sps:$4 sm:$0xff]   ;;  %v4398_v22 = vld [vmem:[#allocation10 + $0x2a4] ss:$8 sps:$4 sm:$0xff]  }
  0xd9   :  { %2700 = vmatprep.subr.bf16.mxu1 %v4335_v18  ;;  %2926 = vmatprep.subr.bf16.mxu0 %v4356_v23  ;;  %v4393_v18 = vld [vmem:[#allocation10 + $0xd0] ss:$8 sps:$4 sm:$0xff]  }
  0xdc   :  { %2701 = vmatpush1.bf16.msra.mxu1 %v4333_v20  ;;  %2927 = vmatpush1.bf16.msra.mxu0 %v4354_v26 }
  0xdd   :  { %2702 = vmatprep.subr.bf16.mxu1 %v4341_v21  ;;  %2928 = vmatprep.subr.bf16.mxu0 %v4362_v27  ;;  %v4396_v27 = vld [vmem:[#allocation10 + $0x2a0] ss:$8 sps:$4 sm:$0xff]  }
  0xe0   :  { %2703 = vmatpush1.bf16.msra.mxu1 %v4339_v24  ;;  %2929 = vmatpush1.bf16.msra.mxu0 %v4360_v32 }
  0xe1   :  { %2704 = vmatprep.subr.bf16.mxu1 %v4347_v25  ;;  %2930 = vmatprep.subr.bf16.mxu0 %v4368_v33 }
  0xe4   :  { %2705 = vmatpush1.bf16.msra.mxu1 %v4345_v28  ;;  %2931 = vmatpush1.bf16.msra.mxu0 %v4366_v44  ;;  %v4401_v28 = vld [vmem:[#allocation10 + $0xe4] ss:$8 sps:$4 sm:$0xff]   ;;  %v4407_v44 = vld [vmem:[#allocation10 + $0xf4] ss:$8 sps:$4 sm:$0xff]  }
  0xe5   :  { %2706 = vmatprep.subr.bf16.mxu1 %v4353_v29  ;;  %2932 = vmatprep.subr.bf16.mxu0 %v4374_v45 }
  0xe8   :  { %2707 = vmatpush1.bf16.msra.mxu1 %v4351_v35  ;;  %2933 = vmatpush1.bf16.msra.mxu0 %v4372_v58 }
  0xe9   :  { %2708 = vmatprep.subr.bf16.mxu1 %v4359_v39  ;;  %2934 = vmatprep.subr.bf16.mxu0 %v4380_v6  ;;  %v4417_v6 = vld [vmem:[#allocation10 + $0x2f0] ss:$8 sps:$4 sm:$0xff]  }
  0xec   :  { %2709 = vmatpush1.bf16.msra.mxu1 %v4357_v0  ;;  %2935 = vmatpush1.bf16.msra.mxu0 %v4378_v7  ;;  %v4404_v0 = vld [vmem:[#allocation10 + $0x2b4] ss:$8 sps:$4 sm:$0xff]  }
  0xed   :  { %2710 = vmatprep.subr.bf16.mxu1 %v4365_v55  ;;  %2936 = vmatprep.subr.bf16.mxu0 %v4386_v10 }
  0xf0   :  { %2711 = vmatpush1.bf16.msra.mxu1 %v4363_v62  ;;  %2937 = vmatpush1.bf16.msra.mxu0 %v4384_v12  ;;  %v4411_v62 = vld [vmem:[#allocation10 + $0x2d0] ss:$8 sps:$4 sm:$0xff]  }
  0xf1   :  { %2712 = vmatprep.subr.bf16.mxu1 %v4371_v63  ;;  %2938 = vmatprep.subr.bf16.mxu0 %v4392_v15  ;;  %v1487_v63 = vld [vmem:[#allocation3 + $0x10] sm:$0xf] }
  0xf4   :  { %2713 = vmatpush1.bf16.msra.mxu1 %v4369_v3  ;;  %2939 = vmatpush1.bf16.msra.mxu0 %v4390_v16 }
  0xf5   :  { %2714 = vmatprep.subr.bf16.mxu1 %v4377_v4  ;;  %2940 = vmatprep.subr.bf16.mxu0 %v4398_v22  ;;  %v4414_v4 = vld [vmem:[#allocation10 + $0x2e0] ss:$8 sps:$4 sm:$0xff]  }
  0xf8   :  { %2715 = vmatpush1.bf16.msra.mxu1 %v4375_v5  ;;  %2941 = vmatpush1.bf16.msra.mxu0 %v4396_v27  ;;  %v4419_v5 = vld [vmem:[#allocation10 + $0x2f4] ss:$8 sps:$4 sm:$0xff]  }
  0xf9   :  { %2716 = vmatprep.subr.bf16.mxu1 %v4383_v8  ;;  %2942 = vmatprep.subr.bf16.mxu0 %v4404_v0  ;;  %v4437_v0 = vld [vmem:[#allocation10 + $0x154] ss:$8 sps:$4 sm:$0xff]  }
  0xfc   :  { %2717 = vmatpush1.bf16.msra.mxu1 %v4381_v9 }
  0xfd   :  { %2718 = vmatprep.subr.bf16.mxu1 %v4389_v13 }
 0x100   :  { %2719 = vmatpush1.bf16.msra.mxu1 %v4387_v14 }
 0x101   :  { %2720 = vmatprep.subr.bf16.mxu1 %v4395_v17 }
 0x104   :  { %2721 = vmatpush1.bf16.msra.mxu1 %v4393_v18 }
 0x105   :  { %2722 = vmatprep.subr.bf16.mxu1 %v4401_v28  ;;  %v4422_v28 = vld [vmem:[#allocation10 + $0x104] ss:$8 sps:$4 sm:$0xff]  }
 0x142   :  { %v885_v34 = vpop.f32.mrb[0].mxu0  ;;  %v926_v37 = vpop.f32.mrb[0].mxu1 }
 0x143   :  { %v1221_v36 = vadd.f32 %v4884_v30, %v885_v34  ;;  %v887_v38 = vpop.f32.mrb[1].mxu0  ;;  %v1253_v40 = vadd.f32 %v4884_v30, %v926_v37  ;;  %v928_v42 = vpop.f32.mrb[1].mxu1 }
 0x144   :  { %v1239_v41 = vadd.f32 %v4884_v30, %v887_v38  ;;  %v889_v43 = vpop.f32.mrb[2].mxu0  ;;  %v1270_v47 = vadd.f32 %v4884_v30, %v928_v42  ;;  %v930_v48 = vpop.f32.mrb[2].mxu1 }
 0x145   :  { %v1223_v46 = vmul.f32 0.01, %v1221_v36  ;;  %v890_v49 = vpop.f32.mrb[3].mxu0  ;;  %vm1222_vm0 = vcmp.ge.f32.partialorder %v1221_v36, 0.0  ;;  %v1255_v50 = vmul.f32 0.01, %v1253_v40 }
 0x146   :  { %v1241_v51 = vmul.f32 0.01, %v1239_v41  ;;  %v931_v52 = vpop.f32.mrb[3].mxu1  ;;  %vm1240_vm1 = vcmp.ge.f32.partialorder %v1239_v41, 0.0  ;;  %v1272_v53 = vmul.f32 0.01, %v1270_v47 }
 0x147   :  { %v4890_v54 = vsel %vm1222_vm0, %v1221_v36, %v1223_v46  ;;  %vm1254_vm2 = vcmp.ge.f32.partialorder %v1253_v40, 0.0  ;;  %vm1271_vm3 = vcmp.ge.f32.partialorder %v1270_v47, 0.0  ;;  %v4402_v43 = vld [vmem:[#allocation10 + $0x2b0] ss:$8 sps:$4 sm:$0xff]   ;;  %v1485_v48 = vld [vmem:[#allocation3] sm:$0xf0] }
 0x148   :  { %v1225_v56 = vmul.f32 %v4890_v54, %v4890_v54  ;;  %v4894_v57 = vsel %vm1240_vm1, %v1239_v41, %v1241_v51  ;;  %v4898_v60 = vsel %vm1254_vm2, %v1253_v40, %v1255_v50  ;;  %v4900_v61 = vsel %vm1271_vm3, %v1270_v47, %v1272_v53  ;;  %v4399_v40 = vld [vmem:[#allocation10 + $0xe0] ss:$8 sps:$4 sm:$0xff]   ;;  %v4405_v47 = vld [vmem:[#allocation10 + $0xf0] ss:$8 sps:$4 sm:$0xff]   ;;  %v4410_v52 = vld [vmem:[#allocation10 + $0x2c4] ss:$8 sps:$4 sm:$0xff]   ;;  %2943 = vmatpush1.bf16.msra.mxu0 %v4402_v43 }
 0x149   :  { %v1243_v59 = vmul.f32 %v4894_v57, %v4894_v57  ;;  %v1257_v1 = vmul.f32 %v4898_v60, %v4898_v60  ;;  %v1274_v2 = vmul.f32 %v4900_v61, %v4900_v61  ;;  %2723 = vmatpush1.bf16.msra.mxu1 %v4399_v40  ;;  %v1492_v50 = vrot.slane %v1485_v48, 4  ;;  %2944 = vmatprep.subr.bf16.mxu0 %v4410_v52  ;;  %v4429_v40 = vld [vmem:[#allocation10 + $0x130] ss:$8 sps:$4 sm:$0xff]   ;;  %v4432_v43 = vld [vmem:[#allocation10 + $0x140] ss:$8 sps:$4 sm:$0xff]  }
 0x14a   :  { %1226 = vadd.xlane.f32.xlu0 %v1225_v56  ;;  %v1493_v51 = vrot.slane %v4875_v31, 4  ;;  %2724 = vmatprep.subr.bf16.mxu1 %v4407_v44  ;;  %v4408_v56 = vld [vmem:[#allocation10 + $0x2c0] ss:$8 sps:$4 sm:$0xff]   ;;  %v4435_v44 = vld [vmem:[#allocation10 + $0x150] ss:$8 sps:$4 sm:$0xff]  }
 0x14b   :  { %1244 = vadd.xlane.f32.xlu1 %v1243_v59  ;;  %v4413_v59 = vld [vmem:[#allocation10 + $0x2d4] ss:$8 sps:$4 sm:$0xff]   ;;  %v4438_v52 = vld [vmem:[#allocation10 + $0x160] ss:$8 sps:$4 sm:$0xff]  }
 0x14c   :  { %v1494_v55 = vsel %vm1491_vm8, %v1492_v50, %v1493_v51  ;;  %2945 = vmatpush1.bf16.msra.mxu0 %v4408_v56 }
 0x14d   :  { %2725 = vmatpush1.bf16.msra.mxu1 %v4405_v47  ;;  %2726 = vmatprep.mubr.bf16.mxu1 %v1494_v55  ;;  %v4440_v47 = vld [vmem:[#allocation10 + $0x164] ss:$8 sps:$4 sm:$0xff]  }
 0x14e   :  { %1258 = vadd.xlane.f32.xlu0 %v1257_v1  ;;  %2946 = vmatprep.subr.bf16.mxu0 %v4413_v59  ;;  %v4416_v1 = vld [vmem:[#allocation10 + $0x2e4] ss:$8 sps:$4 sm:$0xff]  }
 0x14f   :  { %1275 = vadd.xlane.f32.xlu1 %v1274_v2  ;;  %v1495_v2 = vrot.slane %v1487_v63, 4  ;;  %2807 = vmatprep.subr.bf16.mxu1 %v4422_v28  ;;  %v4471_v28 = vld [vmem:[#allocation10 + $0x1c0] ss:$8 sps:$4 sm:$0xff]  }
 0x150   :  { %2727 = vmatmul.mubr.bf16.vlgmr.msra.gmra.mrb[16].mxu1 %v4875_v31  ;;  %2947 = vmatpush1.bf16.msra.mxu0 %v4411_v62 }
 0x151   :  { %v1496_v3 = vsel %vm1491_vm8, %v1493_v51, %v1495_v2  ;;  %2948 = vmatprep.subr.bf16.mxu0 %v4416_v1 }
 0x152   :  { %2736 = vmatprep.mubr.bf16.mxu1 %v1496_v3 }
 0x154   :  { %2949 = vmatpush1.bf16.msra.mxu0 %v4414_v4 }
 0x155   :  { %2950 = vmatprep.subr.bf16.mxu0 %v4419_v5 }
 0x158   :  { %2737 = vmatmul.mubr.bf16.gmra.mrb[20].mxu1 %v4875_v31  ;;  %2951 = vmatpush1.bf16.msra.mxu0 %v4417_v6 }
 0x162   :  { %v967_v19 = vpop.f32.mrb[4].mxu0  ;;  %v1008_v20 = vpop.f32.mrb[4].mxu1 }
 0x163   :  { %v1284_v11 = vadd.f32 %v4884_v30, %v967_v19  ;;  %v969_v21 = vpop.f32.mrb[5].mxu0  ;;  %v1315_v23 = vadd.f32 %v4884_v30, %v1008_v20  ;;  %v1010_v25 = vpop.f32.mrb[5].mxu1 }
 0x164   :  { %v1301_v24 = vadd.f32 %v4884_v30, %v969_v21  ;;  %v971_v26 = vpop.f32.mrb[6].mxu0  ;;  %v1332_v32 = vadd.f32 %v4884_v30, %v1010_v25  ;;  %v1012_v33 = vpop.f32.mrb[6].mxu1 }
 0x165   :  { %v1286_v29 = vmul.f32 0.01, %v1284_v11  ;;  %v972_v34 = vpop.f32.mrb[7].mxu0  ;;  %vm1285_vm4 = vcmp.ge.f32.partialorder %v1284_v11, 0.0  ;;  %v1317_v35 = vmul.f32 0.01, %v1315_v23 }
 0x166   :  { %v1303_v36 = vmul.f32 0.01, %v1301_v24  ;;  %v1013_v37 = vpop.f32.mrb[7].mxu1  ;;  %vm1316_vm5 = vcmp.ge.f32.partialorder %v1315_v23, 0.0  ;;  %v1334_v38 = vmul.f32 0.01, %v1332_v32 }
 0x167   :  { %v4910_v39 = vsel %vm1285_vm4, %v1284_v11, %v1286_v29  ;;  %vm1333_vm6 = vcmp.ge.f32.partialorder %v1332_v32, 0.0  ;;  %vm1302_vm7 = vcmp.ge.f32.partialorder %v1301_v24, 0.0  ;;  %v4912_v41 = vsel %vm1316_vm5, %v1315_v23, %v1317_v35  ;;  %v4420_v29 = vld [vmem:[#allocation10 + $0x100] ss:$8 sps:$4 sm:$0xff]   ;;  %v4425_v34 = vld [vmem:[#allocation10 + $0x114] ss:$8 sps:$4 sm:$0xff]  }
 0x168   :  { %v1288_v42 = vmul.f32 %v4910_v39, %v4910_v39  ;;  %v1319_v45 = vmul.f32 %v4912_v41, %v4912_v41  ;;  %v4918_v46 = vsel %vm1302_vm7, %v1301_v24, %v1303_v36  ;;  %v4920_v49 = vsel %vm1333_vm6, %v1332_v32, %v1334_v38  ;;  %2808 = vmatpush1.bf16.msra.mxu1 %v4420_v29  ;;  %v4423_v35 = vld [vmem:[#allocation10 + $0x110] ss:$8 sps:$4 sm:$0xff]   ;;  %v4428_v36 = vld [vmem:[#allocation10 + $0x124] ss:$8 sps:$4 sm:$0xff]   ;;  %v4426_v37 = vld [vmem:[#allocation10 + $0x120] ss:$8 sps:$4 sm:$0xff]  }
 0x169   :  { %v1305_v53 = vmul.f32 %v4918_v46, %v4918_v46  ;;  %v1336_v58 = vmul.f32 %v4920_v49, %v4920_v49  ;;  %2809 = vmatprep.subr.bf16.mxu1 %v4425_v34  ;;  %v4431_v38 = vld [vmem:[#allocation10 + $0x134] ss:$8 sps:$4 sm:$0xff]   ;;  %v4483_v34 = vld [vmem:[#allocation10 + $0x1e0] ss:$8 sps:$4 sm:$0xff]  }
 0x16a   :  { %1289 = vadd.xlane.f32.xlu0 %v1288_v42  ;;  %1320 = vadd.xlane.f32.xlu1 %v1319_v45  ;;  %v4434_v42 = vld [vmem:[#allocation10 + $0x144] ss:$8 sps:$4 sm:$0xff]   ;;  %v4479_v29 = vld [vmem:[#allocation10 + $0x1d4] ss:$8 sps:$4 sm:$0xff]  }
 0x16c   :  { %2810 = vmatpush1.bf16.msra.mxu1 %v4423_v35  ;;  %v4491_v35 = vld [vmem:[#allocation10 + $0x1f4] ss:$8 sps:$4 sm:$0xff]  }
 0x16d   :  { %2811 = vmatprep.subr.bf16.mxu1 %v4428_v36  ;;  %v4489_v36 = vld [vmem:[#allocation10 + $0x1f0] ss:$8 sps:$4 sm:$0xff]  }
 0x16e   :  { %1306 = vadd.xlane.f32.xlu0 %v1305_v53  ;;  %1337 = vadd.xlane.f32.xlu1 %v1336_v58 }
 0x170   :  { %2812 = vmatpush1.bf16.msra.mxu1 %v4426_v37 }
 0x171   :  { %2813 = vmatprep.subr.bf16.mxu1 %v4431_v38 }
 0x174   :  { %2814 = vmatpush1.bf16.msra.mxu1 %v4429_v40 }
 0x175   :  { %2815 = vmatprep.subr.bf16.mxu1 %v4434_v42 }
 0x178   :  { %2816 = vmatpush1.bf16.msra.mxu1 %v4432_v43 }
 0x179   :  { %2817 = vmatprep.subr.bf16.mxu1 %v4437_v0 }
 0x17c   :  { %2818 = vmatpush1.bf16.msra.mxu1 %v4435_v44 }
 0x17d   :  { %2819 = vmatprep.subr.bf16.mxu1 %v4440_v47 }
 0x180   :  { %2820 = vmatpush1.bf16.msra.mxu1 %v4438_v52 }
 0x182   :  { %v1049_v7 = vpop.f32.mrb[8].mxu0  ;;  %v1090_v9 = vpop.f32.mrb[8].mxu1 }
 0x183   :  { %v1346_v8 = vadd.f32 %v4884_v30, %v1049_v7  ;;  %v1051_v10 = vpop.f32.mrb[9].mxu0  ;;  %v1377_v12 = vadd.f32 %v4884_v30, %v1090_v9  ;;  %v1092_v14 = vpop.f32.mrb[9].mxu1  ;;  %v4441_v7 = vld [vmem:[#allocation10 + $0x170] ss:$8 sps:$4 sm:$0xff]  }
 0x184   :  { %v1363_v13 = vadd.f32 %v4884_v30, %v1051_v10  ;;  %v1053_v15 = vpop.f32.mrb[10].mxu0  ;;  %v1394_v17 = vadd.f32 %v4884_v30, %v1092_v14  ;;  %v1094_v18 = vpop.f32.mrb[10].mxu1 }
 0x185   :  { %v1348_v16 = vmul.f32 0.01, %v1346_v8  ;;  %v1054_v31 = vpop.f32.mrb[11].mxu0  ;;  %vm1347_vm9 = vcmp.ge.f32.partialorder %v1346_v8, 0.0  ;;  %v1379_v19 = vmul.f32 0.01, %v1377_v12 }
 0x186   :  { %v1365_v11 = vmul.f32 0.01, %v1363_v13  ;;  %v1095_v20 = vpop.f32.mrb[11].mxu1  ;;  %vm1378_vm10 = vcmp.ge.f32.partialorder %v1377_v12, 0.0  ;;  %v1396_v21 = vmul.f32 0.01, %v1394_v17 }
 0x187   :  { %v4935_v22 = vsel %vm1347_vm9, %v1346_v8, %v1348_v16  ;;  %vm1395_vm11 = vcmp.ge.f32.partialorder %v1394_v17, 0.0  ;;  %vm1364_vm12 = vcmp.ge.f32.partialorder %v1363_v13, 0.0  ;;  %v4937_v23 = vsel %vm1378_vm10, %v1377_v12, %v1379_v19  ;;  %v4449_v15 = vld [vmem:[#allocation10 + $0x184] ss:$8 sps:$4 sm:$0xff]   ;;  %v4447_v16 = vld [vmem:[#allocation10 + $0x180] ss:$8 sps:$4 sm:$0xff]  }
 0x188   :  { %v1350_v24 = vmul.f32 %v4935_v22, %v4935_v22  ;;  %v1381_v25 = vmul.f32 %v4937_v23, %v4937_v23  ;;  %v4943_v26 = vsel %vm1364_vm12, %v1363_v13, %v1365_v11  ;;  %v4945_v27 = vsel %vm1395_vm11, %v1394_v17, %v1396_v21  ;;  %v4446_v13 = vld [vmem:[#allocation10 + $0x304] ss:$8 sps:$4 sm:$0xff]   ;;  %v4455_v31 = vld [vmem:[#allocation10 + $0x194] ss:$8 sps:$4 sm:$0xff]   ;;  %v4453_v19 = vld [vmem:[#allocation10 + $0x190] ss:$8 sps:$4 sm:$0xff]  }
 0x189   :  { %v1367_v32 = vmul.f32 %v4943_v26, %v4943_v26  ;;  %v1398_v33 = vmul.f32 %v4945_v27, %v4945_v27  ;;  %3033 = vmatprep.subr.bf16.mxu0 %v4446_v13  ;;  %v4461_v11 = vld [vmem:[#allocation10 + $0x1a4] ss:$8 sps:$4 sm:$0xff]   ;;  %v4459_v20 = vld [vmem:[#allocation10 + $0x1a0] ss:$8 sps:$4 sm:$0xff]   ;;  %v4467_v21 = vld [vmem:[#allocation10 + $0x1b4] ss:$8 sps:$4 sm:$0xff]  }
 0x18a   :  { %1351 = vadd.xlane.f32.xlu0 %v1350_v24  ;;  %1382 = vadd.xlane.f32.xlu1 %v1381_v25  ;;  %v4465_v24 = vld [vmem:[#allocation10 + $0x1b0] ss:$8 sps:$4 sm:$0xff]   ;;  %v4473_v25 = vld [vmem:[#allocation10 + $0x1c4] ss:$8 sps:$4 sm:$0xff]  }
 0x18e   :  { %1368 = vadd.xlane.f32.xlu0 %v1367_v32  ;;  %1399 = vadd.xlane.f32.xlu1 %v1398_v33  ;;  %v4477_v32 = vld [vmem:[#allocation10 + $0x1d0] ss:$8 sps:$4 sm:$0xff]   ;;  %v4485_v33 = vld [vmem:[#allocation10 + $0x1e4] ss:$8 sps:$4 sm:$0xff]  }
 0x1a2   :  { %v1131_v45 = vpop.f32.mrb[12].mxu0  ;;  %v1172_v50 = vpop.f32.mrb[12].mxu1 }
 0x1a3   :  { %v1408_v48 = vadd.f32 %v4884_v30, %v1131_v45  ;;  %v1133_v51 = vpop.f32.mrb[13].mxu0  ;;  %v1439_v53 = vadd.f32 %v4884_v30, %v1172_v50  ;;  %v1174_v56 = vpop.f32.mrb[13].mxu1 }
 0x1a4   :  { %v1425_v55 = vadd.f32 %v4884_v30, %v1133_v51  ;;  %v1135_v58 = vpop.f32.mrb[14].mxu0  ;;  %v1456_v62 = vadd.f32 %v4884_v30, %v1174_v56  ;;  %v1176_v63 = vpop.f32.mrb[14].mxu1  ;;  %v4443_v30 = vld [vmem:[#allocation10 + $0x174] ss:$8 sps:$4 sm:$0xff]  }
 0x1a5   :  { %v1410_v59 = vmul.f32 0.01, %v1408_v48  ;;  %v1136_v1 = vpop.f32.mrb[15].mxu0  ;;  %vm1409_vm13 = vcmp.ge.f32.partialorder %v1408_v48, 0.0  ;;  %v1441_v2 = vmul.f32 0.01, %v1439_v53  ;;  %2821 = vmatprep.subr.bf16.mxu1 %v4443_v30 }
 0x1a6   :  { %v1427_v3 = vmul.f32 0.01, %v1425_v55  ;;  %v1177_v4 = vpop.f32.mrb[15].mxu1  ;;  %vm1440_vm14 = vcmp.ge.f32.partialorder %v1439_v53, 0.0  ;;  %v1458_v5 = vmul.f32 0.01, %v1456_v62  ;;  %2822 = vmatpush1.bf16.msra.mxu1 %v4441_v7 }
 0x1a7   :  { %v4955_v6 = vsel %vm1409_vm13, %v1408_v48, %v1410_v59  ;;  %vm1457_vm15 = vcmp.ge.f32.partialorder %v1456_v62, 0.0  ;;  %vm1426_vm0 = vcmp.ge.f32.partialorder %v1425_v55, 0.0  ;;  %v4957_v8 = vsel %vm1440_vm14, %v1439_v53, %v1441_v2  ;;  %2823 = vmatprep.subr.bf16.mxu1 %v4449_v15 }
 0x1a8   :  { %v1412_v9 = vmul.f32 %v4955_v6, %v4955_v6  ;;  %v1443_v10 = vmul.f32 %v4957_v8, %v4957_v8  ;;  %v4963_v12 = vsel %vm1426_vm0, %v1425_v55, %v1427_v3  ;;  %v4965_v14 = vsel %vm1457_vm15, %v1456_v62, %v1458_v5 }
 0x1a9   :  { %v1429_v17 = vmul.f32 %v4963_v12, %v4963_v12  ;;  %v1460_v18 = vmul.f32 %v4965_v14, %v4965_v14 }
 0x1aa   :  { %1413 = vadd.xlane.f32.xlu0 %v1412_v9  ;;  %1444 = vadd.xlane.f32.xlu1 %v1443_v10 }
 0x1ab   :  { %2824 = vmatpush1.bf16.msra.mxu1 %v4447_v16 }
 0x1ac   :  { %2825 = vmatprep.subr.bf16.mxu1 %v4455_v31 }
 0x1ae   :  { %1430 = vadd.xlane.f32.xlu0 %v1429_v17  ;;  %1461 = vadd.xlane.f32.xlu1 %v1460_v18 }
 0x1af   :  { %2826 = vmatpush1.bf16.msra.mxu1 %v4453_v19  ;;  %v4444_v19 = vld [vmem:[#allocation10 + $0x300] ss:$8 sps:$4 sm:$0xff]  }
 0x1b0   :  { %2827 = vmatprep.subr.bf16.mxu1 %v4461_v11 }
 0x1b3   :  { %2828 = vmatpush1.bf16.msra.mxu1 %v4459_v20 }
 0x1b4   :  { %2829 = vmatprep.subr.bf16.mxu1 %v4467_v21 }
 0x1b7   :  { %2830 = vmatpush1.bf16.msra.mxu1 %v4465_v24 }
 0x1b8   :  { %2831 = vmatprep.subr.bf16.mxu1 %v4473_v25  ;;  %v4452_v25 = vld [vmem:[#allocation10 + $0x314] ss:$8 sps:$4 sm:$0xff]  }
 0x1bb   :  { %2832 = vmatpush1.bf16.msra.mxu1 %v4471_v28 }
 0x1bc   :  { %2833 = vmatprep.subr.bf16.mxu1 %v4479_v29 }
 0x1bf   :  { %2834 = vmatpush1.bf16.msra.mxu1 %v4477_v32 }
 0x1c0   :  { %2835 = vmatprep.subr.bf16.mxu1 %v4485_v33 }
 0x1c3   :  { %2836 = vmatpush1.bf16.msra.mxu1 %v4483_v34 }
 0x1c4   :  { %2837 = vmatprep.subr.bf16.mxu1 %v4491_v35 }
 0x1c7   :  { %2838 = vmatpush1.bf16.msra.mxu1 %v4489_v36 }
 0x1d7   :  { %v1227_v37 = vpop.xlane.xlu0 %1226 }
 0x1d8   :  { %v1229_v38 = vmul.f32 0.0078125, %v1227_v37  ;;  %v1245_v40 = vpop.xlane.xlu1 %1244 }
 0x1d9   :  { %v1246_v42 = vmul.f32 0.0078125, %v1245_v40 }
 0x1da   :  { %v1230_v43 = vadd.f32 1e-08, %v1229_v38  ;;  %v4450_v38 = vld [vmem:[#allocation10 + $0x310] ss:$8 sps:$4 sm:$0xff]  }
 0x1db   :  { %v1247_v0 = vadd.f32 1e-08, %v1246_v42  ;;  %v1259_v44 = vpop.xlane.xlu0 %1258 }
 0x1dc   :  { %4556 = vrsqrt.f32 %v1230_v43  ;;  %v1260_v45 = vmul.f32 0.0078125, %v1259_v44  ;;  %v1276_v47 = vpop.xlane.xlu1 %1275  ;;  %v4458_v43 = vld [vmem:[#allocation10 + $0x324] ss:$8 sps:$4 sm:$0xff]  }
 0x1dd   :  { %4558 = vrsqrt.f32 %v1247_v0  ;;  %v1277_v48 = vmul.f32 0.0078125, %v1276_v47  ;;  %v4456_v0 = vld [vmem:[#allocation10 + $0x320] ss:$8 sps:$4 sm:$0xff]  }
 0x1de   :  { %v1261_v50 = vadd.f32 1e-08, %v1260_v45  ;;  %v4464_v45 = vld [vmem:[#allocation10 + $0x334] ss:$8 sps:$4 sm:$0xff]  }
 0x1df   :  { %v1278_v51 = vadd.f32 1e-08, %v1277_v48  ;;  %v4462_v48 = vld [vmem:[#allocation10 + $0x330] ss:$8 sps:$4 sm:$0xff]  }
 0x1e0   :  { %4560 = vrsqrt.f32 %v1261_v50 }
 0x1e1   :  { %4562 = vrsqrt.f32 %v1278_v51 }
 0x1e6   :  { %v4557_v52 = vpop.eup %4556 }
 0x1e7   :  { %v4559_v53 = vpop.eup %4558  ;;  %v1232_v55 = vmul.f32 %v4557_v52, %v4890_v54  ;;  %v4470_v52 = vld [vmem:[#allocation10 + $0x344] ss:$8 sps:$4 sm:$0xff]  }
 0x1e8   :  { %v1249_v56 = vmul.f32 %v4559_v53, %v4894_v57 }
 0x1e9   :  { %v1233_v58 = vpack.c.bf16 %v1232_v55, %v1232_v55 }
 0x1ea   :  { %v4561_v59 = vpop.eup %4560  ;;  %v1250_v62 = vpack.c.bf16 %v1249_v56, %v1249_v56 }
 0x1eb   :  { %v4563_v63 = vpop.eup %4562  ;;  %v1235_v1 = vrot.slane %v1233_v58, 4  ;;  %v1263_v2 = vmul.f32 %v4561_v59, %v4898_v60  ;;  %v4468_v59 = vld [vmem:[#allocation10 + $0x340] ss:$8 sps:$4 sm:$0xff]  }
 0x1ec   :  { %1251 = vst [vmem:[#allocation3 + $0x20] sm:$0xf] %v1250_v62  ;;  %v1280_v3 = vmul.f32 %v4563_v63, %v4900_v61 }
 0x1ed   :  { %1237 = vst [vmem:[#allocation3 + $0x18] sm:$0xf0] %v1235_v1  ;;  %v1264_v4 = vpack.c.bf16 %v1263_v2, %v1263_v2  ;;  %v4476_v2 = vld [vmem:[#allocation10 + $0x354] ss:$8 sps:$4 sm:$0xff]  }
 0x1ee   :  { %v1281_v5 = vpack.c.bf16 %v1280_v3, %v1280_v3 }
 0x1ef   :  { %v1266_v7 = vrot.slane %v1264_v4, 4 }
 0x1f0   :  { %1282 = vst [vmem:[#allocation3 + $0x28] sm:$0xf] %v1281_v5 }
 0x1f1   :  { %1268 = vst [vmem:[#allocation3 + $0x20] sm:$0xf0] %v1266_v7  ;;  %v4482_v7 = vld [vmem:[#allocation10 + $0x364] ss:$8 sps:$4 sm:$0xff]  }
 0x1f4   :  { %v1501_v9 = vld [vmem:[#allocation3 + $0x18] sm:$0xf0] }
 0x1f5   :  { %v1578_v54 = vld [vmem:[#allocation3 + $0x18] sm:$0xf0]  ;;  %v1507_v16 = vrot.slane %v1501_v9, 4  ;;  %v4480_v9 = vld [vmem:[#allocation10 + $0x360] ss:$8 sps:$4 sm:$0xff]  }
 0x1f6   :  { %v1584_v61 = vrot.slane %v1578_v54, 4  ;;  %v4981_v32 = vld [vmem:[#allocation3 + $0x18] sm:$0xff]  ;;  %v4488_v54 = vld [vmem:[#allocation10 + $0x374] ss:$8 sps:$4 sm:$0xff]  }
 0x1f7   :  { %v1290_v30 = vpop.xlane.xlu0 %1289  ;;  %v1503_v57 = vld [vmem:[#allocation3 + $0x28] sm:$0xf]  ;;  %v1321_v10 = vpop.xlane.xlu1 %1320 }
 0x1f8   :  { %v1291_v13 = vmul.f32 0.0078125, %v1290_v30  ;;  %v4975_v15 = vld [vmem:[#allocation3 + $0x20] sm:$0xff]  ;;  %v1322_v17 = vmul.f32 0.0078125, %v1321_v10  ;;  %v1510_v18 = vrot.slane %v1503_v57, 4  ;;  %v4983_v33 = vld [vmem:[#allocation3 + $0x28] sm:$0xff] }
 0x1f9   :  { %2952 = vmatprep.mubr.bf16.mxu0 %v4975_v15  ;;  %v1508_v60 = vrot.slane %v4975_v15, 4  ;;  %v1580_v34 = vld [vmem:[#allocation3 + $0x28] sm:$0xf] }
 0x1fa   :  { %v1292_v31 = vadd.f32 1e-08, %v1291_v13  ;;  %v1323_v11 = vadd.f32 1e-08, %v1322_v17  ;;  %v1587_v42 = vrot.slane %v1580_v34, 4 }
 0x1fb   :  { %v1307_v20 = vpop.xlane.xlu0 %1306  ;;  %v1509_v21 = vsel %vm1491_vm8, %v1507_v16, %v1508_v60  ;;  %v1586_v24 = vsel %vm1491_vm8, %v1584_v61, %v1508_v60  ;;  %v1338_v28 = vpop.xlane.xlu1 %1337  ;;  %v1511_v36 = vsel %vm1491_vm8, %v1508_v60, %v1510_v18 }
 0x1fc   :  { %4564 = vrsqrt.f32 %v1292_v31  ;;  %v1308_v29 = vmul.f32 0.0078125, %v1307_v20  ;;  %2746 = vmatprep.mubr.bf16.mxu1 %v1509_v21  ;;  %2953 = vmatmul.mubr.bf16.vlgmr.msra.gmra.mrb[16].mxu0 %v1586_v24  ;;  %v1339_v35 = vmul.f32 0.0078125, %v1338_v28  ;;  %v1588_v44 = vsel %vm1491_vm8, %v1508_v60, %v1587_v42  ;;  %v4486_v31 = vld [vmem:[#allocation10 + $0x370] ss:$8 sps:$4 sm:$0xff]   ;;  %v4494_v21 = vld [vmem:[#allocation10 + $0x384] ss:$8 sps:$4 sm:$0xff]  }
 0x1fd   :  { %4566 = vrsqrt.f32 %v1323_v11  ;;  %2747 = vmatmul.mubr.bf16.gmra.mrb[24].mxu1 %v4981_v32  ;;  %2962 = vmatprep.mubr.bf16.mxu0 %v4983_v33 }
 0x1fe   :  { %v1309_v37 = vadd.f32 1e-08, %v1308_v29  ;;  %2756 = vmatprep.mubr.bf16.mxu1 %v1511_v36  ;;  %3034 = vmatpush1.bf16.msra.mxu0 %v4444_v19  ;;  %v1340_v40 = vadd.f32 1e-08, %v1339_v35 }
 0x1ff   :  { %3035 = vmatprep.subr.bf16.mxu0 %v4452_v25 }
 0x200   :  { %4568 = vrsqrt.f32 %v1309_v37 }
 0x201   :  { %4570 = vrsqrt.f32 %v1340_v40  ;;  %v4492_v40 = vld [vmem:[#allocation10 + $0x380] ss:$8 sps:$4 sm:$0xff]  }
 0x202   :  { %3036 = vmatpush1.bf16.msra.mxu0 %v4450_v38 }
 0x203   :  { %3037 = vmatprep.subr.bf16.mxu0 %v4458_v43 }
 0x204   :  { %2963 = vmatmul.mubr.bf16.gmra.mrb[20].mxu0 %v1588_v44 }
 0x205   :  { %2757 = vmatmul.mubr.bf16.gmra.mrb[28].mxu1 %v4975_v15 }
 0x206   :  { %v4565_v47 = vpop.eup %4564  ;;  %3038 = vmatpush1.bf16.msra.mxu0 %v4456_v0  ;;  %v4497_v0 = vld [vmem:[#allocation10 + $0x394] ss:$8 sps:$4 sm:$0xff]  }
 0x207   :  { %v4567_v50 = vpop.eup %4566  ;;  %v1294_v51 = vmul.f32 %v4565_v47, %v4910_v39  ;;  %3039 = vmatprep.subr.bf16.mxu0 %v4464_v45  ;;  %v4495_v47 = vld [vmem:[#allocation10 + $0x390] ss:$8 sps:$4 sm:$0xff]  }
 0x208   :  { %v1325_v53 = vmul.f32 %v4567_v50, %v4912_v41  ;;  %v4474_v41 = vld [vmem:[#allocation10 + $0x350] ss:$8 sps:$4 sm:$0xff]   ;;  %v4500_v50 = vld [vmem:[#allocation10 + $0x3a4] ss:$8 sps:$4 sm:$0xff]  }
 0x209   :  { %v1295_v55 = vpack.c.bf16 %v1294_v51, %v1294_v51  ;;  %v4498_v51 = vld [vmem:[#allocation10 + $0x3a0] ss:$8 sps:$4 sm:$0xff]  }
 0x20a   :  { %v4569_v56 = vpop.eup %4568  ;;  %v1326_v58 = vpack.c.bf16 %v1325_v53, %v1325_v53  ;;  %3040 = vmatpush1.bf16.msra.mxu0 %v4462_v48 }
 0x20b   :  { %v4571_v62 = vpop.eup %4570  ;;  %v1297_v63 = vrot.slane %v1295_v55, 4  ;;  %v1311_v1 = vmul.f32 %v4569_v56, %v4918_v46  ;;  %3041 = vmatprep.subr.bf16.mxu0 %v4470_v52  ;;  %v4503_v52 = vld [vmem:[#allocation10 + $0x3b4] ss:$8 sps:$4 sm:$0xff]  }
 0x20c   :  { %v1328_v3 = vrot.slane %v1326_v58, 4  ;;  %v1342_v4 = vmul.f32 %v4571_v62, %v4920_v49 }
 0x20d   :  { %1299 = vst [vmem:[#allocation3 + $0x30] sm:$0xf0] %v1297_v63  ;;  %v1312_v39 = vpack.c.bf16 %v1311_v1, %v1311_v1  ;;  %v4506_v63 = vld [vmem:[#allocation10 + $0x3c4] ss:$8 sps:$4 sm:$0xff]  }
 0x20e   :  { %1330 = vst [vmem:[#allocation3 + $0x38] sm:$0xf0] %v1328_v3  ;;  %v1343_v5 = vpack.c.bf16 %v1342_v4, %v1342_v4  ;;  %3042 = vmatpush1.bf16.msra.mxu0 %v4468_v59  ;;  %v4501_v59 = vld [vmem:[#allocation10 + $0x3b0] ss:$8 sps:$4 sm:$0xff]  }
 0x20f   :  { %1313 = vst [vmem:[#allocation3 + $0x38] sm:$0xf] %v1312_v39  ;;  %3043 = vmatprep.subr.bf16.mxu0 %v4476_v2 }
 0x210   :  { %1344 = vst [vmem:[#allocation3 + $0x40] sm:$0xf] %v1343_v5 }
 0x212   :  { %3044 = vmatpush1.bf16.msra.mxu0 %v4474_v41 }
 0x213   :  { %3045 = vmatprep.subr.bf16.mxu0 %v4482_v7  ;;  %v4504_v7 = vld [vmem:[#allocation10 + $0x3c0] ss:$8 sps:$4 sm:$0xff]  }
 0x214   :  { %v1516_v46 = vld [vmem:[#allocation3 + $0x30] sm:$0xf0] }
 0x215   :  { %v1593_v30 = vld [vmem:[#allocation3 + $0x30] sm:$0xf0]  ;;  %v1522_v10 = vrot.slane %v1516_v46, 4  ;;  %v4512_v46 = vld [vmem:[#allocation10 + $0x3e4] ss:$8 sps:$4 sm:$0xff]  }
 0x216   :  { %v4994_v57 = vld [vmem:[#allocation3 + $0x38] sm:$0xff]  ;;  %3046 = vmatpush1.bf16.msra.mxu0 %v4480_v9  ;;  %v1599_v16 = vrot.slane %v1593_v30, 4  ;;  %v5004_v25 = vld [vmem:[#allocation3 + $0x30] sm:$0xff] }
 0x217   :  { %2972 = vmatprep.mubr.bf16.mxu0 %v4994_v57  ;;  %v1352_v49 = vpop.xlane.xlu0 %1351  ;;  %v4998_v13 = vrot.slane %v4994_v57, 4  ;;  %v1518_v17 = vld [vmem:[#allocation3 + $0x40] sm:$0xf]  ;;  %3047 = vmatprep.subr.bf16.mxu0 %v4488_v54  ;;  %v1383_v60 = vpop.xlane.xlu1 %1382  ;;  %v4507_v54 = vld [vmem:[#allocation10 + $0x3d0] ss:$8 sps:$4 sm:$0xff]  }
 0x218   :  { %v1353_v61 = vmul.f32 0.0078125, %v1352_v49  ;;  %v1525_v18 = vrot.slane %v1518_v17, 4  ;;  %v1384_v19 = vmul.f32 0.0078125, %v1383_v60  ;;  %v5006_v28 = vld [vmem:[#allocation3 + $0x40] sm:$0xff] }
 0x219   :  { %v1524_v11 = vsel %vm1491_vm8, %v1522_v10, %v4998_v13  ;;  %v1601_v20 = vsel %vm1491_vm8, %v1599_v16, %v4998_v13  ;;  %v1595_v29 = vld [vmem:[#allocation3 + $0x40] sm:$0xf] }
 0x21a   :  { %v1354_v24 = vadd.f32 1e-08, %v1353_v61  ;;  %2766 = vmatprep.mubr.bf16.mxu1 %v1524_v11  ;;  %2973 = vmatmul.mubr.bf16.gmra.mrb[24].mxu0 %v1601_v20  ;;  %v1385_v34 = vadd.f32 1e-08, %v1384_v19  ;;  %v1526_v36 = vsel %vm1491_vm8, %v4998_v13, %v1525_v18  ;;  %v1602_v43 = vrot.slane %v1595_v29, 4 }
 0x21b   :  { %2767 = vmatmul.mubr.bf16.gmra.mrb[32].mxu1 %v5004_v25  ;;  %2982 = vmatprep.mubr.bf16.mxu0 %v5006_v28  ;;  %v1369_v35 = vpop.xlane.xlu0 %1368  ;;  %v1400_v37 = vpop.xlane.xlu1 %1399  ;;  %v4513_v20 = vld [vmem:[#allocation10 + $0x3f0] ss:$8 sps:$4 sm:$0xff]  }
 0x21c   :  { %4572 = vrsqrt.f32 %v1354_v24  ;;  %v1370_v38 = vmul.f32 0.0078125, %v1369_v35  ;;  %2776 = vmatprep.mubr.bf16.mxu1 %v1526_v36  ;;  %3048 = vmatpush1.bf16.msra.mxu0 %v4486_v31  ;;  %v1401_v42 = vmul.f32 0.0078125, %v1400_v37  ;;  %v1603_v48 = vsel %vm1491_vm8, %v4998_v13, %v1602_v43 }
 0x21d   :  { %4574 = vrsqrt.f32 %v1385_v34  ;;  %3049 = vmatprep.subr.bf16.mxu0 %v4494_v21  ;;  %v4518_v34 = vld [vmem:[#allocation10 + $0x404] ss:$8 sps:$4 sm:$0xff]  }
 0x21e   :  { %v1371_v44 = vadd.f32 1e-08, %v1370_v38  ;;  %v1402_v45 = vadd.f32 1e-08, %v1401_v42 }
 0x220   :  { %4576 = vrsqrt.f32 %v1371_v44  ;;  %3050 = vmatpush1.bf16.msra.mxu0 %v4492_v40 }
 0x221   :  { %4578 = vrsqrt.f32 %v1402_v45  ;;  %3051 = vmatprep.subr.bf16.mxu0 %v4497_v0 }
 0x222   :  { %2983 = vmatmul.mubr.bf16.gmra.mrb[28].mxu0 %v1603_v48 }
 0x223   :  { %2777 = vmatmul.mubr.bf16.gmra.mrb[36].mxu1 %v4994_v57 }
 0x224   :  { %3052 = vmatpush1.bf16.msra.mxu0 %v4495_v47 }
 0x225   :  { %3053 = vmatprep.subr.bf16.mxu0 %v4500_v50 }
 0x226   :  { %v4573_v53 = vpop.eup %4572 }
 0x227   :  { %v4575_v55 = vpop.eup %4574  ;;  %v1356_v56 = vmul.f32 %v4573_v53, %v4935_v22 }
 0x228   :  { %v1387_v58 = vmul.f32 %v4575_v55, %v4937_v23  ;;  %3054 = vmatpush1.bf16.msra.mxu0 %v4498_v51  ;;  %v4509_v23 = vld [vmem:[#allocation10 + $0x3d4] ss:$8 sps:$4 sm:$0xff]  }
 0x229   :  { %v1357_v62 = vpack.c.bf16 %v1356_v56, %v1356_v56  ;;  %3055 = vmatprep.subr.bf16.mxu0 %v4503_v52 }
 0x22a   :  { %v4577_v1 = vpop.eup %4576  ;;  %v1388_v2 = vpack.c.bf16 %v1387_v58, %v1387_v58 }
 0x22b   :  { %v4579_v3 = vpop.eup %4578  ;;  %v1359_v4 = vrot.slane %v1357_v62, 4  ;;  %v1373_v39 = vmul.f32 %v4577_v1, %v4943_v26  ;;  %v4510_v26 = vld [vmem:[#allocation10 + $0x3e0] ss:$8 sps:$4 sm:$0xff]  }
 0x22c   :  { %v1390_v5 = vrot.slane %v1388_v2, 4  ;;  %v1404_v41 = vmul.f32 %v4579_v3, %v4945_v27  ;;  %3056 = vmatpush1.bf16.msra.mxu0 %v4501_v59  ;;  %v4515_v27 = vld [vmem:[#allocation10 + $0x3f4] ss:$8 sps:$4 sm:$0xff]   ;;  %v5044_v3 = vld [vmem:[#allocation3] sm:$0xff] }
 0x22d   :  { %1361 = vst [vmem:[#allocation3 + $0x48] sm:$0xf0] %v1359_v4  ;;  %v1374_v22 = vpack.c.bf16 %v1373_v39, %v1373_v39  ;;  %3057 = vmatprep.subr.bf16.mxu0 %v4506_v63 }
 0x22e   :  { %1392 = vst [vmem:[#allocation3 + $0x50] sm:$0xf0] %v1390_v5  ;;  %v1405_v9 = vpack.c.bf16 %v1404_v41, %v1404_v41 }
 0x22f   :  { %1375 = vst [vmem:[#allocation3 + $0x50] sm:$0xf] %v1374_v22 }
 0x230   :  { %1406 = vst [vmem:[#allocation3 + $0x58] sm:$0xf] %v1405_v9  ;;  %3058 = vmatpush1.bf16.msra.mxu0 %v4504_v7  ;;  %v1670_v9 = vld [vmem:[#allocation3 + $0x30] sm:$0xf0] }
 0x231   :  { %3059 = vmatprep.subr.bf16.mxu0 %v4509_v23 }
 0x234   :  { %v1531_v30 = vld [vmem:[#allocation3 + $0x48] sm:$0xf0]  ;;  %3060 = vmatpush1.bf16.msra.mxu0 %v4507_v54  ;;  %v1676_v54 = vrot.slane %v1670_v9, 4  ;;  %v4542_v9 = vld [vmem:[#allocation11 + $0x48] sm:$0xff]  }
 0x235   :  { %v1608_v49 = vld [vmem:[#allocation3 + $0x48] sm:$0xf0]  ;;  %3061 = vmatprep.subr.bf16.mxu0 %v4512_v46  ;;  %v1537_v17 = vrot.slane %v1531_v30, 4 }
 0x236   :  { %v5019_v10 = vld [vmem:[#allocation3 + $0x50] sm:$0xff]  ;;  %v1614_v61 = vrot.slane %v1608_v49, 4  ;;  %v5029_v36 = vld [vmem:[#allocation3 + $0x48] sm:$0xff]  ;;  %v1678_v30 = vsel %vm1491_vm8, %v1676_v54, %v4998_v13  ;;  %v4516_v49 = vld [vmem:[#allocation10 + $0x400] ss:$8 sps:$4 sm:$0xff]  }
 0x237   :  { %2992 = vmatprep.mubr.bf16.mxu0 %v5019_v10  ;;  %v1414_v16 = vpop.xlane.xlu0 %1413  ;;  %v5023_v60 = vrot.slane %v5019_v10, 4  ;;  %v1533_v18 = vld [vmem:[#allocation3 + $0x58] sm:$0xf]  ;;  %v1445_v31 = vpop.xlane.xlu1 %1444  ;;  %v4543_v54 = vld [vmem:[#allocation11 + $0x8] sm:$0xff]  }
 0x238   :  { %v1415_v19 = vmul.f32 0.0078125, %v1414_v16  ;;  %v1540_v11 = vrot.slane %v1533_v18, 4  ;;  %3062 = vmatpush1.bf16.msra.mxu0 %v4510_v26  ;;  %v1446_v21 = vmul.f32 0.0078125, %v1445_v31  ;;  %v5031_v37 = vld [vmem:[#allocation3 + $0x58] sm:$0xff] }
 0x239   :  { %v1539_v24 = vsel %vm1491_vm8, %v1537_v17, %v5023_v60  ;;  %v1616_v29 = vsel %vm1491_vm8, %v1614_v61, %v5023_v60  ;;  %3063 = vmatprep.subr.bf16.mxu0 %v4515_v27  ;;  %v1610_v38 = vld [vmem:[#allocation3 + $0x58] sm:$0xf]  ;;  %v4521_v27 = vld [vmem:[#allocation10 + $0x414] ss:$8 sps:$4 sm:$0xff]   ;;  %v4519_v17 = vld [vmem:[#allocation10 + $0x410] ss:$8 sps:$4 sm:$0xff]  }
 0x23a   :  { %v1416_v35 = vadd.f32 1e-08, %v1415_v19  ;;  %2786 = vmatprep.mubr.bf16.mxu1 %v1539_v24  ;;  %2993 = vmatmul.mubr.bf16.gmra.mrb[32].mxu0 %v1616_v29  ;;  %v1447_v40 = vadd.f32 1e-08, %v1446_v21  ;;  %v1541_v43 = vsel %vm1491_vm8, %v5023_v60, %v1540_v11  ;;  %v1617_v47 = vrot.slane %v1610_v38, 4 }
 0x23b   :  { %2787 = vmatmul.mubr.bf16.gmra.mrb[40].mxu1 %v5029_v36  ;;  %3002 = vmatprep.mubr.bf16.mxu0 %v5031_v37  ;;  %v1431_v42 = vpop.xlane.xlu0 %1430  ;;  %v1462_v0 = vpop.xlane.xlu1 %1461  ;;  %v1685_v61 = vld [vmem:[#allocation3 + $0x48] sm:$0xf0]  ;;  %v4522_v31 = vld [vmem:[#allocation10 + $0x420] ss:$8 sps:$4 sm:$0xff]   ;;  %v4530_v21 = vld [vmem:[#allocation10 + $0x444] ss:$8 sps:$4 sm:$0xff]  }
 0x23c   :  { %4580 = vrsqrt.f32 %v1416_v35  ;;  %v1432_v44 = vmul.f32 0.0078125, %v1431_v42  ;;  %2796 = vmatprep.mubr.bf16.mxu1 %v1541_v43  ;;  %3064 = vmatpush1.bf16.msra.mxu0 %v4513_v20  ;;  %v1463_v45 = vmul.f32 0.0078125, %v1462_v0  ;;  %v1618_v51 = vsel %vm1491_vm8, %v5023_v60, %v1617_v47  ;;  %v4527_v19 = vld [vmem:[#allocation10 + $0x434] ss:$8 sps:$4 sm:$0xff]   ;;  %v1687_v11 = vld [vmem:[#allocation3 + $0x58] sm:$0xf] }
 0x23d   :  { %4582 = vrsqrt.f32 %v1447_v40  ;;  %3146 = vmatprep.subr.bf16.mxu0 %v4518_v34  ;;  %v1691_v18 = vrot.slane %v1685_v61, 4  ;;  %v4525_v20 = vld [vmem:[#allocation10 + $0x430] ss:$8 sps:$4 sm:$0xff]   ;;  %v1694_v24 = vrot.slane %v1687_v11, 4  ;;  %v4528_v29 = vld [vmem:[#allocation10 + $0x440] ss:$8 sps:$4 sm:$0xff]  }
 0x23e   :  { %v1433_v48 = vadd.f32 1e-08, %v1432_v44  ;;  %v1464_v50 = vadd.f32 1e-08, %v1463_v45  ;;  %v4533_v34 = vld [vmem:[#allocation10 + $0x454] ss:$8 sps:$4 sm:$0xff]  }
 0x23f   :  { %v1695_v35 = vsel %vm1491_vm8, %v5023_v60, %v1694_v24  ;;  %v4531_v38 = vld [vmem:[#allocation10 + $0x450] ss:$8 sps:$4 sm:$0xff]   ;;  %v4536_v42 = vld [vmem:[#allocation10 + $0x464] ss:$8 sps:$4 sm:$0xff]   ;;  %v4534_v0 = vld [vmem:[#allocation10 + $0x460] ss:$8 sps:$4 sm:$0xff]  }
 0x240   :  { %4584 = vrsqrt.f32 %v1433_v48  ;;  %v4539_v44 = vld [vmem:[#allocation10 + $0x474] ss:$8 sps:$4 sm:$0xff]   ;;  %v4537_v45 = vld [vmem:[#allocation10 + $0x470] ss:$8 sps:$4 sm:$0xff]   ;;  %v1715_v48 = vld [vmem:[#allocation3 + $0x78] sm:$0xf0] }
 0x241   :  { %4586 = vrsqrt.f32 %v1464_v50  ;;  %v4548_v61 = vld [vmem:[#allocation11 + $0x60] sm:$0xff]   ;;  %v4551_v11 = vld [vmem:[#allocation11 + $0x28] sm:$0xff]  }
 0x242   :  { %3003 = vmatmul.mubr.bf16.gmra.mrb[36].mxu0 %v1618_v51  ;;  %v1721_v51 = vrot.slane %v1715_v48, 4 }
 0x243   :  { %2797 = vmatmul.mubr.bf16.gmra.mrb[44].mxu1 %v5019_v10 }
 0x244   :  { %2839 = vmatprep.mubr.bf16.mxu1 %v4981_v32 }
 0x246   :  { %v4581_v52 = vpop.eup %4580 }
 0x247   :  { %v4583_v53 = vpop.eup %4582  ;;  %v1418_v55 = vmul.f32 %v4581_v52, %v4955_v6  ;;  %v1722_v52 = vrot.slane %v5044_v3, 4 }
 0x248   :  { %v1449_v56 = vmul.f32 %v4583_v53, %v4957_v8 }
 0x249   :  { %v1419_v58 = vpack.c.bf16 %v1418_v55, %v1418_v55  ;;  %v1723_v53 = vsel %vm1491_vm8, %v1721_v51, %v1722_v52  ;;  %v1717_v55 = vld [vmem:[#allocation3 + $0x88] sm:$0xf] }
 0x24a   :  { %v4585_v59 = vpop.eup %4584  ;;  %v1450_v62 = vpack.c.bf16 %v1449_v56, %v1449_v56  ;;  %v1724_v56 = vrot.slane %v1717_v55, 4 }
 0x24b   :  { %v4587_v63 = vpop.eup %4586  ;;  %v1421_v1 = vrot.slane %v1419_v58, 4  ;;  %v1435_v2 = vmul.f32 %v4585_v59, %v4963_v12  ;;  %2840 = vmatmul.mubr.bf16.vlgmr.msra.gmra.mrb[16].mxu1 %v5044_v3 }
 0x24c   :  { %v1452_v4 = vrot.slane %v1450_v62, 4  ;;  %v1466_v32 = vmul.f32 %v4587_v63, %v4965_v14  ;;  %2849 = vmatprep.mubr.bf16.mxu1 %v4975_v15  ;;  %v1725_v58 = vsel %vm1491_vm8, %v1722_v52, %v1724_v56 }
 0x24d   :  { %1423 = vst [vmem:[#allocation3 + $0x60] sm:$0xf0] %v1421_v1  ;;  %v1436_v6 = vpack.c.bf16 %v1435_v2, %v1435_v2 }
 0x24e   :  { %1454 = vst [vmem:[#allocation3 + $0x68] sm:$0xf0] %v1452_v4  ;;  %v1467_v8 = vpack.c.bf16 %v1466_v32, %v1466_v32 }
 0x24f   :  { %1437 = vst [vmem:[#allocation3 + $0x68] sm:$0xf] %v1436_v6 }
 0x250   :  { %1468 = vst [vmem:[#allocation3 + $0x70] sm:$0xf] %v1467_v8 }
 0x253   :  { %2850 = vmatmul.mubr.bf16.gmra.mrb[20].mxu1 %v5044_v3 }
 0x254   :  { %2859 = vmatprep.mubr.bf16.mxu1 %v5004_v25  ;;  %v1623_v12 = vld [vmem:[#allocation3 + $0x60] sm:$0xf0] }
 0x255   :  { %v1629_v5 = vrot.slane %v1623_v12, 4  ;;  %v1700_v40 = vld [vmem:[#allocation3 + $0x60] sm:$0xf0] }
 0x256   :  { %v5051_v39 = vld [vmem:[#allocation3 + $0x68] sm:$0xff]  ;;  %v1706_v43 = vrot.slane %v1700_v40, 4  ;;  %v1962_v40 = vld [vmem:[%s5447_s4] sm:$0x3] }
 0x257   :  { %3012 = vmatprep.mubr.bf16.mxu0 %v5051_v39  ;;  %v5055_v14 = vrot.slane %v5051_v39, 4  ;;  %v5059_v7 = vld [vmem:[#allocation3 + $0x70] sm:$0xff] }
 0x258   :  { %v1625_v22 = vld [vmem:[#allocation3 + $0x70] sm:$0xf] }
 0x259   :  { %v1631_v41 = vsel %vm1491_vm8, %v1629_v5, %v5055_v14  ;;  %v1632_v23 = vrot.slane %v1625_v22, 4  ;;  %v4540_v22 = vld [vmem:[#allocation11 + $0x40] sm:$0xff]  }
 0x25a   :  { %3013 = vmatmul.mubr.bf16.gmra.mrb[40].mxu0 %v1631_v41  ;;  %4089 = vmatprep.subr.bf16.mxu1 %v4540_v22 }
 0x25b   :  { %2860 = vmatmul.mubr.bf16.gmra.mrb[24].mxu1 %v4975_v15  ;;  %3022 = vmatprep.mubr.bf16.mxu0 %v5059_v7  ;;  %v1633_v46 = vsel %vm1491_vm8, %v5055_v14, %v1632_v23  ;;  %v1672_v15 = vld [vmem:[#allocation3 + $0x40] sm:$0xf]  ;;  %v4541_v23 = vld [vmem:[#allocation11] sm:$0xff]  }
 0x25c   :  { %2869 = vmatprep.mubr.bf16.mxu1 %v4994_v57  ;;  %v1679_v26 = vrot.slane %v1672_v15, 4  ;;  %4090 = vmatpush3.bf16.msra.mxu1 %v4541_v23 }
 0x25d   :  { %4091 = vmatprep.subr.bf16.mxu1 %v4542_v9 }
 0x25e   :  { %v1680_v16 = vsel %vm1491_vm8, %v4998_v13, %v1679_v26  ;;  %v1574_v13 = vld [vmem:[#allocation3 + $0x60] sm:$0xff] }
 0x260   :  { %4092 = vmatpush3.bf16.msra.mxu1 %v4543_v54 }
 0x262   :  { %3023 = vmatmul.mubr.bf16.gmra.mrb[44].mxu0 %v1633_v46 }
 0x263   :  { %2870 = vmatmul.mubr.bf16.gmra.mrb[28].mxu1 %v4983_v33  ;;  %3065 = vmatprep.mubr.bf16.mxu0 %v1678_v30  ;;  %v4524_v33 = vld [vmem:[#allocation10 + $0x424] ss:$8 sps:$4 sm:$0xff]   ;;  %v4544_v30 = vld [vmem:[#allocation11 + $0x50] sm:$0xff]  }
 0x264   :  { %2879 = vmatprep.mubr.bf16.mxu1 %v5029_v36  ;;  %4093 = vmatprep.subr.bf16.mxu1 %v4544_v30 }
 0x26a   :  { %3066 = vmatmul.mubr.bf16.vlgmr.msra.gmra.mrb[16].mxu0 %v5004_v25  ;;  %v1693_v25 = vsel %vm1491_vm8, %v1691_v18, %v5023_v60  ;;  %v1708_v60 = vsel %vm1491_vm8, %v1706_v43, %v5055_v14 }
 0x26b   :  { %3147 = vmatpush1.bf16.msra.mxu0 %v4516_v49  ;;  %2880 = vmatmul.mubr.bf16.gmra.mrb[32].mxu1 %v4994_v57 }
 0x26c   :  { %3075 = vmatprep.mubr.bf16.mxu0 %v1680_v16  ;;  %2889 = vmatprep.mubr.bf16.mxu1 %v5019_v10  ;;  %v4546_v16 = vld [vmem:[#allocation11 + $0x58] sm:$0xff]  }
 0x26d   :  { %3148 = vmatprep.subr.bf16.mxu0 %v4521_v27  ;;  %v4545_v27 = vld [vmem:[#allocation11 + $0x10] sm:$0xff]  }
 0x26e   :  { %4094 = vmatpush3.bf16.msra.mxu1 %v4545_v27 }
 0x26f   :  { %3149 = vmatpush1.bf16.msra.mxu0 %v4519_v17  ;;  %v4547_v17 = vld [vmem:[#allocation11 + $0x18] sm:$0xff]   ;;  %4095 = vmatprep.subr.bf16.mxu1 %v4546_v16 }
 0x270   :  { %3150 = vmatprep.subr.bf16.mxu0 %v4524_v33 }
 0x272   :  { %3076 = vmatmul.mubr.bf16.gmra.mrb[20].mxu0 %v4994_v57  ;;  %4096 = vmatpush3.bf16.msra.mxu1 %v4547_v17 }
 0x273   :  { %2890 = vmatmul.mubr.bf16.gmra.mrb[36].mxu1 %v5006_v28  ;;  %3085 = vmatprep.mubr.bf16.mxu0 %v1693_v25  ;;  %v4549_v25 = vld [vmem:[#allocation11 + $0x20] sm:$0xff]  }
 0x274   :  { %2899 = vmatprep.mubr.bf16.mxu1 %v1574_v13  ;;  %3151 = vmatpush1.bf16.msra.mxu0 %v4522_v31 }
 0x275   :  { %3152 = vmatprep.subr.bf16.mxu0 %v4527_v19  ;;  %4097 = vmatprep.subr.bf16.mxu1 %v4548_v61 }
 0x276   :  { %4098 = vmatpush3.bf16.msra.mxu1 %v4549_v25 }
 0x278   :  { %3153 = vmatpush1.bf16.msra.mxu0 %v4525_v20 }
 0x279   :  { %3154 = vmatprep.subr.bf16.mxu0 %v4530_v21 }
 0x27a   :  { %3086 = vmatmul.mubr.bf16.gmra.mrb[24].mxu0 %v5029_v36  ;;  %v1702_v36 = vld [vmem:[#allocation3 + $0x70] sm:$0xf] }
 0x27b   :  { %2900 = vmatmul.mubr.bf16.gmra.mrb[40].mxu1 %v5019_v10  ;;  %3095 = vmatprep.mubr.bf16.mxu0 %v1695_v35  ;;  %v1709_v47 = vrot.slane %v1702_v36, 4 }
 0x27c   :  { %2909 = vmatprep.mubr.bf16.mxu1 %v5051_v39  ;;  %3155 = vmatpush1.bf16.msra.mxu0 %v4528_v29 }
 0x27d   :  { %3156 = vmatprep.subr.bf16.mxu0 %v4533_v34  ;;  %v1710_v50 = vsel %vm1491_vm8, %v5055_v14, %v1709_v47  ;;  %v1964_v34 = vlaneseq }
 0x27f   :  { %v1965_v35 = vshrl.u32 %v1964_v34, 7 }
 0x280   :  { %3157 = vmatpush1.bf16.msra.mxu0 %v4531_v38 }
 0x281   :  { %3158 = vmatprep.subr.bf16.mxu0 %v4536_v42  ;;  %v1966_v38 = vsub.s32 0, %v1965_v35  ;;  %v1970_v42 = vsub.s32 1, %v1965_v35 }
 0x282   :  { %3096 = vmatmul.mubr.bf16.gmra.mrb[28].mxu0 %v5019_v10 }
 0x283   :  { %2910 = vmatmul.mubr.bf16.gmra.mrb[44].mxu1 %v5031_v37  ;;  %3105 = vmatprep.mubr.bf16.mxu0 %v1708_v60  ;;  %v5179_v43 = vrot.slane %v1962_v40, %v1966_v38 }
 0x284   :  { %3159 = vmatpush1.bf16.msra.mxu0 %v4534_v0  ;;  %v5181_v0 = vrot.slane %v1962_v40, %v1970_v42 }
 0x285   :  { %3160 = vmatprep.subr.bf16.mxu0 %v4539_v44 }
 0x288   :  { %3161 = vmatpush1.bf16.msra.mxu0 %v4537_v45 }
 0x28a   :  { %3106 = vmatmul.mubr.bf16.gmra.mrb[32].mxu0 %v1574_v13  ;;  %v4550_v13 = vld [vmem:[#allocation11 + $0x68] sm:$0xff]  }
 0x28b   :  { %3115 = vmatprep.mubr.bf16.mxu0 %v1710_v50  ;;  %4099 = vmatprep.subr.bf16.mxu1 %v4550_v13 }
 0x28c   :  { %4100 = vmatpush3.bf16.msra.mxu1 %v4551_v11 }
 0x292   :  { %3116 = vmatmul.mubr.bf16.gmra.mrb[36].mxu0 %v5051_v39 }
 0x293   :  { %3125 = vmatprep.mubr.bf16.mxu0 %v1723_v53 }
 0x29a   :  { %3126 = vmatmul.mubr.bf16.gmra.mrb[40].mxu0 %v5044_v3 }
 0x29b   :  { %3135 = vmatprep.mubr.bf16.mxu0 %v1725_v58 }
 0x2a2   :  { %3136 = vmatmul.mubr.bf16.gmra.mrb[44].mxu0 %v5044_v3 }
 0x2a3   :  { %3178 = vmatprep.mubr.bf16.mxu0 %v5044_v3 }
 0x2aa   :  { %3179 = vmatmul.mubr.bf16.vlgmr.msra.gmra.mrb[16].mxu0 %v4994_v57 }
 0x2ab   :  { %3188 = vmatprep.mubr.bf16.mxu0 %v5044_v3 }
 0x2b2   :  { %3189 = vmatmul.mubr.bf16.gmra.mrb[20].mxu0 %v5006_v28 }
 0x2b3   :  { %3198 = vmatprep.mubr.bf16.mxu0 %v5044_v3 }
 0x2ba   :  { %3199 = vmatmul.mubr.bf16.gmra.mrb[24].mxu0 %v5019_v10 }
 0x2bb   :  { %3208 = vmatprep.mubr.bf16.mxu0 %v5044_v3 }
 0x2c2   :  { %3209 = vmatmul.mubr.bf16.gmra.mrb[28].mxu0 %v5031_v37 }
 0x2c3   :  { %3218 = vmatprep.mubr.bf16.mxu0 %v5044_v3 }
 0x2ca   :  { %3219 = vmatmul.mubr.bf16.gmra.mrb[32].mxu0 %v5051_v39 }
 0x2cb   :  { %3228 = vmatprep.mubr.bf16.mxu0 %v5044_v3 }
 0x2d2   :  { %3229 = vmatmul.mubr.bf16.gmra.mrb[36].mxu0 %v5059_v7 }
 0x2d3   :  { %3238 = vmatprep.mubr.bf16.mxu0 %v5044_v3 }
 0x2da   :  { %3239 = vmatmul.mubr.bf16.gmra.mrb[40].mxu0 %v5044_v3 }
 0x2db   :  { %3248 = vmatprep.mubr.bf16.mxu0 %v5044_v3 }
 0x2e2   :  { %3249 = vmatmul.mubr.bf16.gmra.mrb[44].mxu0 %v5044_v3 }
 0x31e   :  { %v5112_v57 = vpop.f32.mrb[16].mxu1 }
 0x31f   :  { %v5114_v28 = vpop.f32.mrb[17].mxu1  ;;  %v4153_v44 = vadd.f32 %v5112_v57, %v5179_v43 }
 0x320   :  { %v5116_v10 = vpop.f32.mrb[18].mxu1  ;;  %v4155_v60 = vadd.f32 %v5114_v28, %v5181_v0 }
 0x321   :  { %v5118_v37 = vpop.f32.mrb[19].mxu1  ;;  %v4157_v45 = vadd.f32 %v5116_v10, %v5179_v43 }
 0x322   :  { %v4159_v50 = vadd.f32 %v5118_v37, %v5181_v0 }
 0x326   :  { %v5120_v59 = vpop.f32.mrb[20].mxu1 }
 0x327   :  { %v5122_v62 = vpop.f32.mrb[21].mxu1  ;;  %v4161_v9 = vadd.f32 %v5120_v59, %v5179_v43 }
 0x328   :  { %v5124_v63 = vpop.f32.mrb[22].mxu1  ;;  %v4163_v27 = vadd.f32 %v5122_v62, %v5181_v0 }
 0x329   :  { %v5126_v1 = vpop.f32.mrb[23].mxu1  ;;  %v4165_v25 = vadd.f32 %v5124_v63, %v5179_v43 }
 0x32a   :  { %v4167_v35 = vadd.f32 %v5126_v1, %v5181_v0 }
 0x32e   :  { %v5128_v2 = vpop.f32.mrb[24].mxu1 }
 0x32f   :  { %v5130_v4 = vpop.f32.mrb[25].mxu1 }
 0x330   :  { %v5132_v3 = vpop.f32.mrb[26].mxu1 }
 0x331   :  { %v5134_v32 = vpop.f32.mrb[27].mxu1 }
 0x336   :  { %v5136_v6 = vpop.f32.mrb[28].mxu1 }
 0x337   :  { %v5138_v8 = vpop.f32.mrb[29].mxu1 }
 0x338   :  { %v5140_v12 = vpop.f32.mrb[30].mxu1 }
 0x339   :  { %v5142_v39 = vpop.f32.mrb[31].mxu1 }
 0x33e   :  { %v5144_v5 = vpop.f32.mrb[32].mxu1 }
 0x33f   :  { %v5146_v14 = vpop.f32.mrb[33].mxu1 }
 0x340   :  { %v5148_v41 = vpop.f32.mrb[34].mxu1 }
 0x341   :  { %v5150_v7 = vpop.f32.mrb[35].mxu1 }
 0x346   :  { %v5152_v46 = vpop.f32.mrb[36].mxu1 }
 0x347   :  { %v5154_v15 = vpop.f32.mrb[37].mxu1 }
 0x348   :  { %v5156_v49 = vpop.f32.mrb[38].mxu1 }
 0x349   :  { %v5158_v26 = vpop.f32.mrb[39].mxu1 }
 0x34e   :  { %v5160_v33 = vpop.f32.mrb[40].mxu1 }
 0x34f   :  { %v5162_v18 = vpop.f32.mrb[41].mxu1 }
 0x350   :  { %v5164_v31 = vpop.f32.mrb[42].mxu1 }
 0x351   :  { %v5166_v19 = vpop.f32.mrb[43].mxu1 }
 0x356   :  { %v5168_v20 = vpop.f32.mrb[44].mxu1 }
 0x357   :  { %v5170_v21 = vpop.f32.mrb[45].mxu1 }
 0x358   :  { %v5172_v24 = vpop.f32.mrb[46].mxu1 }
 0x359   :  { %v5174_v29 = vpop.f32.mrb[47].mxu1 }
 0x37d   :  { %v3180_v36 = vpop.f32.mrb[16].mxu0 }
 0x37e   :  { %v4154_v47 = vadd.f32 %v4153_v44, %v3180_v36  ;;  %v3182_v48 = vpop.f32.mrb[17].mxu0 }
 0x37f   :  { %v4156_v51 = vadd.f32 %v4155_v60, %v3182_v48  ;;  %v3184_v52 = vpop.f32.mrb[18].mxu0 }
 0x380   :  { %vm3259_vm1 = vcmp.ge.f32.partialorder %v4154_v47, 0.0  ;;  %v3291_v53 = vmul.f32 0.01, %v4154_v47  ;;  %v4158_v55 = vadd.f32 %v4157_v45, %v3184_v52  ;;  %v3186_v56 = vpop.f32.mrb[19].mxu0 }
 0x381   :  { %vm3260_vm2 = vcmp.ge.f32.partialorder %v4156_v51, 0.0  ;;  %v3292_v58 = vmul.f32 0.01, %v4156_v51  ;;  %v4160_v57 = vadd.f32 %v4159_v50, %v3186_v56 }
 0x382   :  { %vm3261_vm3 = vcmp.ge.f32.partialorder %v4158_v55, 0.0  ;;  %v3293_v28 = vmul.f32 0.01, %v4158_v55  ;;  %v5191_v22 = vsel %vm3259_vm1, %v4154_v47, %v3291_v53 }
 0x383   :  { %vm3262_vm4 = vcmp.ge.f32.partialorder %v4160_v57, 0.0  ;;  %v3294_v10 = vmul.f32 0.01, %v4160_v57  ;;  %v5193_v23 = vsel %vm3260_vm2, %v4156_v51, %v3292_v58  ;;  %v3355_v37 = vmul.f32 %v5191_v22, %v5191_v22 }
 0x384   :  { %v3356_v54 = vmul.f32 %v5193_v23, %v5193_v23  ;;  %v5201_v30 = vsel %vm3261_vm3, %v4158_v55, %v3293_v28  ;;  %v4169_v51 = vadd.f32 %v5128_v2, %v5179_v43  ;;  %v4171_v55 = vadd.f32 %v5130_v4, %v5181_v0 }
 0x385   :  { %v3190_v16 = vpop.f32.mrb[20].mxu0  ;;  %v5205_v17 = vsel %vm3262_vm4, %v4160_v57, %v3294_v10  ;;  %v3357_v61 = vmul.f32 %v5201_v30, %v5201_v30  ;;  %v4173_v28 = vadd.f32 %v5132_v3, %v5179_v43 }
 0x386   :  { %v4162_v13 = vadd.f32 %v4161_v9, %v3190_v16  ;;  %v3192_v11 = vpop.f32.mrb[21].mxu0  ;;  %v3387_v59 = vadd.f32 %v3356_v54, %v3355_v37  ;;  %v3358_v34 = vmul.f32 %v5205_v17, %v5205_v17  ;;  %v4175_v54 = vadd.f32 %v5134_v32, %v5181_v0 }
 0x387   :  { %v4164_v38 = vadd.f32 %v4163_v27, %v3192_v11  ;;  %v3194_v62 = vpop.f32.mrb[22].mxu0 }
 0x388   :  { %vm3263_vm5 = vcmp.ge.f32.partialorder %v4162_v13, 0.0  ;;  %v3295_v40 = vmul.f32 0.01, %v4162_v13  ;;  %v4166_v42 = vadd.f32 %v4165_v25, %v3194_v62  ;;  %v3196_v44 = vpop.f32.mrb[23].mxu0  ;;  %3388 = vadd.xlane.f32.xlu0 %v3387_v59  ;;  %v3390_v60 = vadd.f32 %v3358_v34, %v3357_v61 }
 0x389   :  { %vm3264_vm6 = vcmp.ge.f32.partialorder %v4164_v38, 0.0  ;;  %v3296_v36 = vmul.f32 0.01, %v4164_v38  ;;  %v4168_v63 = vadd.f32 %v4167_v35, %v3196_v44  ;;  %v4177_v62 = vadd.f32 %v5136_v6, %v5179_v43 }
 0x38a   :  { %vm3265_vm7 = vcmp.ge.f32.partialorder %v4166_v42, 0.0  ;;  %v3297_v45 = vmul.f32 0.01, %v4166_v42  ;;  %3391 = vadd.xlane.f32.xlu1 %v3390_v60  ;;  %v5215_v47 = vsel %vm3263_vm5, %v4162_v13, %v3295_v40  ;;  %v4179_v44 = vadd.f32 %v5138_v8, %v5181_v0 }
 0x38b   :  { %vm3266_vm8 = vcmp.ge.f32.partialorder %v4168_v63, 0.0  ;;  %v3298_v48 = vmul.f32 0.01, %v4168_v63  ;;  %v5217_v50 = vsel %vm3264_vm6, %v4164_v38, %v3296_v36  ;;  %v3359_v1 = vmul.f32 %v5215_v47, %v5215_v47 }
 0x38c   :  { %v3360_v52 = vmul.f32 %v5217_v50, %v5217_v50  ;;  %v5225_v53 = vsel %vm3265_vm7, %v4166_v42, %v3297_v45  ;;  %v4181_v45 = vadd.f32 %v5140_v12, %v5179_v43 }
 0x38d   :  { %v3200_v56 = vpop.f32.mrb[24].mxu0  ;;  %v5229_v58 = vsel %vm3266_vm8, %v4168_v63, %v3298_v48  ;;  %v3361_v57 = vmul.f32 %v5225_v53, %v5225_v53 }
 0x38e   :  { %v4170_v10 = vadd.f32 %v4169_v51, %v3200_v56  ;;  %v3202_v37 = vpop.f32.mrb[25].mxu0  ;;  %v3393_v2 = vadd.f32 %v3360_v52, %v3359_v1  ;;  %v3362_v9 = vmul.f32 %v5229_v58, %v5229_v58  ;;  %v4183_v52 = vadd.f32 %v5142_v39, %v5181_v0 }
 0x38f   :  { %v4172_v27 = vadd.f32 %v4171_v55, %v3202_v37  ;;  %v3204_v4 = vpop.f32.mrb[26].mxu0 }
 0x390   :  { %vm3267_vm9 = vcmp.ge.f32.partialorder %v4170_v10, 0.0  ;;  %v3299_v16 = vmul.f32 0.01, %v4170_v10  ;;  %v4174_v61 = vadd.f32 %v4173_v28, %v3204_v4  ;;  %v3206_v25 = vpop.f32.mrb[27].mxu0  ;;  %3394 = vadd.xlane.f32.xlu0 %v3393_v2  ;;  %v3396_v13 = vadd.f32 %v3362_v9, %v3361_v57 }
 0x391   :  { %vm3268_vm10 = vcmp.ge.f32.partialorder %v4172_v27, 0.0  ;;  %v3300_v11 = vmul.f32 0.01, %v4172_v27  ;;  %v4176_v3 = vadd.f32 %v4175_v54, %v3206_v25  ;;  %v4185_v4 = vadd.f32 %v5144_v5, %v5179_v43 }
 0x392   :  { %vm3269_vm11 = vcmp.ge.f32.partialorder %v4174_v61, 0.0  ;;  %v3301_v59 = vmul.f32 0.01, %v4174_v61  ;;  %3397 = vadd.xlane.f32.xlu1 %v3396_v13  ;;  %v5239_v34 = vsel %vm3267_vm9, %v4170_v10, %v3299_v16  ;;  %v4187_v25 = vadd.f32 %v5146_v14, %v5181_v0 }
 0x393   :  { %vm3270_vm12 = vcmp.ge.f32.partialorder %v4176_v3, 0.0  ;;  %v3302_v35 = vmul.f32 0.01, %v4176_v3  ;;  %v5241_v38 = vsel %vm3268_vm10, %v4172_v27, %v3300_v11  ;;  %v3363_v32 = vmul.f32 %v5239_v34, %v5239_v34 }
 0x394   :  { %v3364_v40 = vmul.f32 %v5241_v38, %v5241_v38  ;;  %v5249_v42 = vsel %vm3269_vm11, %v4174_v61, %v3301_v59  ;;  %v4189_v59 = vadd.f32 %v5148_v41, %v5179_v43 }
 0x395   :  { %v3210_v60 = vpop.f32.mrb[28].mxu0  ;;  %v5253_v36 = vsel %vm3270_vm12, %v4176_v3, %v3302_v35  ;;  %v3365_v63 = vmul.f32 %v5249_v42, %v5249_v42 }
 0x396   :  { %v4178_v48 = vadd.f32 %v4177_v62, %v3210_v60  ;;  %v3212_v1 = vpop.f32.mrb[29].mxu0  ;;  %v3399_v6 = vadd.f32 %v3364_v40, %v3363_v32  ;;  %v3366_v51 = vmul.f32 %v5253_v36, %v5253_v36  ;;  %v4191_v40 = vadd.f32 %v5150_v7, %v5181_v0 }
 0x397   :  { %v4180_v55 = vadd.f32 %v4179_v44, %v3212_v1  ;;  %v3214_v8 = vpop.f32.mrb[30].mxu0 }
 0x398   :  { %vm3271_vm13 = vcmp.ge.f32.partialorder %v4178_v48, 0.0  ;;  %v3303_v56 = vmul.f32 0.01, %v4178_v48  ;;  %v4182_v57 = vadd.f32 %v4181_v45, %v3214_v8  ;;  %v3216_v28 = vpop.f32.mrb[31].mxu0  ;;  %3400 = vadd.xlane.f32.xlu0 %v3399_v6  ;;  %v3402_v10 = vadd.f32 %v3366_v51, %v3365_v63 }
 0x399   :  { %vm3272_vm14 = vcmp.ge.f32.partialorder %v4180_v55, 0.0  ;;  %v3304_v37 = vmul.f32 0.01, %v4180_v55  ;;  %v4184_v12 = vadd.f32 %v4183_v52, %v3216_v28  ;;  %v4193_v8 = vadd.f32 %v5152_v46, %v5179_v43 }
 0x39a   :  { %vm3273_vm15 = vcmp.ge.f32.partialorder %v4182_v57, 0.0  ;;  %v3305_v2 = vmul.f32 0.01, %v4182_v57  ;;  %3403 = vadd.xlane.f32.xlu1 %v3402_v10  ;;  %v5263_v9 = vsel %vm3271_vm13, %v4178_v48, %v3303_v56  ;;  %v4195_v28 = vadd.f32 %v5154_v15, %v5181_v0 }
 0x39b   :  { %vm3274_vm0 = vcmp.ge.f32.partialorder %v4184_v12, 0.0  ;;  %v3306_v54 = vmul.f32 0.01, %v4184_v12  ;;  %v5265_v27 = vsel %vm3272_vm14, %v4180_v55, %v3304_v37  ;;  %v3367_v39 = vmul.f32 %v5263_v9, %v5263_v9 }
 0x39c   :  { %v3368_v16 = vmul.f32 %v5265_v27, %v5265_v27  ;;  %v5273_v61 = vsel %vm3273_vm15, %v4182_v57, %v3305_v2  ;;  %v4552_v2 = vld [vmem:[#allocation11 + $0x70] sm:$0xff]   ;;  %v4199_v15 = vadd.f32 %v5158_v26, %v5181_v0 }
 0x39d   :  { %v3220_v13 = vpop.f32.mrb[32].mxu0  ;;  %v5277_v11 = vsel %vm3274_vm0, %v4184_v12, %v3306_v54  ;;  %v3369_v3 = vmul.f32 %v5273_v61, %v5273_v61  ;;  %v4197_v54 = vadd.f32 %v5156_v49, %v5179_v43  ;;  %4101 = vmatprep.subr.bf16.mxu1 %v4552_v2  ;;  %v4207_v2 = vadd.f32 %v5166_v19, %v5181_v0 }
 0x39e   :  { %v4186_v35 = vadd.f32 %v4185_v4, %v3220_v13  ;;  %v3222_v32 = vpop.f32.mrb[33].mxu0  ;;  %v3405_v5 = vadd.f32 %v3368_v16, %v3367_v39  ;;  %v3370_v62 = vmul.f32 %v5277_v11, %v5277_v11 }
 0x39f   :  { %v4188_v44 = vadd.f32 %v4187_v25, %v3222_v32  ;;  %v3224_v14 = vpop.f32.mrb[34].mxu0  ;;  %v4553_v25 = vld [vmem:[#allocation11 + $0x30] sm:$0xff]  }
 0x3a0   :  { %vm3275_vm1 = vcmp.ge.f32.partialorder %v4186_v35, 0.0  ;;  %v3307_v60 = vmul.f32 0.01, %v4186_v35  ;;  %v4190_v63 = vadd.f32 %v4189_v59, %v3224_v14  ;;  %v3226_v45 = vpop.f32.mrb[35].mxu0  ;;  %3406 = vadd.xlane.f32.xlu0 %v3405_v5  ;;  %v3408_v48 = vadd.f32 %v3370_v62, %v3369_v3  ;;  %v4554_v59 = vld [vmem:[#allocation11 + $0x78] sm:$0xff]   ;;  %4102 = vmatpush3.bf16.msra.mxu1 %v4553_v25 }
 0x3a1   :  { %vm3276_vm2 = vcmp.ge.f32.partialorder %v4188_v44, 0.0  ;;  %v3308_v1 = vmul.f32 0.01, %v4188_v44  ;;  %v4192_v41 = vadd.f32 %v4191_v40, %v3226_v45  ;;  %v4555_v62 = vld [vmem:[#allocation11 + $0x38] sm:$0xff]   ;;  %4103 = vmatprep.subr.bf16.mxu1 %v4554_v59 }
 0x3a2   :  { %vm3277_vm3 = vcmp.ge.f32.partialorder %v4190_v63, 0.0  ;;  %v3309_v6 = vmul.f32 0.01, %v4190_v63  ;;  %3409 = vadd.xlane.f32.xlu1 %v3408_v48  ;;  %v5287_v51 = vsel %vm3275_vm1, %v4186_v35, %v3307_v60  ;;  %v4201_v48 = vadd.f32 %v5160_v33, %v5179_v43 }
 0x3a3   :  { %vm3278_vm4 = vcmp.ge.f32.partialorder %v4192_v41, 0.0  ;;  %v3310_v52 = vmul.f32 0.01, %v4192_v41  ;;  %v5289_v55 = vsel %vm3276_vm2, %v4188_v44, %v3308_v1  ;;  %v3371_v7 = vmul.f32 %v5287_v51, %v5287_v51 }
 0x3a4   :  { %v3372_v56 = vmul.f32 %v5289_v55, %v5289_v55  ;;  %v5297_v57 = vsel %vm3277_vm3, %v4190_v63, %v3309_v6  ;;  %4104 = vmatpush3.bf16.msra.mxu1 %v4555_v62  ;;  %v4203_v6 = vadd.f32 %v5162_v18, %v5181_v0 }
 0x3a5   :  { %v3230_v10 = vpop.f32.mrb[36].mxu0  ;;  %v5301_v37 = vsel %vm3278_vm4, %v4192_v41, %v3310_v52  ;;  %v3373_v12 = vmul.f32 %v5297_v57, %v5297_v57 }
 0x3a6   :  { %v4194_v39 = vadd.f32 %v4193_v8, %v3230_v10  ;;  %v3232_v46 = vpop.f32.mrb[37].mxu0  ;;  %v3411_v4 = vadd.f32 %v3372_v56, %v3371_v7  ;;  %v3374_v16 = vmul.f32 %v5301_v37, %v5301_v37  ;;  %v4205_v56 = vadd.f32 %v5164_v31, %v5179_v43 }
 0x3a7   :  { %v4196_v13 = vadd.f32 %v4195_v28, %v3232_v46  ;;  %v3234_v3 = vpop.f32.mrb[38].mxu0 }
 0x3a8   :  { %vm3279_vm5 = vcmp.ge.f32.partialorder %v4194_v39, 0.0  ;;  %v3311_v35 = vmul.f32 0.01, %v4194_v39  ;;  %v4198_v32 = vadd.f32 %v4197_v54, %v3234_v3  ;;  %v3236_v5 = vpop.f32.mrb[39].mxu0  ;;  %3412 = vadd.xlane.f32.xlu0 %v3411_v4  ;;  %v3414_v49 = vadd.f32 %v3374_v16, %v3373_v12 }
 0x3a9   :  { %vm3280_vm6 = vcmp.ge.f32.partialorder %v4196_v13, 0.0  ;;  %v3312_v40 = vmul.f32 0.01, %v4196_v13  ;;  %v4200_v44 = vadd.f32 %v4199_v15, %v3236_v5 }
 0x3aa   :  { %vm3281_vm7 = vcmp.ge.f32.partialorder %v4198_v32, 0.0  ;;  %v3313_v14 = vmul.f32 0.01, %v4198_v32  ;;  %3415 = vadd.xlane.f32.xlu1 %v3414_v49  ;;  %v5311_v26 = vsel %vm3279_vm5, %v4194_v39, %v3311_v35  ;;  %v4209_v35 = vadd.f32 %v5168_v20, %v5179_v43 }
 0x3ab   :  { %vm3282_vm8 = vcmp.ge.f32.partialorder %v4200_v44, 0.0  ;;  %v3314_v60 = vmul.f32 0.01, %v4200_v44  ;;  %v5313_v63 = vsel %vm3280_vm6, %v4196_v13, %v3312_v40  ;;  %v3375_v45 = vmul.f32 %v5311_v26, %v5311_v26 }
 0x3ac   :  { %v3376_v1 = vmul.f32 %v5313_v63, %v5313_v63  ;;  %v5321_v41 = vsel %vm3281_vm7, %v4198_v32, %v3313_v14  ;;  %v4211_v49 = vadd.f32 %v5170_v21, %v5181_v0  ;;  %v4213_v14 = vadd.f32 %v5172_v24, %v5179_v43 }
 0x3ad   :  { %v3240_v52 = vpop.f32.mrb[40].mxu0  ;;  %v5325_v7 = vsel %vm3282_vm8, %v4200_v44, %v3314_v60  ;;  %v3377_v8 = vmul.f32 %v5321_v41, %v5321_v41 }
 0x3ae   :  { %v4202_v28 = vadd.f32 %v4201_v48, %v3240_v52  ;;  %v3242_v33 = vpop.f32.mrb[41].mxu0  ;;  %v3417_v10 = vadd.f32 %v3376_v1, %v3375_v45  ;;  %v3378_v12 = vmul.f32 %v5325_v7, %v5325_v7  ;;  %v4215_v1 = vadd.f32 %v5174_v29, %v5181_v0 }
 0x3af   :  { %v4204_v54 = vadd.f32 %v4203_v6, %v3242_v33  ;;  %v3244_v18 = vpop.f32.mrb[42].mxu0 }
 0x3b0   :  { %vm3283_vm9 = vcmp.ge.f32.partialorder %v4202_v28, 0.0  ;;  %v3315_v39 = vmul.f32 0.01, %v4202_v28  ;;  %v4206_v46 = vadd.f32 %v4205_v56, %v3244_v18  ;;  %v3246_v4 = vpop.f32.mrb[43].mxu0  ;;  %3418 = vadd.xlane.f32.xlu0 %v3417_v10  ;;  %v3420_v16 = vadd.f32 %v3378_v12, %v3377_v8 }
 0x3b1   :  { %vm3284_vm10 = vcmp.ge.f32.partialorder %v4204_v54, 0.0  ;;  %v3316_v25 = vmul.f32 0.01, %v4204_v54  ;;  %v4208_v31 = vadd.f32 %v4207_v2, %v3246_v4 }
 0x3b2   :  { %vm3285_vm11 = vcmp.ge.f32.partialorder %v4206_v46, 0.0  ;;  %v3317_v15 = vmul.f32 0.01, %v4206_v46  ;;  %3421 = vadd.xlane.f32.xlu1 %v3420_v16  ;;  %v5335_v13 = vsel %vm3283_vm9, %v4202_v28, %v3315_v39 }
 0x3b3   :  { %vm3286_vm12 = vcmp.ge.f32.partialorder %v4208_v31, 0.0  ;;  %v3318_v3 = vmul.f32 0.01, %v4208_v31  ;;  %v5337_v59 = vsel %vm3284_vm10, %v4204_v54, %v3316_v25  ;;  %v3379_v19 = vmul.f32 %v5335_v13, %v5335_v13 }
 0x3b4   :  { %v3380_v32 = vmul.f32 %v5337_v59, %v5337_v59  ;;  %v5345_v5 = vsel %vm3285_vm11, %v4206_v46, %v3317_v15 }
 0x3b5   :  { %v3250_v62 = vpop.f32.mrb[44].mxu0  ;;  %v5349_v40 = vsel %vm3286_vm12, %v4208_v31, %v3318_v3  ;;  %v3381_v44 = vmul.f32 %v5345_v5, %v5345_v5 }
 0x3b6   :  { %v4210_v60 = vadd.f32 %v4209_v35, %v3250_v62  ;;  %v3252_v45 = vpop.f32.mrb[45].mxu0  ;;  %v3423_v20 = vadd.f32 %v3380_v32, %v3379_v19  ;;  %v3382_v48 = vmul.f32 %v5349_v40, %v5349_v40 }
 0x3b7   :  { %v4212_v6 = vadd.f32 %v4211_v49, %v3252_v45  ;;  %v3254_v21 = vpop.f32.mrb[46].mxu0 }
 0x3b8   :  { %vm3287_vm13 = vcmp.ge.f32.partialorder %v4210_v60, 0.0  ;;  %v3319_v52 = vmul.f32 0.01, %v4210_v60  ;;  %v4214_v8 = vadd.f32 %v4213_v14, %v3254_v21  ;;  %v3256_v56 = vpop.f32.mrb[47].mxu0  ;;  %3424 = vadd.xlane.f32.xlu0 %v3423_v20  ;;  %v3426_v28 = vadd.f32 %v3382_v48, %v3381_v44 }
 0x3b9   :  { %vm3288_vm14 = vcmp.ge.f32.partialorder %v4212_v6, 0.0  ;;  %v3320_v33 = vmul.f32 0.01, %v4212_v6  ;;  %v4216_v24 = vadd.f32 %v4215_v1, %v3256_v56 }
 0x3ba   :  { %vm3289_vm15 = vcmp.ge.f32.partialorder %v4214_v8, 0.0  ;;  %v3321_v43 = vmul.f32 0.01, %v4214_v8  ;;  %3427 = vadd.xlane.f32.xlu1 %v3426_v28  ;;  %v5359_v10 = vsel %vm3287_vm13, %v4210_v60, %v3319_v52 }
 0x3bb   :  { %vm3290_vm0 = vcmp.ge.f32.partialorder %v4216_v24, 0.0  ;;  %v3322_v12 = vmul.f32 0.01, %v4216_v24  ;;  %v5361_v2 = vsel %vm3288_vm14, %v4212_v6, %v3320_v33  ;;  %v3383_v29 = vmul.f32 %v5359_v10, %v5359_v10 }
 0x3bc   :  { %v3384_v0 = vmul.f32 %v5361_v2, %v5361_v2  ;;  %v5367_v54 = vsel %vm3289_vm15, %v4214_v8, %v3321_v43 }
 0x3bd   :  { %v5369_v18 = vsel %vm3290_vm0, %v4216_v24, %v3322_v12  ;;  %v3385_v39 = vmul.f32 %v5367_v54, %v5367_v54 }
 0x3be   :  { %v3429_v46 = vadd.f32 %v3384_v0, %v3383_v29  ;;  %v3386_v4 = vmul.f32 %v5369_v18, %v5369_v18 }
 0x3c0   :  { %3430 = vadd.xlane.f32.xlu0 %v3429_v46  ;;  %v3432_v16 = vadd.f32 %v3386_v4, %v3385_v39 }
 0x3c2   :  { %3433 = vadd.xlane.f32.xlu1 %v3432_v16 }
 0x415   :  { %v3389_v25 = vpop.xlane.xlu0 %3388 }
 0x416   :  { %v3436_v31 = vmul.f32 0.00390625, %v3389_v25 }
 0x417   :  { %v3392_v15 = vpop.xlane.xlu1 %3391 }
 0x418   :  { %v3452_v3 = vadd.f32 1e-08, %v3436_v31  ;;  %v3437_v19 = vmul.f32 0.00390625, %v3392_v15 }
 0x41a   :  { %4588 = vrsqrt.f32 %v3452_v3  ;;  %v3453_v35 = vadd.f32 1e-08, %v3437_v19 }
 0x41c   :  { %4590 = vrsqrt.f32 %v3453_v35 }
 0x41d   :  { %v3395_v32 = vpop.xlane.xlu0 %3394 }
 0x41e   :  { %v3438_v49 = vmul.f32 0.00390625, %v3395_v32 }
 0x41f   :  { %v3398_v62 = vpop.xlane.xlu1 %3397 }
 0x420   :  { %v3454_v44 = vadd.f32 1e-08, %v3438_v49  ;;  %v3439_v14 = vmul.f32 0.00390625, %v3398_v62 }
 0x422   :  { %4592 = vrsqrt.f32 %v3454_v44  ;;  %v3455_v60 = vadd.f32 1e-08, %v3439_v14 }
 0x424   :  { %v4589_v45 = vpop.eup %4588  ;;  %4594 = vrsqrt.f32 %v3455_v60 }
 0x425   :  { %v3401_v20 = vpop.xlane.xlu0 %3400  ;;  %v3484_v6 = vmul.f32 %v4589_v45, %v5191_v22  ;;  %v3485_v8 = vmul.f32 %v4589_v45, %v5193_v23 }
 0x426   :  { %v4591_v48 = vpop.eup %4590  ;;  %v3440_v1 = vmul.f32 0.00390625, %v3401_v20 }
 0x427   :  { %v3486_v21 = vmul.f32 %v4591_v48, %v5201_v30  ;;  %v3404_v52 = vpop.xlane.xlu1 %3403  ;;  %v3487_v56 = vmul.f32 %v4591_v48, %v5205_v17 }
 0x428   :  { %v3456_v28 = vadd.f32 1e-08, %v3440_v1  ;;  %v3441_v33 = vmul.f32 0.00390625, %v3404_v52 }
 0x429   :  { %v3517_v24 = vpack.c.bf16 %v3487_v56, %v3485_v8  ;;  %v3516_v43 = vpack.c.bf16 %v3486_v21, %v3484_v6 }
 0x42a   :  { %4596 = vrsqrt.f32 %v3456_v28  ;;  %v3457_v12 = vadd.f32 1e-08, %v3441_v33 }
 0x42b   :  { %3699 = vmatprep.mubr.bf16.mxu1 %v3517_v24 }
 0x42c   :  { %v4593_v29 = vpop.eup %4592  ;;  %4598 = vrsqrt.f32 %v3457_v12  ;;  %3700 = vmatmul.mubr.bf16.vlgmr.msra.gmra.mrb[48].mxu1 %v3516_v43 }
 0x42d   :  { %v3407_v0 = vpop.xlane.xlu0 %3406  ;;  %v3489_v30 = vmul.f32 %v4593_v29, %v5217_v50  ;;  %v3488_v17 = vmul.f32 %v4593_v29, %v5215_v47 }
 0x42e   :  { %v4595_v39 = vpop.eup %4594  ;;  %v3442_v22 = vmul.f32 0.00390625, %v3407_v0 }
 0x42f   :  { %v3410_v46 = vpop.xlane.xlu1 %3409  ;;  %v3491_v23 = vmul.f32 %v4595_v39, %v5229_v58  ;;  %v3490_v4 = vmul.f32 %v4595_v39, %v5225_v53 }
 0x430   :  { %v3458_v16 = vadd.f32 1e-08, %v3442_v22  ;;  %v3443_v25 = vmul.f32 0.00390625, %v3410_v46 }
 0x431   :  { %v3519_v31 = vpack.c.bf16 %v3491_v23, %v3489_v30  ;;  %v3518_v15 = vpack.c.bf16 %v3490_v4, %v3488_v17 }
 0x432   :  { %4600 = vrsqrt.f32 %v3458_v16  ;;  %v3459_v3 = vadd.f32 1e-08, %v3443_v25 }
 0x433   :  { %3707 = vmatprep.mubr.bf16.mxu1 %v3519_v31 }
 0x434   :  { %v4597_v19 = vpop.eup %4596  ;;  %4602 = vrsqrt.f32 %v3459_v3  ;;  %3708 = vmatmul.mubr.bf16.gmra.mrb[52].mxu1 %v3518_v15 }
 0x435   :  { %v3413_v35 = vpop.xlane.xlu0 %3412  ;;  %v3493_v58 = vmul.f32 %v4597_v19, %v5241_v38  ;;  %v3492_v53 = vmul.f32 %v4597_v19, %v5239_v34 }
 0x436   :  { %v4599_v32 = vpop.eup %4598  ;;  %v3444_v49 = vmul.f32 0.00390625, %v3413_v35 }
 0x437   :  { %v3416_v50 = vpop.xlane.xlu1 %3415  ;;  %v3495_v47 = vmul.f32 %v4599_v32, %v5253_v36  ;;  %v3494_v62 = vmul.f32 %v4599_v32, %v5249_v42 }
 0x438   :  { %v3460_v44 = vadd.f32 1e-08, %v3444_v49  ;;  %v3445_v14 = vmul.f32 0.00390625, %v3416_v50 }
 0x439   :  { %v3521_v60 = vpack.c.bf16 %v3495_v47, %v3493_v58  ;;  %v3520_v45 = vpack.c.bf16 %v3494_v62, %v3492_v53 }
 0x43a   :  { %4604 = vrsqrt.f32 %v3460_v44  ;;  %v3461_v20 = vadd.f32 1e-08, %v3445_v14 }
 0x43b   :  { %3715 = vmatprep.mubr.bf16.mxu1 %v3521_v60 }
 0x43c   :  { %v4601_v48 = vpop.eup %4600  ;;  %4606 = vrsqrt.f32 %v3461_v20  ;;  %3716 = vmatmul.mubr.bf16.gmra.mrb[56].mxu1 %v3520_v45 }
 0x43d   :  { %v3419_v1 = vpop.xlane.xlu0 %3418  ;;  %v3497_v36 = vmul.f32 %v4601_v48, %v5265_v27  ;;  %v3496_v42 = vmul.f32 %v4601_v48, %v5263_v9 }
 0x43e   :  { %v4603_v6 = vpop.eup %4602  ;;  %v3446_v21 = vmul.f32 0.00390625, %v3419_v1 }
 0x43f   :  { %v3422_v38 = vpop.xlane.xlu1 %3421  ;;  %v3499_v34 = vmul.f32 %v4603_v6, %v5277_v11  ;;  %v3498_v52 = vmul.f32 %v4603_v6, %v5273_v61 }
 0x440   :  { %v3462_v8 = vadd.f32 1e-08, %v3446_v21  ;;  %v3447_v56 = vmul.f32 0.00390625, %v3422_v38 }
 0x441   :  { %v3523_v28 = vpack.c.bf16 %v3499_v34, %v3497_v36  ;;  %v3522_v33 = vpack.c.bf16 %v3498_v52, %v3496_v42 }
 0x442   :  { %4608 = vrsqrt.f32 %v3462_v8  ;;  %v3463_v24 = vadd.f32 1e-08, %v3447_v56 }
 0x443   :  { %3723 = vmatprep.mubr.bf16.mxu1 %v3523_v28 }
 0x444   :  { %v4605_v43 = vpop.eup %4604  ;;  %4610 = vrsqrt.f32 %v3463_v24  ;;  %3724 = vmatmul.mubr.bf16.gmra.mrb[60].mxu1 %v3522_v33 }
 0x445   :  { %v3425_v12 = vpop.xlane.xlu0 %3424  ;;  %v3501_v11 = vmul.f32 %v4605_v43, %v5289_v55  ;;  %v3500_v61 = vmul.f32 %v4605_v43, %v5287_v51 }
 0x446   :  { %v4607_v29 = vpop.eup %4606  ;;  %v3448_v0 = vmul.f32 0.00390625, %v3425_v12 }
 0x447   :  { %v3428_v27 = vpop.xlane.xlu1 %3427  ;;  %v3503_v9 = vmul.f32 %v4607_v29, %v5301_v37  ;;  %v3502_v39 = vmul.f32 %v4607_v29, %v5297_v57 }
 0x448   :  { %v3464_v22 = vadd.f32 1e-08, %v3448_v0  ;;  %v3449_v46 = vmul.f32 0.00390625, %v3428_v27 }
 0x449   :  { %v3525_v30 = vpack.c.bf16 %v3503_v9, %v3501_v11  ;;  %v3524_v23 = vpack.c.bf16 %v3502_v39, %v3500_v61 }
 0x44a   :  { %4612 = vrsqrt.f32 %v3464_v22  ;;  %v3465_v17 = vadd.f32 1e-08, %v3449_v46 }
 0x44b   :  { %3731 = vmatprep.mubr.bf16.mxu1 %v3525_v30 }
 0x44c   :  { %v4609_v4 = vpop.eup %4608  ;;  %4614 = vrsqrt.f32 %v3465_v17  ;;  %3732 = vmatmul.mubr.bf16.gmra.mrb[64].mxu1 %v3524_v23 }
 0x44d   :  { %v3431_v16 = vpop.xlane.xlu0 %3430  ;;  %v3505_v37 = vmul.f32 %v4609_v4, %v5313_v63  ;;  %v3504_v57 = vmul.f32 %v4609_v4, %v5311_v26 }
 0x44e   :  { %v4611_v25 = vpop.eup %4610  ;;  %v3450_v31 = vmul.f32 0.00390625, %v3431_v16 }
 0x44f   :  { %v3434_v55 = vpop.xlane.xlu1 %3433  ;;  %v3507_v51 = vmul.f32 %v4611_v25, %v5325_v7  ;;  %v3506_v15 = vmul.f32 %v4611_v25, %v5321_v41 }
 0x450   :  { %v3466_v3 = vadd.f32 1e-08, %v3450_v31  ;;  %v3451_v19 = vmul.f32 0.00390625, %v3434_v55 }
 0x451   :  { %v3527_v35 = vpack.c.bf16 %v3507_v51, %v3505_v37  ;;  %v3526_v32 = vpack.c.bf16 %v3506_v15, %v3504_v57 }
 0x452   :  { %4616 = vrsqrt.f32 %v3466_v3  ;;  %v3467_v49 = vadd.f32 1e-08, %v3451_v19 }
 0x453   :  { %3739 = vmatprep.mubr.bf16.mxu1 %v3527_v35 }
 0x454   :  { %v4613_v50 = vpop.eup %4612  ;;  %4618 = vrsqrt.f32 %v3467_v49  ;;  %3740 = vmatmul.mubr.bf16.gmra.mrb[68].mxu1 %v3526_v32 }
 0x455   :  { %v3509_v47 = vmul.f32 %v4613_v50, %v5337_v59  ;;  %v3508_v7 = vmul.f32 %v4613_v50, %v5335_v13 }
 0x456   :  { %v4615_v58 = vpop.eup %4614 }
 0x457   :  { %v3511_v63 = vmul.f32 %v4615_v58, %v5349_v40  ;;  %v3510_v26 = vmul.f32 %v4615_v58, %v5345_v5  ;;  %v5410_v5 = vld [vmem:[%s5449_s6] ss:$0 sm:$0xff]  ;;  %s4750_s6 = smov [#allocation13]  }
 0x458   :  { %s3785_s30 = sshll.u32 %s4750_s6, 4  ;;  %s3786_s30 = int_to_ptr.vmem [resolvable:$true] %s3785_s30 }
 0x459   :  { %v3529_v41 = vpack.c.bf16 %v3511_v63, %v3509_v47  ;;  %v3528_v53 = vpack.c.bf16 %v3510_v26, %v3508_v7  ;;  %s4710_s8 = scalar_lea.vmem %s3786_s30, 2048  ;;  %p4715_p5 = scmp.lt.s32.totalorder %s3786_s30, %s3786_s30 }
 0x45a   :  { %p4711_p4 = scmp.ne.s32.totalorder %s3786_s30, %s4710_s8  ;;  %p4716_p6 = scmp.lt.s32.totalorder %s4710_s8, %s4710_s8 }
 0x45b   :  { %3747 = vmatprep.mubr.bf16.mxu1 %v3529_v41 }
 0x45c   :  { %v4617_v62 = vpop.eup %4616  ;;  %3748 = vmatmul.mubr.bf16.gmra.mrb[72].mxu1 %v3528_v53  ;;  %p4717_p7 = por %p4716_p6, %p4715_p5 }
 0x45d   :  { %v3513_v14 = vmul.f32 %v4617_v62, %v5361_v2  ;;  %v3512_v45 = vmul.f32 %v4617_v62, %v5359_v10 }
 0x45e   :  { %v4619_v44 = vpop.eup %4618  ;;  %p4718_p8 = pnand %p4717_p7, %p4711_p4 }
 0x45f   :  { %v3515_v60 = vmul.f32 %v4619_v44, %v5369_v18  ;;  %v3514_v59 = vmul.f32 %v4619_v44, %v5367_v54 }
 0x461   :  { %v3531_v20 = vpack.c.bf16 %v3515_v60, %v3513_v14  ;;  %v3530_v40 = vpack.c.bf16 %v3514_v59, %v3512_v45 }
 0x463   :  { %3755 = vmatprep.mubr.bf16.mxu1 %v3531_v20 }
 0x464   :  { %3756 = vmatmul.mubr.bf16.gmra.mrb[76].mxu1 %v3530_v40 }
 0x4ff   :  { %v4105_v13 = vpop.f32.mrb[48].mxu1 }
 0x500   :  { %v4106_v48 = vpop.f32.mrb[49].mxu1 }
 0x501   :  { %v4107_v1 = vadd.f32 %v4106_v48, %v4105_v13  ;;  %v4108_v6 = vpop.f32.mrb[50].mxu1 }
 0x502   :  { %v4109_v2 = vpop.f32.mrb[51].mxu1 }
 0x503   :  { %v3702_v18 = vadd.f32 %v4107_v1, %v5410_v5  ;;  %v4110_v21 = vadd.f32 %v4109_v2, %v4108_v6 }
 0x505   :  { %3764 = vst [vmem:[#allocation13] sm:$0xff] %v3702_v18  ;;  %v3705_v10 = vadd.f32 %v4110_v21, %v5410_v5 }
 0x507   :  { %3765 = vst [vmem:[#allocation13 + $0x8] sm:$0xff] %v3705_v10  ;;  %v4111_v54 = vpop.f32.mrb[52].mxu1 }
 0x508   :  { %v4112_v38 = vpop.f32.mrb[53].mxu1 }
 0x509   :  { %v4113_v36 = vadd.f32 %v4112_v38, %v4111_v54  ;;  %v4114_v34 = vpop.f32.mrb[54].mxu1 }
 0x50a   :  { %v4115_v42 = vpop.f32.mrb[55].mxu1 }
 0x50b   :  { %v3710_v52 = vadd.f32 %v4113_v36, %v5410_v5  ;;  %v4116_v8 = vadd.f32 %v4115_v42, %v4114_v34 }
 0x50d   :  { %3766 = vst [vmem:[#allocation13 + $0x10] sm:$0xff] %v3710_v52  ;;  %v3713_v56 = vadd.f32 %v4116_v8, %v5410_v5 }
 0x50f   :  { %3767 = vst [vmem:[#allocation13 + $0x18] sm:$0xff] %v3713_v56  ;;  %v4117_v28 = vpop.f32.mrb[56].mxu1 }
 0x510   :  { %v4118_v33 = vpop.f32.mrb[57].mxu1 }
 0x511   :  { %v4119_v24 = vadd.f32 %v4118_v33, %v4117_v28  ;;  %v4120_v43 = vpop.f32.mrb[58].mxu1 }
 0x512   :  { %v4121_v12 = vpop.f32.mrb[59].mxu1 }
 0x513   :  { %v3718_v29 = vadd.f32 %v4119_v24, %v5410_v5  ;;  %v4122_v0 = vadd.f32 %v4121_v12, %v4120_v43 }
 0x515   :  { %3768 = vst [vmem:[#allocation13 + $0x20] sm:$0xff] %v3718_v29  ;;  %v3721_v27 = vadd.f32 %v4122_v0, %v5410_v5 }
 0x517   :  { %3769 = vst [vmem:[#allocation13 + $0x28] sm:$0xff] %v3721_v27  ;;  %v4123_v11 = vpop.f32.mrb[60].mxu1 }
 0x518   :  { %v4124_v9 = vpop.f32.mrb[61].mxu1 }
 0x519   :  { %v4125_v61 = vadd.f32 %v4124_v9, %v4123_v11  ;;  %v4126_v39 = vpop.f32.mrb[62].mxu1 }
 0x51a   :  { %v4127_v22 = vpop.f32.mrb[63].mxu1 }
 0x51b   :  { %v3726_v46 = vadd.f32 %v4125_v61, %v5410_v5  ;;  %v4128_v30 = vadd.f32 %v4127_v22, %v4126_v39 }
 0x51d   :  { %3770 = vst [vmem:[#allocation13 + $0x30] sm:$0xff] %v3726_v46  ;;  %v3729_v23 = vadd.f32 %v4128_v30, %v5410_v5 }
 0x51f   :  { %3771 = vst [vmem:[#allocation13 + $0x38] sm:$0xff] %v3729_v23  ;;  %v4129_v17 = vpop.f32.mrb[64].mxu1 }
 0x520   :  { %v4130_v4 = vpop.f32.mrb[65].mxu1 }
 0x521   :  { %v4131_v16 = vadd.f32 %v4130_v4, %v4129_v17  ;;  %v4132_v25 = vpop.f32.mrb[66].mxu1 }
 0x522   :  { %v4133_v31 = vpop.f32.mrb[67].mxu1 }
 0x523   :  { %v3734_v55 = vadd.f32 %v4131_v16, %v5410_v5  ;;  %v4134_v37 = vadd.f32 %v4133_v31, %v4132_v25 }
 0x525   :  { %3772 = vst [vmem:[#allocation13 + $0x40] sm:$0xff] %v3734_v55  ;;  %v3737_v51 = vadd.f32 %v4134_v37, %v5410_v5 }
 0x527   :  { %3773 = vst [vmem:[#allocation13 + $0x48] sm:$0xff] %v3737_v51  ;;  %v4135_v57 = vpop.f32.mrb[68].mxu1 }
 0x528   :  { %v4136_v15 = vpop.f32.mrb[69].mxu1 }
 0x529   :  { %v4137_v3 = vadd.f32 %v4136_v15, %v4135_v57  ;;  %v4138_v19 = vpop.f32.mrb[70].mxu1 }
 0x52a   :  { %v4139_v35 = vpop.f32.mrb[71].mxu1 }
 0x52b   :  { %v3742_v32 = vadd.f32 %v4137_v3, %v5410_v5  ;;  %v4140_v49 = vadd.f32 %v4139_v35, %v4138_v19 }
 0x52d   :  { %3774 = vst [vmem:[#allocation13 + $0x50] sm:$0xff] %v3742_v32  ;;  %v3745_v50 = vadd.f32 %v4140_v49, %v5410_v5 }
 0x52f   :  { %3775 = vst [vmem:[#allocation13 + $0x58] sm:$0xff] %v3745_v50  ;;  %v4141_v58 = vpop.f32.mrb[72].mxu1 }
 0x530   :  { %v4142_v47 = vpop.f32.mrb[73].mxu1 }
 0x531   :  { %v4143_v63 = vadd.f32 %v4142_v47, %v4141_v58  ;;  %v4144_v7 = vpop.f32.mrb[74].mxu1 }
 0x532   :  { %v4145_v26 = vpop.f32.mrb[75].mxu1 }
 0x533   :  { %v3750_v41 = vadd.f32 %v4143_v63, %v5410_v5  ;;  %v4146_v53 = vadd.f32 %v4145_v26, %v4144_v7 }
 0x535   :  { %3776 = vst [vmem:[#allocation13 + $0x60] sm:$0xff] %v3750_v41  ;;  %v3753_v62 = vadd.f32 %v4146_v53, %v5410_v5 }
 0x537   :  { %3777 = vst [vmem:[#allocation13 + $0x68] sm:$0xff] %v3753_v62  ;;  %v4147_v44 = vpop.f32.mrb[76].mxu1 }
 0x538   :  { %v4148_v14 = vpop.f32.mrb[77].mxu1 }
 0x539   :  { %v4149_v60 = vadd.f32 %v4148_v14, %v4147_v44  ;;  %v4150_v45 = vpop.f32.mrb[78].mxu1 }
 0x53a   :  { %v4151_v59 = vpop.f32.mrb[79].mxu1 }
 0x53b   :  { %v3758_v20 = vadd.f32 %v4149_v60, %v5410_v5  ;;  %v4152_v40 = vadd.f32 %v4151_v59, %v4150_v45 }
 0x53d   :  { %3778 = vst [vmem:[#allocation13 + $0x70] sm:$0xff] %v3758_v20  ;;  %v3761_v13 = vadd.f32 %v4152_v40, %v5410_v5 }
 0x53f   :  { %3779 = vst [vmem:[#allocation13 + $0x78] sm:$0xff] %v3761_v13 }
 0x540   :  { %4721 = shalt.err (!%p4718_p8)
}
 0x541   :  { %s4722_s11 = scalar_lea.hbm %s5450_s7, 2048 }
 0x542   :  { %p4723_p9 = scmp.ne.s32.totalorder %s5450_s7, %s4722_s11  ;;  %p4726_p10 = scmp.lt.u32.totalorder %s4722_s11, %s5450_s7 }
 0x544   :  { %p4728_p11 = pnand %p4726_p10, %p4723_p9 }
 0x546   :  { %4731 = shalt.err (!%p4728_p11)
}
 0x547   :  { %3791 = dma.vmem_to_hbm [thread:$0]  %s3786_s30, 2048, %s5450_s7, [#allocation7], %s4745_s0, %s4745_s0, %s4746_s14  }
 0x548   :  { %4738 = dma.done.wait [#allocation7], 2048  }
 0x549   :  { %4739 = vsyncadd [#allocation7], 4294965248 }
 0x54a   :  { %3795 = vsyncpa [#allocation6], 1 }
 0x54b   :  { %3796 = vsyncpa [#allocation9], 1 }
 0x54c   :  { %3797 = vsyncpa [#allocation12], 1 }
 0x54d   :  { %3798 = vsyncpa [#allocation7], 1 }

</bundles_post_ra>
